<compile_context>
chip_gen: v7x
topology: tpu7x:2x2x1
jax: 0.10.0
libtpu: 0.0.40
codegen_flags: <defaults>
</compile_context>

<pallas_src>
import functools

import jax
import jax.numpy as jnp
from jax.experimental import pallas as pl
from jax.experimental.pallas import tpu as pltpu

BN_EPS = 1e-5      # PyTorch BatchNorm2d default eps
FUSE_EPS = 1e-4    # ChannelFuseBlock.epsilon


# ----------------------------------------------------------------------------
# Fused kernel: conv0 (stride-2) + ChannelFuseBlock + BasicBlock, one batch/step
# ----------------------------------------------------------------------------
def _fused_kernel(fw_ref, planes_ref, w0_ref, b0_ref, tup_ref, wup_ref,
                  w1_ref, b1_ref, w2_ref, b2_ref, o_ref, pad_ref,
                  *, OH, OW, Cin, C):
    """Refs (per grid step = one batch element):
      fw      (2,)   SMEM          relu+normalised fuse weights
      planes  (4, OH+1, OW+1, Cin) parity planes of zero-padded x0
      w0      (9, Cin, C)          stride-2 conv weight, BN scale folded
      b0      (1, C)               folded BN bias
      tup     (1, M, 9*8)          im2col taps of x1 (conv_up, 8 channels)
      wup     (9*8, C)
      w1, w2  (9*C, C)             BasicBlock conv weights, BN scale folded
      b1, b2  (1, C)
      o       (1, M, C)
      pad     (1, OH+2, OW+2, C)   VMEM scratch (zero-padded plane)
    """
    M = OH * OW

    # ---- b0_in_down: 3x3 stride-2 Conv(Cin->C) + BN + ReLU -----------------
    # Each tap (kh,kw) is a contiguous (OH,OW) window of parity plane (kh%2,kw%2).
    acc = jnp.zeros((M, C), jnp.float32)
    for kh in range(3):
        p, a0 = kh % 2, kh // 2
        for kw in range(3):
            q, c0 = kw % 2, kw // 2
            tap = planes_ref[p * 2 + q, a0:a0 + OH, c0:c0 + OW, :].reshape(M, Cin)
            acc = acc + jnp.dot(tap, w0_ref[kh * 3 + kw],
                                preferred_element_type=jnp.float32)
    t = jnp.maximum(acc + b0_ref[...], 0.0)                          # (M, C)

    # ---- ChannelFuseBlock: conv_up(8->C) + weighted fuse + ReLU ------------
    y = jnp.dot(tup_ref[0], wup_ref[...], preferred_element_type=jnp.float32)
    fused = jnp.maximum(fw_ref[0] * t + fw_ref[1] * y, 0.0)          # (M, C)

    # ---- BasicBlock: conv-bn-relu, conv-bn, +residual, relu ----------------
    # Zero the padded plane once; only the interior is rewritten per conv, so
    # the border stays zero for both convolutions.
    pad_ref[...] = jnp.zeros((1, OH + 2, OW + 2, C), jnp.float32)

    def conv3x3_vmem(x2d, w_r, b_r):
        pad_ref[:, 1:OH + 1, 1:OW + 1, :] = x2d.reshape(1, OH, OW, C)
        taps = [pad_ref[:, kh:kh + OH, kw:kw + OW, :].reshape(M, C)
                for kh in range(3) for kw in range(3)]
        t9 = jnp.concatenate(taps, axis=-1)                          # (M, 9C)
        return (jnp.dot(t9, w_r[...], preferred_element_type=jnp.float32)
                + b_r[...])

    h = jnp.maximum(conv3x3_vmem(fused, w1_ref, b1_ref), 0.0)
    h = conv3x3_vmem(h, w2_ref, b2_ref)
    o_ref[...] = jnp.maximum(h + fused, 0.0).reshape(1, M, C).astype(o_ref.dtype)


def transition_fpn_fused(fuse_w, planes, w0, b0, taps_up, w_up, w1, b1, w2, b2,
                         *, B, OH, OW, Cin, C):
    M = OH * OW
    HP, WP = OH + 1, OW + 1
    Kup = taps_up.shape[-1]
    kernel = functools.partial(_fused_kernel, OH=OH, OW=OW, Cin=Cin, C=C)
    return pl.pallas_call(
        kernel,
        out_shape=jax.ShapeDtypeStruct((B, M, C), jnp.float32),
        grid=(B,),
        in_specs=[
            pl.BlockSpec(memory_space=pltpu.MemorySpace.SMEM),          # fuse_w
            pl.BlockSpec((4, HP, WP, Cin), lambda b: (b, 0, 0, 0)),     # planes
            pl.BlockSpec((9, Cin, C), lambda b: (0, 0, 0)),             # w0
            pl.BlockSpec((1, C), lambda b: (0, 0)),                     # b0
            pl.BlockSpec((1, M, Kup), lambda b: (b, 0, 0)),             # conv_up taps
            pl.BlockSpec((Kup, C), lambda b: (0, 0)),                   # conv_up w
            pl.BlockSpec((9 * C, C), lambda b: (0, 0)),                 # bb conv1 w
            pl.BlockSpec((1, C), lambda b: (0, 0)),                     # bb conv1 bias
            pl.BlockSpec((9 * C, C), lambda b: (0, 0)),                 # bb conv2 w
            pl.BlockSpec((1, C), lambda b: (0, 0)),                     # bb conv2 bias
        ],
        out_specs=pl.BlockSpec((1, M, C), lambda b: (b, 0, 0)),
        scratch_shapes=[pltpu.VMEM((1, OH + 2, OW + 2, C), jnp.float32)],
        compiler_params=pltpu.CompilerParams(
            dimension_semantics=("parallel",)),
    )(fuse_w, planes, w0, b0, taps_up, w_up, w1, b1, w2, b2)


# ----------------------------------------------------------------------------
# Glue
# ----------------------------------------------------------------------------
def _parity_planes(x_nhwc):
    """Zero-pad by 1 and split into 4 (row,col)-parity planes.

    Returns (B*4, H/2+1, W/2+1, Cin) with plane index p*2+q = xpad[:, p::2, q::2].
    Every tap of a 3x3 / stride-2 convolution is a contiguous window of one of
    these planes, so the kernel builds its im2col reads directly from VMEM.
    """
    B, H, W, Cin = x_nhwc.shape
    assert H % 2 == 0 and W % 2 == 0
    xp = jnp.pad(x_nhwc, ((0, 0), (1, 1), (1, 1), (0, 0)))
    planes = jnp.stack([xp[:, p::2, q::2, :] for p in (0, 1) for q in (0, 1)],
                       axis=1)                                # (B,4,H/2+1,W/2+1,Cin)
    return planes.reshape(B * 4, H // 2 + 1, W // 2 + 1, Cin)


def _im2col_s1(x_nhwc):
    """3x3 pad=1 stride=1 im2col -> (B, H, W, 9*Cin), tap order (kh, kw, cin)."""
    B, H, W, Cin = x_nhwc.shape
    xp = jnp.pad(x_nhwc, ((0, 0), (1, 1), (1, 1), (0, 0)))
    taps = [xp[:, kh:kh + H, kw:kw + W, :] for kh in range(3) for kw in range(3)]
    return jnp.concatenate(taps, axis=-1)


def bn_fold(gamma, beta, mean, var):
    scale = gamma / jnp.sqrt(var + BN_EPS)
    return scale, beta - mean * scale


def transition_fpn_forward(params, x0_nchw, x1_nchw):
    """x0: (B,256,H,W), x1: (B,8,H/2,W/2) -> (B,64,H/2,W/2)  (NCHW in/out)."""
    x0 = jnp.transpose(x0_nchw, (0, 2, 3, 1)).astype(jnp.float32)   # (B,H,W,256)
    x1 = jnp.transpose(x1_nchw, (0, 2, 3, 1)).astype(jnp.float32)   # (B,OH,OW,8)
    B, H, W, Cin = x0.shape
    OH, OW = H // 2, W // 2
    C = params["b0_w"].shape[-1]
    M = OH * OW

    # b0_in_down: fold BN scale into the conv weight (bias handled in epilogue)
    s0, bias0 = bn_fold(params["b0_gamma"], params["b0_beta"],
                        params["b0_mean"], params["b0_var"])
    w0 = (params["b0_w"] * s0).reshape(9, Cin, C).astype(jnp.float32)
    planes = _parity_planes(x0)

    # ChannelFuseBlock fuse weights
    rs = jnp.maximum(params["rs_w"], 0.0)
    fuse_w = (rs / (jnp.sum(rs) + FUSE_EPS)).astype(jnp.float32)

    taps_up = _im2col_s1(x1).reshape(B, M, -1).astype(jnp.float32)
    w_up = params["cfs_up_w"].reshape(-1, C).astype(jnp.float32)

    # BasicBlock: fold BN scales into conv weights
    s1, b1 = bn_fold(params["bb_bn1_gamma"], params["bb_bn1_beta"],
                     params["bb_bn1_mean"], params["bb_bn1_var"])
    s2, b2 = bn_fold(params["bb_bn2_gamma"], params["bb_bn2_beta"],
                     params["bb_bn2_mean"], params["bb_bn2_var"])
    w1 = (params["bb_conv1_w"] * s1).reshape(-1, C).astype(jnp.float32)
    w2 = (params["bb_conv2_w"] * s2).reshape(-1, C).astype(jnp.float32)

    out = transition_fpn_fused(
        fuse_w, planes, w0, bias0.reshape(1, C).astype(jnp.float32),
        taps_up, w_up,
        w1, b1.reshape(1, C).astype(jnp.float32),
        w2, b2.reshape(1, C).astype(jnp.float32),
        B=B, OH=OH, OW=OW, Cin=Cin, C=C)

    out = out.reshape(B, OH, OW, C)
    return jnp.transpose(out, (0, 3, 1, 2))                 # NHWC -> NCHW


# ----------------------------------------------------------------------------
# Pure-JAX reference (lax.conv) for validation
# ----------------------------------------------------------------------------
def _conv_ref(x, w, stride):
    return jax.lax.conv_general_dilated(
        x, w, (stride, stride), ((1, 1), (1, 1)),
        dimension_numbers=("NHWC", "HWIO", "NHWC"))


def transition_fpn_ref(params, x0_nchw, x1_nchw):
    x0 = jnp.transpose(x0_nchw, (0, 2, 3, 1))
    x1 = jnp.transpose(x1_nchw, (0, 2, 3, 1))
    s0, b0 = bn_fold(params["b0_gamma"], params["b0_beta"],
                     params["b0_mean"], params["b0_var"])
    t = jnp.maximum(_conv_ref(x0, params["b0_w"], 2) * s0 + b0, 0.0)
    y = _conv_ref(x1, params["cfs_up_w"], 1)
    rs = jnp.maximum(params["rs_w"], 0.0)
    w = rs / (jnp.sum(rs) + FUSE_EPS)
    fused = jnp.maximum(w[0] * t + w[1] * y, 0.0)
    s1, b1 = bn_fold(params["bb_bn1_gamma"], params["bb_bn1_beta"],
                     params["bb_bn1_mean"], params["bb_bn1_var"])
    h = jnp.maximum(_conv_ref(fused, params["bb_conv1_w"], 1) * s1 + b1, 0.0)
    s2, b2 = bn_fold(params["bb_bn2_gamma"], params["bb_bn2_beta"],
                     params["bb_bn2_mean"], params["bb_bn2_var"])
    h = _conv_ref(h, params["bb_conv2_w"], 1) * s2 + b2
    out = jnp.maximum(h + fused, 0.0)
    return jnp.transpose(out, (0, 3, 1, 2))


# ----------------------------------------------------------------------------
def init_params(key):
    ks = jax.random.split(key, 4)

    def winit(k, shape):
        return 0.1 * jax.random.normal(k, shape, jnp.float32)

    def bn_init(c):  # PyTorch BatchNorm2d default init / running stats
        return (jnp.ones((c,), jnp.float32), jnp.zeros((c,), jnp.float32),
                jnp.zeros((c,), jnp.float32), jnp.ones((c,), jnp.float32))

    g0, be0, m0, v0 = bn_init(64)
    g1, be1, m1, v1 = bn_init(64)
    g2, be2, m2, v2 = bn_init(64)
    return {
        # b0_in_down: Conv2d(256, 64, 3, stride=2) weights in HWIO
        "b0_w": winit(ks[0], (3, 3, 256, 64)),
        "b0_gamma": g0, "b0_beta": be0, "b0_mean": m0, "b0_var": v0,
        # ChannelFuseBlock.conv_up: Conv2d(8, 64, 3)
        "cfs_up_w": winit(ks[1], (3, 3, 8, 64)),
        "rs_w": jnp.ones((2,), jnp.float32),
        # BasicBlock(64, 64)
        "bb_conv1_w": winit(ks[2], (3, 3, 64, 64)),
        "bb_bn1_gamma": g1, "bb_bn1_beta": be1, "bb_bn1_mean": m1, "bb_bn1_var": v1,
        "bb_conv2_w": winit(ks[3], (3, 3, 64, 64)),
        "bb_bn2_gamma": g2, "bb_bn2_beta": be2, "bb_bn2_mean": m2, "bb_bn2_var": v2,
    }


if __name__ == "__main__":
    key = jax.random.PRNGKey(0)
    kp, kx0, kx1 = jax.random.split(key, 3)
    params = init_params(kp)

    # num_branches == 2 inputs: x[0]=(B,256,H,W), x[1]=(B,8,H/2,W/2)
    x0 = jax.random.normal(kx0, (2, 256, 16, 16), jnp.float32)
    x1 = jax.random.normal(kx1, (2, 8, 8, 8), jnp.float32)

    fwd = jax.jit(transition_fpn_forward)
    out = jax.block_until_ready(fwd(params, x0, x1))

    ref = jax.block_until_ready(transition_fpn_ref(params, x0, x1))
    assert out.shape == (2, 64, 8, 8), out.shape
    assert jnp.allclose(out, ref, atol=2e-3, rtol=2e-3), float(
        jnp.max(jnp.abs(out - ref)))

    print("KERNEL_OK")
</pallas_src>

<mosaic_0001>
module attributes {stable_mosaic.version = 11 : i64} {
  func.func @_fused_kernel(%arg0: i32, %arg1: memref<2xf32, #tpu.memory_space<smem>>, %arg2: memref<4x9x9x256xf32, #tpu.memory_space<vmem>>, %arg3: memref<9x256x64xf32, #tpu.memory_space<vmem>>, %arg4: memref<1x64xf32, #tpu.memory_space<vmem>>, %arg5: memref<1x64x72xf32, #tpu.memory_space<vmem>>, %arg6: memref<72x64xf32, #tpu.memory_space<vmem>>, %arg7: memref<576x64xf32, #tpu.memory_space<vmem>>, %arg8: memref<1x64xf32, #tpu.memory_space<vmem>>, %arg9: memref<576x64xf32, #tpu.memory_space<vmem>>, %arg10: memref<1x64xf32, #tpu.memory_space<vmem>>, %arg11: memref<1x64x64xf32, #tpu.memory_space<vmem>>, %arg12: memref<1x10x10x64xf32, #tpu.memory_space<vmem>>) attributes {dimension_semantics = [#tpu.dimension_semantics<parallel>], iteration_bounds = array<i64: 2>, scalar_prefetch = 0 : i64, scratch_operands = 1 : i64, tpu.core_type = #tpu.core_type<tc>, window_params = [{transform_indices = @transform_0, window_bounds = array<i64: 2>}, {transform_indices = @transform_1, window_bounds = array<i64: 4, 9, 9, 256>}, {pipeline_mode = #tpu.pipeline_mode<synchronous>, transform_indices = @transform_2, window_bounds = array<i64: 9, 256, 64>}, {pipeline_mode = #tpu.pipeline_mode<synchronous>, transform_indices = @transform_3, window_bounds = array<i64: 1, 64>}, {transform_indices = @transform_4, window_bounds = array<i64: 1, 64, 72>}, {pipeline_mode = #tpu.pipeline_mode<synchronous>, transform_indices = @transform_5, window_bounds = array<i64: 72, 64>}, {pipeline_mode = #tpu.pipeline_mode<synchronous>, transform_indices = @transform_6, window_bounds = array<i64: 576, 64>}, {pipeline_mode = #tpu.pipeline_mode<synchronous>, transform_indices = @transform_7, window_bounds = array<i64: 1, 64>}, {pipeline_mode = #tpu.pipeline_mode<synchronous>, transform_indices = @transform_8, window_bounds = array<i64: 576, 64>}, {pipeline_mode = #tpu.pipeline_mode<synchronous>, transform_indices = @transform_9, window_bounds = array<i64: 1, 64>}, {transform_indices = @transform_10, window_bounds = array<i64: 1, 64, 64>}]} {
    %cst = arith.constant 0.000000e+00 : f32
    %0 = vector.broadcast %cst : f32 to vector<64x64xf32>
    %c0 = arith.constant 0 : index
    %c0_0 = arith.constant 0 : index
    %c0_1 = arith.constant 0 : index
    %c0_2 = arith.constant 0 : index
    %1 = vector.load %arg2[%c0, %c0_0, %c0_1, %c0_2] : memref<4x9x9x256xf32, #tpu.memory_space<vmem>>, vector<1x8x8x256xf32>
    %2 = vector.shape_cast %1 : vector<1x8x8x256xf32> to vector<8x8x256xf32>
    %3 = vector.shape_cast %2 : vector<8x8x256xf32> to vector<64x256xf32>
    %c0_3 = arith.constant 0 : index
    %c0_4 = arith.constant 0 : index
    %c0_5 = arith.constant 0 : index
    %4 = vector.load %arg3[%c0_3, %c0_4, %c0_5] : memref<9x256x64xf32, #tpu.memory_space<vmem>>, vector<1x256x64xf32>
    %5 = vector.shape_cast %4 : vector<1x256x64xf32> to vector<256x64xf32>
    %cst_6 = arith.constant dense<0.000000e+00> : vector<64x64xf32>
    %6 = tpu.matmul %3, %5, %cst_6 {dimension_numbers = #tpu.dot_dimension_numbers<[1], [0], [0], [1], [0, 0, 1, 1], [], []>} : vector<64x256xf32>, vector<256x64xf32>, vector<64x64xf32> -> vector<64x64xf32>
    %7 = arith.addf %0, %6 : vector<64x64xf32>
    %c1 = arith.constant 1 : index
    %c0_7 = arith.constant 0 : index
    %c0_8 = arith.constant 0 : index
    %c0_9 = arith.constant 0 : index
    %8 = vector.load %arg2[%c1, %c0_7, %c0_8, %c0_9] : memref<4x9x9x256xf32, #tpu.memory_space<vmem>>, vector<1x8x8x256xf32>
    %9 = vector.shape_cast %8 : vector<1x8x8x256xf32> to vector<8x8x256xf32>
    %10 = vector.shape_cast %9 : vector<8x8x256xf32> to vector<64x256xf32>
    %c1_10 = arith.constant 1 : index
    %c0_11 = arith.constant 0 : index
    %c0_12 = arith.constant 0 : index
    %11 = vector.load %arg3[%c1_10, %c0_11, %c0_12] : memref<9x256x64xf32, #tpu.memory_space<vmem>>, vector<1x256x64xf32>
    %12 = vector.shape_cast %11 : vector<1x256x64xf32> to vector<256x64xf32>
    %cst_13 = arith.constant dense<0.000000e+00> : vector<64x64xf32>
    %13 = tpu.matmul %10, %12, %cst_13 {dimension_numbers = #tpu.dot_dimension_numbers<[1], [0], [0], [1], [0, 0, 1, 1], [], []>} : vector<64x256xf32>, vector<256x64xf32>, vector<64x64xf32> -> vector<64x64xf32>
    %14 = arith.addf %7, %13 : vector<64x64xf32>
    %c0_14 = arith.constant 0 : index
    %c0_15 = arith.constant 0 : index
    %c1_16 = arith.constant 1 : index
    %c0_17 = arith.constant 0 : index
    %15 = vector.load %arg2[%c0_14, %c0_15, %c1_16, %c0_17] : memref<4x9x9x256xf32, #tpu.memory_space<vmem>>, vector<1x8x8x256xf32>
    %16 = vector.shape_cast %15 : vector<1x8x8x256xf32> to vector<8x8x256xf32>
    %17 = vector.shape_cast %16 : vector<8x8x256xf32> to vector<64x256xf32>
    %c2 = arith.constant 2 : index
    %c0_18 = arith.constant 0 : index
    %c0_19 = arith.constant 0 : index
    %18 = vector.load %arg3[%c2, %c0_18, %c0_19] : memref<9x256x64xf32, #tpu.memory_space<vmem>>, vector<1x256x64xf32>
    %19 = vector.shape_cast %18 : vector<1x256x64xf32> to vector<256x64xf32>
    %cst_20 = arith.constant dense<0.000000e+00> : vector<64x64xf32>
    %20 = tpu.matmul %17, %19, %cst_20 {dimension_numbers = #tpu.dot_dimension_numbers<[1], [0], [0], [1], [0, 0, 1, 1], [], []>} : vector<64x256xf32>, vector<256x64xf32>, vector<64x64xf32> -> vector<64x64xf32>
    %21 = arith.addf %14, %20 : vector<64x64xf32>
    %c2_21 = arith.constant 2 : index
    %c0_22 = arith.constant 0 : index
    %c0_23 = arith.constant 0 : index
    %c0_24 = arith.constant 0 : index
    %22 = vector.load %arg2[%c2_21, %c0_22, %c0_23, %c0_24] : memref<4x9x9x256xf32, #tpu.memory_space<vmem>>, vector<1x8x8x256xf32>
    %23 = vector.shape_cast %22 : vector<1x8x8x256xf32> to vector<8x8x256xf32>
    %24 = vector.shape_cast %23 : vector<8x8x256xf32> to vector<64x256xf32>
    %c3 = arith.constant 3 : index
    %c0_25 = arith.constant 0 : index
    %c0_26 = arith.constant 0 : index
    %25 = vector.load %arg3[%c3, %c0_25, %c0_26] : memref<9x256x64xf32, #tpu.memory_space<vmem>>, vector<1x256x64xf32>
    %26 = vector.shape_cast %25 : vector<1x256x64xf32> to vector<256x64xf32>
    %cst_27 = arith.constant dense<0.000000e+00> : vector<64x64xf32>
    %27 = tpu.matmul %24, %26, %cst_27 {dimension_numbers = #tpu.dot_dimension_numbers<[1], [0], [0], [1], [0, 0, 1, 1], [], []>} : vector<64x256xf32>, vector<256x64xf32>, vector<64x64xf32> -> vector<64x64xf32>
    %28 = arith.addf %21, %27 : vector<64x64xf32>
    %c3_28 = arith.constant 3 : index
    %c0_29 = arith.constant 0 : index
    %c0_30 = arith.constant 0 : index
    %c0_31 = arith.constant 0 : index
    %29 = vector.load %arg2[%c3_28, %c0_29, %c0_30, %c0_31] : memref<4x9x9x256xf32, #tpu.memory_space<vmem>>, vector<1x8x8x256xf32>
    %30 = vector.shape_cast %29 : vector<1x8x8x256xf32> to vector<8x8x256xf32>
    %31 = vector.shape_cast %30 : vector<8x8x256xf32> to vector<64x256xf32>
    %c4 = arith.constant 4 : index
    %c0_32 = arith.constant 0 : index
    %c0_33 = arith.constant 0 : index
    %32 = vector.load %arg3[%c4, %c0_32, %c0_33] : memref<9x256x64xf32, #tpu.memory_space<vmem>>, vector<1x256x64xf32>
    %33 = vector.shape_cast %32 : vector<1x256x64xf32> to vector<256x64xf32>
    %cst_34 = arith.constant dense<0.000000e+00> : vector<64x64xf32>
    %34 = tpu.matmul %31, %33, %cst_34 {dimension_numbers = #tpu.dot_dimension_numbers<[1], [0], [0], [1], [0, 0, 1, 1], [], []>} : vector<64x256xf32>, vector<256x64xf32>, vector<64x64xf32> -> vector<64x64xf32>
    %35 = arith.addf %28, %34 : vector<64x64xf32>
    %c2_35 = arith.constant 2 : index
    %c0_36 = arith.constant 0 : index
    %c1_37 = arith.constant 1 : index
    %c0_38 = arith.constant 0 : index
    %36 = vector.load %arg2[%c2_35, %c0_36, %c1_37, %c0_38] : memref<4x9x9x256xf32, #tpu.memory_space<vmem>>, vector<1x8x8x256xf32>
    %37 = vector.shape_cast %36 : vector<1x8x8x256xf32> to vector<8x8x256xf32>
    %38 = vector.shape_cast %37 : vector<8x8x256xf32> to vector<64x256xf32>
    %c5 = arith.constant 5 : index
    %c0_39 = arith.constant 0 : index
    %c0_40 = arith.constant 0 : index
    %39 = vector.load %arg3[%c5, %c0_39, %c0_40] : memref<9x256x64xf32, #tpu.memory_space<vmem>>, vector<1x256x64xf32>
    %40 = vector.shape_cast %39 : vector<1x256x64xf32> to vector<256x64xf32>
    %cst_41 = arith.constant dense<0.000000e+00> : vector<64x64xf32>
    %41 = tpu.matmul %38, %40, %cst_41 {dimension_numbers = #tpu.dot_dimension_numbers<[1], [0], [0], [1], [0, 0, 1, 1], [], []>} : vector<64x256xf32>, vector<256x64xf32>, vector<64x64xf32> -> vector<64x64xf32>
    %42 = arith.addf %35, %41 : vector<64x64xf32>
    %c0_42 = arith.constant 0 : index
    %c1_43 = arith.constant 1 : index
    %c0_44 = arith.constant 0 : index
    %c0_45 = arith.constant 0 : index
    %43 = vector.load %arg2[%c0_42, %c1_43, %c0_44, %c0_45] : memref<4x9x9x256xf32, #tpu.memory_space<vmem>>, vector<1x8x8x256xf32>
    %44 = vector.shape_cast %43 : vector<1x8x8x256xf32> to vector<8x8x256xf32>
    %45 = vector.shape_cast %44 : vector<8x8x256xf32> to vector<64x256xf32>
    %c6 = arith.constant 6 : index
    %c0_46 = arith.constant 0 : index
    %c0_47 = arith.constant 0 : index
    %46 = vector.load %arg3[%c6, %c0_46, %c0_47] : memref<9x256x64xf32, #tpu.memory_space<vmem>>, vector<1x256x64xf32>
    %47 = vector.shape_cast %46 : vector<1x256x64xf32> to vector<256x64xf32>
    %cst_48 = arith.constant dense<0.000000e+00> : vector<64x64xf32>
    %48 = tpu.matmul %45, %47, %cst_48 {dimension_numbers = #tpu.dot_dimension_numbers<[1], [0], [0], [1], [0, 0, 1, 1], [], []>} : vector<64x256xf32>, vector<256x64xf32>, vector<64x64xf32> -> vector<64x64xf32>
    %49 = arith.addf %42, %48 : vector<64x64xf32>
    %c1_49 = arith.constant 1 : index
    %c1_50 = arith.constant 1 : index
    %c0_51 = arith.constant 0 : index
    %c0_52 = arith.constant 0 : index
    %50 = vector.load %arg2[%c1_49, %c1_50, %c0_51, %c0_52] : memref<4x9x9x256xf32, #tpu.memory_space<vmem>>, vector<1x8x8x256xf32>
    %51 = vector.shape_cast %50 : vector<1x8x8x256xf32> to vector<8x8x256xf32>
    %52 = vector.shape_cast %51 : vector<8x8x256xf32> to vector<64x256xf32>
    %c7 = arith.constant 7 : index
    %c0_53 = arith.constant 0 : index
    %c0_54 = arith.constant 0 : index
    %53 = vector.load %arg3[%c7, %c0_53, %c0_54] : memref<9x256x64xf32, #tpu.memory_space<vmem>>, vector<1x256x64xf32>
    %54 = vector.shape_cast %53 : vector<1x256x64xf32> to vector<256x64xf32>
    %cst_55 = arith.constant dense<0.000000e+00> : vector<64x64xf32>
    %55 = tpu.matmul %52, %54, %cst_55 {dimension_numbers = #tpu.dot_dimension_numbers<[1], [0], [0], [1], [0, 0, 1, 1], [], []>} : vector<64x256xf32>, vector<256x64xf32>, vector<64x64xf32> -> vector<64x64xf32>
    %56 = arith.addf %49, %55 : vector<64x64xf32>
    %c0_56 = arith.constant 0 : index
    %c1_57 = arith.constant 1 : index
    %c1_58 = arith.constant 1 : index
    %c0_59 = arith.constant 0 : index
    %57 = vector.load %arg2[%c0_56, %c1_57, %c1_58, %c0_59] : memref<4x9x9x256xf32, #tpu.memory_space<vmem>>, vector<1x8x8x256xf32>
    %58 = vector.shape_cast %57 : vector<1x8x8x256xf32> to vector<8x8x256xf32>
    %59 = vector.shape_cast %58 : vector<8x8x256xf32> to vector<64x256xf32>
    %c8 = arith.constant 8 : index
    %c0_60 = arith.constant 0 : index
    %c0_61 = arith.constant 0 : index
    %60 = vector.load %arg3[%c8, %c0_60, %c0_61] : memref<9x256x64xf32, #tpu.memory_space<vmem>>, vector<1x256x64xf32>
    %61 = vector.shape_cast %60 : vector<1x256x64xf32> to vector<256x64xf32>
    %cst_62 = arith.constant dense<0.000000e+00> : vector<64x64xf32>
    %62 = tpu.matmul %59, %61, %cst_62 {dimension_numbers = #tpu.dot_dimension_numbers<[1], [0], [0], [1], [0, 0, 1, 1], [], []>} : vector<64x256xf32>, vector<256x64xf32>, vector<64x64xf32> -> vector<64x64xf32>
    %63 = arith.addf %56, %62 : vector<64x64xf32>
    %c0_63 = arith.constant 0 : index
    %c0_64 = arith.constant 0 : index
    %64 = vector.load %arg4[%c0_63, %c0_64] : memref<1x64xf32, #tpu.memory_space<vmem>>, vector<1x64xf32>
    %65 = vector.broadcast %64 : vector<1x64xf32> to vector<64x64xf32>
    %66 = arith.addf %63, %65 : vector<64x64xf32>
    %cst_65 = arith.constant 0.000000e+00 : f32
    %67 = vector.broadcast %cst_65 : f32 to vector<64x64xf32>
    %68 = arith.maximumf %66, %67 : vector<64x64xf32>
    %c0_66 = arith.constant 0 : index
    %c0_67 = arith.constant 0 : index
    %c0_68 = arith.constant 0 : index
    %69 = vector.load %arg5[%c0_66, %c0_67, %c0_68] : memref<1x64x72xf32, #tpu.memory_space<vmem>>, vector<1x64x72xf32>
    %70 = vector.shape_cast %69 : vector<1x64x72xf32> to vector<64x72xf32>
    %c0_69 = arith.constant 0 : index
    %c0_70 = arith.constant 0 : index
    %71 = vector.load %arg6[%c0_69, %c0_70] : memref<72x64xf32, #tpu.memory_space<vmem>>, vector<72x64xf32>
    %cst_71 = arith.constant dense<0.000000e+00> : vector<64x64xf32>
    %72 = tpu.matmul %70, %71, %cst_71 {dimension_numbers = #tpu.dot_dimension_numbers<[1], [0], [0], [1], [0, 0, 1, 1], [], []>} : vector<64x72xf32>, vector<72x64xf32>, vector<64x64xf32> -> vector<64x64xf32>
    %c0_72 = arith.constant 0 : index
    %73 = memref.load %arg1[%c0_72] : memref<2xf32, #tpu.memory_space<smem>>
    %74 = vector.broadcast %73 : f32 to vector<64x64xf32>
    %75 = arith.mulf %74, %68 : vector<64x64xf32>
    %c1_73 = arith.constant 1 : index
    %76 = memref.load %arg1[%c1_73] : memref<2xf32, #tpu.memory_space<smem>>
    %77 = vector.broadcast %76 : f32 to vector<64x64xf32>
    %78 = arith.mulf %77, %72 : vector<64x64xf32>
    %79 = arith.addf %75, %78 : vector<64x64xf32>
    %cst_74 = arith.constant 0.000000e+00 : f32
    %80 = vector.broadcast %cst_74 : f32 to vector<64x64xf32>
    %81 = arith.maximumf %79, %80 : vector<64x64xf32>
    %cst_75 = arith.constant 0.000000e+00 : f32
    %82 = vector.broadcast %cst_75 : f32 to vector<1x10x10x64xf32>
    %c0_76 = arith.constant 0 : index
    %c0_77 = arith.constant 0 : index
    %c0_78 = arith.constant 0 : index
    %c0_79 = arith.constant 0 : index
    %83 = vector.load %arg12[%c0_76, %c0_77, %c0_78, %c0_79] : memref<1x10x10x64xf32, #tpu.memory_space<vmem>>, vector<1x10x10x64xf32>
    tpu.vector_store %arg12[%c0_76, %c0_77, %c0_78, %c0_79], %82 {strides = array<i32>} : memref<1x10x10x64xf32, #tpu.memory_space<vmem>>, vector<1x10x10x64xf32>,
    %84 = vector.shape_cast %81 : vector<64x64xf32> to vector<1x8x8x64xf32>
    %c0_80 = arith.constant 0 : index
    %c1_81 = arith.constant 1 : index
    %c1_82 = arith.constant 1 : index
    %c0_83 = arith.constant 0 : index
    %85 = vector.load %arg12[%c0_80, %c1_81, %c1_82, %c0_83] : memref<1x10x10x64xf32, #tpu.memory_space<vmem>>, vector<1x8x8x64xf32>
    tpu.vector_store %arg12[%c0_80, %c1_81, %c1_82, %c0_83], %84 {strides = array<i32>} : memref<1x10x10x64xf32, #tpu.memory_space<vmem>>, vector<1x8x8x64xf32>,
    %c0_84 = arith.constant 0 : index
    %c0_85 = arith.constant 0 : index
    %c0_86 = arith.constant 0 : index
    %c0_87 = arith.constant 0 : index
    %86 = vector.load %arg12[%c0_84, %c0_85, %c0_86, %c0_87] : memref<1x10x10x64xf32, #tpu.memory_space<vmem>>, vector<1x8x8x64xf32>
    %87 = vector.shape_cast %86 : vector<1x8x8x64xf32> to vector<64x64xf32>
    %c0_88 = arith.constant 0 : index
    %c0_89 = arith.constant 0 : index
    %c1_90 = arith.constant 1 : index
    %c0_91 = arith.constant 0 : index
    %88 = vector.load %arg12[%c0_88, %c0_89, %c1_90, %c0_91] : memref<1x10x10x64xf32, #tpu.memory_space<vmem>>, vector<1x8x8x64xf32>
    %89 = vector.shape_cast %88 : vector<1x8x8x64xf32> to vector<64x64xf32>
    %c0_92 = arith.constant 0 : index
    %c0_93 = arith.constant 0 : index
    %c2_94 = arith.constant 2 : index
    %c0_95 = arith.constant 0 : index
    %90 = vector.load %arg12[%c0_92, %c0_93, %c2_94, %c0_95] : memref<1x10x10x64xf32, #tpu.memory_space<vmem>>, vector<1x8x8x64xf32>
    %91 = vector.shape_cast %90 : vector<1x8x8x64xf32> to vector<64x64xf32>
    %c0_96 = arith.constant 0 : index
    %c1_97 = arith.constant 1 : index
    %c0_98 = arith.constant 0 : index
    %c0_99 = arith.constant 0 : index
    %92 = vector.load %arg12[%c0_96, %c1_97, %c0_98, %c0_99] : memref<1x10x10x64xf32, #tpu.memory_space<vmem>>, vector<1x8x8x64xf32>
    %93 = vector.shape_cast %92 : vector<1x8x8x64xf32> to vector<64x64xf32>
    %c0_100 = arith.constant 0 : index
    %c1_101 = arith.constant 1 : index
    %c1_102 = arith.constant 1 : index
    %c0_103 = arith.constant 0 : index
    %94 = vector.load %arg12[%c0_100, %c1_101, %c1_102, %c0_103] : memref<1x10x10x64xf32, #tpu.memory_space<vmem>>, vector<1x8x8x64xf32>
    %95 = vector.shape_cast %94 : vector<1x8x8x64xf32> to vector<64x64xf32>
    %c0_104 = arith.constant 0 : index
    %c1_105 = arith.constant 1 : index
    %c2_106 = arith.constant 2 : index
    %c0_107 = arith.constant 0 : index
    %96 = vector.load %arg12[%c0_104, %c1_105, %c2_106, %c0_107] : memref<1x10x10x64xf32, #tpu.memory_space<vmem>>, vector<1x8x8x64xf32>
    %97 = vector.shape_cast %96 : vector<1x8x8x64xf32> to vector<64x64xf32>
    %c0_108 = arith.constant 0 : index
    %c2_109 = arith.constant 2 : index
    %c0_110 = arith.constant 0 : index
    %c0_111 = arith.constant 0 : index
    %98 = vector.load %arg12[%c0_108, %c2_109, %c0_110, %c0_111] : memref<1x10x10x64xf32, #tpu.memory_space<vmem>>, vector<1x8x8x64xf32>
    %99 = vector.shape_cast %98 : vector<1x8x8x64xf32> to vector<64x64xf32>
    %c0_112 = arith.constant 0 : index
    %c2_113 = arith.constant 2 : index
    %c1_114 = arith.constant 1 : index
    %c0_115 = arith.constant 0 : index
    %100 = vector.load %arg12[%c0_112, %c2_113, %c1_114, %c0_115] : memref<1x10x10x64xf32, #tpu.memory_space<vmem>>, vector<1x8x8x64xf32>
    %101 = vector.shape_cast %100 : vector<1x8x8x64xf32> to vector<64x64xf32>
    %c0_116 = arith.constant 0 : index
    %c2_117 = arith.constant 2 : index
    %c2_118 = arith.constant 2 : index
    %c0_119 = arith.constant 0 : index
    %102 = vector.load %arg12[%c0_116, %c2_117, %c2_118, %c0_119] : memref<1x10x10x64xf32, #tpu.memory_space<vmem>>, vector<1x8x8x64xf32>
    %103 = vector.shape_cast %102 : vector<1x8x8x64xf32> to vector<64x64xf32>
    %104 = tpu.concatenate %87, %89, %91, %93, %95, %97, %99, %101, %103 in 1 : vector<64x64xf32>, vector<64x64xf32>, vector<64x64xf32>, vector<64x64xf32>, vector<64x64xf32>, vector<64x64xf32>, vector<64x64xf32>, vector<64x64xf32>, vector<64x64xf32> -> vector<64x576xf32>
    %c0_120 = arith.constant 0 : index
    %c0_121 = arith.constant 0 : index
    %105 = vector.load %arg7[%c0_120, %c0_121] : memref<576x64xf32, #tpu.memory_space<vmem>>, vector<576x64xf32>
    %cst_122 = arith.constant dense<0.000000e+00> : vector<64x64xf32>
    %106 = tpu.matmul %104, %105, %cst_122 {dimension_numbers = #tpu.dot_dimension_numbers<[1], [0], [0], [1], [0, 0, 1, 1], [], []>} : vector<64x576xf32>, vector<576x64xf32>, vector<64x64xf32> -> vector<64x64xf32>
    %c0_123 = arith.constant 0 : index
    %c0_124 = arith.constant 0 : index
    %107 = vector.load %arg8[%c0_123, %c0_124] : memref<1x64xf32, #tpu.memory_space<vmem>>, vector<1x64xf32>
    %108 = vector.broadcast %107 : vector<1x64xf32> to vector<64x64xf32>
    %109 = arith.addf %106, %108 : vector<64x64xf32>
    %cst_125 = arith.constant 0.000000e+00 : f32
    %110 = vector.broadcast %cst_125 : f32 to vector<64x64xf32>
    %111 = arith.maximumf %109, %110 : vector<64x64xf32>
    %112 = vector.shape_cast %111 : vector<64x64xf32> to vector<1x8x8x64xf32>
    %c0_126 = arith.constant 0 : index
    %c1_127 = arith.constant 1 : index
    %c1_128 = arith.constant 1 : index
    %c0_129 = arith.constant 0 : index
    %113 = vector.load %arg12[%c0_126, %c1_127, %c1_128, %c0_129] : memref<1x10x10x64xf32, #tpu.memory_space<vmem>>, vector<1x8x8x64xf32>
    tpu.vector_store %arg12[%c0_126, %c1_127, %c1_128, %c0_129], %112 {strides = array<i32>} : memref<1x10x10x64xf32, #tpu.memory_space<vmem>>, vector<1x8x8x64xf32>,
    %c0_130 = arith.constant 0 : index
    %c0_131 = arith.constant 0 : index
    %c0_132 = arith.constant 0 : index
    %c0_133 = arith.constant 0 : index
    %114 = vector.load %arg12[%c0_130, %c0_131, %c0_132, %c0_133] : memref<1x10x10x64xf32, #tpu.memory_space<vmem>>, vector<1x8x8x64xf32>
    %115 = vector.shape_cast %114 : vector<1x8x8x64xf32> to vector<64x64xf32>
    %c0_134 = arith.constant 0 : index
    %c0_135 = arith.constant 0 : index
    %c1_136 = arith.constant 1 : index
    %c0_137 = arith.constant 0 : index
    %116 = vector.load %arg12[%c0_134, %c0_135, %c1_136, %c0_137] : memref<1x10x10x64xf32, #tpu.memory_space<vmem>>, vector<1x8x8x64xf32>
    %117 = vector.shape_cast %116 : vector<1x8x8x64xf32> to vector<64x64xf32>
    %c0_138 = arith.constant 0 : index
    %c0_139 = arith.constant 0 : index
    %c2_140 = arith.constant 2 : index
    %c0_141 = arith.constant 0 : index
    %118 = vector.load %arg12[%c0_138, %c0_139, %c2_140, %c0_141] : memref<1x10x10x64xf32, #tpu.memory_space<vmem>>, vector<1x8x8x64xf32>
    %119 = vector.shape_cast %118 : vector<1x8x8x64xf32> to vector<64x64xf32>
    %c0_142 = arith.constant 0 : index
    %c1_143 = arith.constant 1 : index
    %c0_144 = arith.constant 0 : index
    %c0_145 = arith.constant 0 : index
    %120 = vector.load %arg12[%c0_142, %c1_143, %c0_144, %c0_145] : memref<1x10x10x64xf32, #tpu.memory_space<vmem>>, vector<1x8x8x64xf32>
    %121 = vector.shape_cast %120 : vector<1x8x8x64xf32> to vector<64x64xf32>
    %c0_146 = arith.constant 0 : index
    %c1_147 = arith.constant 1 : index
    %c1_148 = arith.constant 1 : index
    %c0_149 = arith.constant 0 : index
    %122 = vector.load %arg12[%c0_146, %c1_147, %c1_148, %c0_149] : memref<1x10x10x64xf32, #tpu.memory_space<vmem>>, vector<1x8x8x64xf32>
    %123 = vector.shape_cast %122 : vector<1x8x8x64xf32> to vector<64x64xf32>
    %c0_150 = arith.constant 0 : index
    %c1_151 = arith.constant 1 : index
    %c2_152 = arith.constant 2 : index
    %c0_153 = arith.constant 0 : index
    %124 = vector.load %arg12[%c0_150, %c1_151, %c2_152, %c0_153] : memref<1x10x10x64xf32, #tpu.memory_space<vmem>>, vector<1x8x8x64xf32>
    %125 = vector.shape_cast %124 : vector<1x8x8x64xf32> to vector<64x64xf32>
    %c0_154 = arith.constant 0 : index
    %c2_155 = arith.constant 2 : index
    %c0_156 = arith.constant 0 : index
    %c0_157 = arith.constant 0 : index
    %126 = vector.load %arg12[%c0_154, %c2_155, %c0_156, %c0_157] : memref<1x10x10x64xf32, #tpu.memory_space<vmem>>, vector<1x8x8x64xf32>
    %127 = vector.shape_cast %126 : vector<1x8x8x64xf32> to vector<64x64xf32>
    %c0_158 = arith.constant 0 : index
    %c2_159 = arith.constant 2 : index
    %c1_160 = arith.constant 1 : index
    %c0_161 = arith.constant 0 : index
    %128 = vector.load %arg12[%c0_158, %c2_159, %c1_160, %c0_161] : memref<1x10x10x64xf32, #tpu.memory_space<vmem>>, vector<1x8x8x64xf32>
    %129 = vector.shape_cast %128 : vector<1x8x8x64xf32> to vector<64x64xf32>
    %c0_162 = arith.constant 0 : index
    %c2_163 = arith.constant 2 : index
    %c2_164 = arith.constant 2 : index
    %c0_165 = arith.constant 0 : index
    %130 = vector.load %arg12[%c0_162, %c2_163, %c2_164, %c0_165] : memref<1x10x10x64xf32, #tpu.memory_space<vmem>>, vector<1x8x8x64xf32>
    %131 = vector.shape_cast %130 : vector<1x8x8x64xf32> to vector<64x64xf32>
    %132 = tpu.concatenate %115, %117, %119, %121, %123, %125, %127, %129, %131 in 1 : vector<64x64xf32>, vector<64x64xf32>, vector<64x64xf32>, vector<64x64xf32>, vector<64x64xf32>, vector<64x64xf32>, vector<64x64xf32>, vector<64x64xf32>, vector<64x64xf32> -> vector<64x576xf32>
    %c0_166 = arith.constant 0 : index
    %c0_167 = arith.constant 0 : index
    %133 = vector.load %arg9[%c0_166, %c0_167] : memref<576x64xf32, #tpu.memory_space<vmem>>, vector<576x64xf32>
    %cst_168 = arith.constant dense<0.000000e+00> : vector<64x64xf32>
    %134 = tpu.matmul %132, %133, %cst_168 {dimension_numbers = #tpu.dot_dimension_numbers<[1], [0], [0], [1], [0, 0, 1, 1], [], []>} : vector<64x576xf32>, vector<576x64xf32>, vector<64x64xf32> -> vector<64x64xf32>
    %c0_169 = arith.constant 0 : index
    %c0_170 = arith.constant 0 : index
    %135 = vector.load %arg10[%c0_169, %c0_170] : memref<1x64xf32, #tpu.memory_space<vmem>>, vector<1x64xf32>
    %136 = vector.broadcast %135 : vector<1x64xf32> to vector<64x64xf32>
    %137 = arith.addf %134, %136 : vector<64x64xf32>
    %138 = arith.addf %137, %81 : vector<64x64xf32>
    %cst_171 = arith.constant 0.000000e+00 : f32
    %139 = vector.broadcast %cst_171 : f32 to vector<64x64xf32>
    %140 = arith.maximumf %138, %139 : vector<64x64xf32>
    %141 = vector.shape_cast %140 : vector<64x64xf32> to vector<1x64x64xf32>
    %c0_172 = arith.constant 0 : index
    %c0_173 = arith.constant 0 : index
    %c0_174 = arith.constant 0 : index
    %142 = vector.load %arg11[%c0_172, %c0_173, %c0_174] : memref<1x64x64xf32, #tpu.memory_space<vmem>>, vector<1x64x64xf32>
    tpu.vector_store %arg11[%c0_172, %c0_173, %c0_174], %141 {strides = array<i32>} : memref<1x64x64xf32, #tpu.memory_space<vmem>>, vector<1x64x64xf32>,
    return
  }
  func.func @transform_0(%arg0: i32) -> i32 {
    %c0_i32 = arith.constant 0 : i32
    %c0_i32_0 = arith.constant 0 : i32
    return %c0_i32 : i32
  }
  func.func @transform_1(%arg0: i32) -> (i32, i32, i32, i32) {
    %c0_i32 = arith.constant 0 : i32
    %c0_i32_0 = arith.constant 0 : i32
    %c0_i32_1 = arith.constant 0 : i32
    %c0_i32_2 = arith.constant 0 : i32
    return %arg0, %c0_i32, %c0_i32_0, %c0_i32_1 : i32, i32, i32, i32
  }
  func.func @transform_2(%arg0: i32) -> (i32, i32, i32) {
    %c0_i32 = arith.constant 0 : i32
    %c0_i32_0 = arith.constant 0 : i32
    %c0_i32_1 = arith.constant 0 : i32
    %c0_i32_2 = arith.constant 0 : i32
    return %c0_i32, %c0_i32_0, %c0_i32_1 : i32, i32, i32
  }
  func.func @transform_3(%arg0: i32) -> (i32, i32) {
    %c0_i32 = arith.constant 0 : i32
    %c0_i32_0 = arith.constant 0 : i32
    %c0_i32_1 = arith.constant 0 : i32
    return %c0_i32, %c0_i32_0 : i32, i32
  }
  func.func @transform_4(%arg0: i32) -> (i32, i32, i32) {
    %c0_i32 = arith.constant 0 : i32
    %c0_i32_0 = arith.constant 0 : i32
    %c0_i32_1 = arith.constant 0 : i32
    return %arg0, %c0_i32, %c0_i32_0 : i32, i32, i32
  }
  func.func @transform_5(%arg0: i32) -> (i32, i32) {
    %c0_i32 = arith.constant 0 : i32
    %c0_i32_0 = arith.constant 0 : i32
    %c0_i32_1 = arith.constant 0 : i32
    return %c0_i32, %c0_i32_0 : i32, i32
  }
  func.func @transform_6(%arg0: i32) -> (i32, i32) {
    %c0_i32 = arith.constant 0 : i32
    %c0_i32_0 = arith.constant 0 : i32
    %c0_i32_1 = arith.constant 0 : i32
    return %c0_i32, %c0_i32_0 : i32, i32
  }
  func.func @transform_7(%arg0: i32) -> (i32, i32) {
    %c0_i32 = arith.constant 0 : i32
    %c0_i32_0 = arith.constant 0 : i32
    %c0_i32_1 = arith.constant 0 : i32
    return %c0_i32, %c0_i32_0 : i32, i32
  }
  func.func @transform_8(%arg0: i32) -> (i32, i32) {
    %c0_i32 = arith.constant 0 : i32
    %c0_i32_0 = arith.constant 0 : i32
    %c0_i32_1 = arith.constant 0 : i32
    return %c0_i32, %c0_i32_0 : i32, i32
  }
  func.func @transform_9(%arg0: i32) -> (i32, i32) {
    %c0_i32 = arith.constant 0 : i32
    %c0_i32_0 = arith.constant 0 : i32
    %c0_i32_1 = arith.constant 0 : i32
    return %c0_i32, %c0_i32_0 : i32, i32
  }
  func.func @transform_10(%arg0: i32) -> (i32, i32, i32) {
    %c0_i32 = arith.constant 0 : i32
    %c0_i32_0 = arith.constant 0 : i32
    %c0_i32_1 = arith.constant 0 : i32
    return %arg0, %c0_i32, %c0_i32_0 : i32, i32, i32
  }
}

</mosaic_0001>

<bundles_post_ra>
// kernel: transition_fpn_forward.1
= control target key start
LH: loop header
LB: loop body
LE: loop exit
PB: predicated region body
PF: predicated region fallthrough
CT: control target
= control target key end

     0   :  { %s8390_s0 = inlined_call_operand.vmem [shape: f32[2], index: 0, kind: input, shape index: {}]   ;;  %s8391_s1 = inlined_call_operand.vmem [shape: f32[8,9,9,256], index: 1, kind: input, shape index: {}]   ;;  %s8392_s2 = inlined_call_operand.vmem [shape: f32[9,256,64], index: 2, kind: input, shape index: {}]   ;;  %s8393_s3 = inlined_call_operand.vmem [shape: f32[1,64], index: 3, kind: input, shape index: {}]   ;;  %s8394_s4 = inlined_call_operand.vmem [shape: f32[2,64,72], index: 4, kind: input, shape index: {}]   ;;  %s8395_s5 = inlined_call_operand.vmem [shape: f32[72,64], index: 5, kind: input, shape index: {}]   ;;  %s8396_s6 = inlined_call_operand.vmem [shape: f32[576,64], index: 6, kind: input, shape index: {}]   ;;  %s8397_s7 = inlined_call_operand.vmem [shape: f32[1,64], index: 7, kind: input, shape index: {}]   ;;  %s8398_s8 = inlined_call_operand.vmem [shape: f32[576,64], index: 8, kind: input, shape index: {}]   ;;  %s8399_s9 = inlined_call_operand.vmem [shape: f32[1,64], index: 9, kind: input, shape index: {}]   ;;  %s8400_s10 = inlined_call_operand.hbm [shape: f32[2,64,64], index: 10, kind: output, shape index: {}]  }
   0x1   :  { %8402 = sst [smem:[#allocation9_spill]] %s8390_s0 }
   0x2   :  { %15 = vsyncpa [#allocation5], 0 }
   0x3   :  { %16 = vsyncpa [#allocation4], 0 }
   0x4   :  { %18 = vsyncpa [#allocation4 + $0x1], 0  ;;  %s5990_s13 = smov 0   ;;  %s5992_s14 = smov 0  }
   0x5   :  { %s5994_s15 = smov 0   ;;  %s5996_s16 = smov 0  }
   0x6 LB: > { %s6011_s17 = sadd.s32 4294967295, %s5927_s16   ;;  %s3858_s18 = sadd.s32 4294967294, %s5927_s16   ;;  %s5927_s16 = sphi %s5996_s16, %s8412_s16   ;;  %s5923_s15 = sphi %s5994_s15, %s8411_s15   ;;  %s5919_s14 = sphi %s5992_s14, %s8410_s14   ;;  %s5915_s13 = sphi %s5990_s13, %s8409_s13  }
   0x7   : > { %s6015_s19 = sadd.s32 1, %s5927_s16   ;;  %s251_s20 = sadd.s32 1, %s5923_s15 }
   0x8   : > { %s248_s21 = ssub.s32 %s5927_s16, %s6015_s19  ;;  %p261_p0 = scmp.ne.s32.totalorder %s5923_s15, %s5919_s14 }
   0x9   : > { %p249_p1 = scmp.eq.s32.totalorder %s248_s21, 0  ;;  %p262_p2 = scmp.eq.s32.totalorder %s6011_s17, 1 }
   0xa   : > { %p267_p3 = scmp.ne.s32.totalorder %s5919_s14, %s5915_s13  ;;  %p268_p4 = scmp.eq.s32.totalorder %s3858_s18, 1 }
   0xb   : > { %s6026_s22 = scalar_select %p249_p1, %s5923_s15, %s251_s20  }
   0xc   : > { %p6028_p5 = por %p262_p2, %p261_p0  ;;  %p6032_p6 = por %p268_p4, %p267_p3 }
   0xd   : > { %p3859_p7 = scmp.ge.s32.totalorder %s5927_s16, 1  ;;  %p275_p8 = scmp.lt.s32.totalorder %s5927_s16, 3 }
   0xe   : > { %p5646_p9 = scmp.eq.s32.totalorder %s6011_s17, 0  ;;  %s8406_s0 = sld [smem:[#allocation9_spill]] }
   0xf   : > { %p6039_p10 = pnand %p3859_p7, %p275_p8 }
  0x11   : > { %p5638_p11 = pneg %p6039_p10 }
  0x13   : > { %p5639_p12 = pnand %p5646_p9, %p5638_p11 }
  0x14   : > { %s288_s28 = sshll.u32 %s8406_s0, 4  ;;  %s289_s28 = int_to_ptr.vmem [resolvable:$true] %s288_s28 }
  0x15   : > { %s5846_s29 = scalar_lea.vmem %s289_s28, 16  ;;  %p5848_p0 = pneg %p5639_p12 }
  0x16   : > { %p5847_p13 = scmp.ne.s32.totalorder %s289_s28, %s5846_s29  ;;  %p5854_p3 = scmp.lt.s32.totalorder %s289_s28, %s289_s28 }
  0x17   : > { %p5855_p4 = scmp.lt.s32.totalorder %s5846_s29, %s5846_s29 }
  0x18   : > { %p5849_p1 = pnand %p5848_p0, %p5847_p13 }
  0x19   : > { %p5856_p7 = por %p5855_p4, %p5854_p3 }
  0x1a   : > { %p5850_p2 = pneg %p5849_p1 }
  0x1c   : > { %p5857_p8 = pnand %p5856_p7, %p5850_p2 }
  0x1e   : > { %5860 = shalt.err (!%p5857_p8)
}
  0x1f   : > { %s5929_s30 = smov [#allocation3]   ;;  %340 = sbr.rel (%p6039_p10) target bundleno = 1218 (0x4c2), region = 60 }
  0x20   : > { %5641 = dma.vmem_to_smem (!%p5639_p12), %s289_s28, 16, %s5929_s30, [#allocation5]  }
  0x26   : > { %5906 = dma.done.wait (%p5646_p9), [#allocation5], 16  }
  0x27   : > { %5908 = vsyncadd (%p5646_p9), [#allocation5], 4294967280 }
  0x28   : > { %346 = sfence }
  0x29   : > { %v3901_v0 = vld [vmem:[%s8392_s2 + $0x180] sm:$0xff]  ;;  %v3902_v1 = vld [vmem:[%s8392_s2 + $0x188] sm:$0xff]  ;;  %v3903_v11 = vld [vmem:[%s8392_s2 + $0x190] sm:$0xff]  ;;  %s8401_s18 = sshll.u32 %s6011_s17, 2  ;;  %s8408_s25 = sshll.u32 %s6011_s17, 2  ;;  %vm769_vm0 = vcmask 1046528  }
  0x2a   : > { %v429_v2 = vld [vmem:[%s8392_s2 + $0x80] sm:$0xff]  ;;  %v5167_v3 = vpack.c.bf16 %v3902_v1, %v3901_v0  ;;  %v430_v4 = vld [vmem:[%s8392_s2 + $0x88] sm:$0xff]  ;;  %v3904_v13 = vld [vmem:[%s8392_s2 + $0x198] sm:$0xff]  ;;  %p6122_p9 = scmp.lt.s32.totalorder %s8401_s18, 7  ;;  %p392_p10 = scmp.lt.s32.totalorder %s6011_s17, 1  ;;  %vm2220_vm1 = vcmask 588800  }
  0x2b   : > { %v3885_v5 = vld [vmem:[%s8392_s2 + $0x100] sm:$0xff]  ;;  %v3886_v6 = vld [vmem:[%s8392_s2 + $0x108] sm:$0xff]  ;;  %v5199_v7 = vpack.c.bf16 %v430_v4, %v429_v2  ;;  %v431_v14 = vld [vmem:[%s8392_s2 + $0x90] sm:$0xff]  ;;  %v5171_v16 = vpack.c.bf16 %v3904_v13, %v3903_v11  ;;  %vm2386_vm2 = vcmask 523264   ;;  %vm2388_vm3 = vcmask 517120   ;;  %s2350_s30 = sld [smem:[#allocation3]] }
  0x2c   : > { %v5169_v8 = vpack.c.bf16 %v3886_v6, %v3885_v5  ;;  %v413_v9 = vld [vmem:[%s8392_s2] sm:$0xff]  ;;  %v414_v10 = vld [vmem:[%s8392_s2 + $0x8] sm:$0xff]  ;;  %5168 = vmatprep.subr.bf16.mxu0 %v5167_v3  ;;  %v432_v15 = vld [vmem:[%s8392_s2 + $0x98] sm:$0xff]  ;;  %s8414_s25 = smov (!%p6122_p9, %s8408_s25), 7  ;;  %s382_s21 = sand.u32 1, %s5919_s14  }
  0x2d   : > { %v5201_v12 = vpack.c.bf16 %v414_v10, %v413_v9  ;;  %5200 = vmatprep.subr.bf16.mxu1 %v5199_v7  ;;  %v5203_v17 = vpack.c.bf16 %v432_v15, %v431_v14  ;;  %v3887_v18 = vld [vmem:[%s8392_s2 + $0x110] sm:$0xff]  ;;  %v3888_v19 = vld [vmem:[%s8392_s2 + $0x118] sm:$0xff]  ;;  %v3905_v23 = vld [vmem:[%s8392_s2 + $0x1a0] sm:$0xff]  ;;  %s5631_s12 = smul.u32 288, %s8414_s25  ;;  %s3864_s26 = sshll.u32 %s382_s21, 6 }
  0x2e   : > { %5170 = vmatpush3.bf16.msra.mxu0 %v5169_v8  ;;  %v415_v20 = vld [vmem:[%s8392_s2 + $0x10] sm:$0xff]  ;;  %v5173_v21 = vpack.c.bf16 %v3888_v19, %v3887_v18  ;;  %v416_v22 = vld [vmem:[%s8392_s2 + $0x18] sm:$0xff]  ;;  %v3906_v24 = vld [vmem:[%s8392_s2 + $0x1a8] sm:$0xff]  ;;  %s7152_s0 = scalar_select %p392_p10, %s6011_s17, 1 }
  0x2f   : > { %5202 = vmatpush3.bf16.msra.mxu1 %v5201_v12  ;;  %5172 = vmatprep.subr.bf16.mxu0 %v5171_v16  ;;  %v5205_v25 = vpack.c.bf16 %v416_v22, %v415_v20  ;;  %v5175_v26 = vpack.c.bf16 %v3906_v24, %v3905_v23  ;;  %v433_v27 = vld [vmem:[%s8392_s2 + $0xa0] sm:$0xff]  ;;  %v434_v28 = vld [vmem:[%s8392_s2 + $0xa8] sm:$0xff]  ;;  %v3907_v35 = vld [vmem:[%s8392_s2 + $0x1b0] sm:$0xff]  ;;  %s6223_s25 = scalar_lea.vmem %s8391_s1, %s5631_s12  ;;  %s4303_s27 = sshll.u32 %s6011_s17, 10 }
  0x30   : > { %5204 = vmatprep.subr.bf16.mxu1 %v5203_v17  ;;  %v3889_v29 = vld [vmem:[%s8392_s2 + $0x120] sm:$0xff]  ;;  %v5207_v30 = vpack.c.bf16 %v434_v28, %v433_v27  ;;  %v3890_v31 = vld [vmem:[%s8392_s2 + $0x128] sm:$0xff]  ;;  %v3908_v36 = vld [vmem:[%s8392_s2 + $0x1b8] sm:$0xff]  ;;  %s4302_s29 = sshll.u32 %s7152_s0, 6  ;;  %s4278_s0 = sld [smem:[#allocation3 + $0x1]] }
  0x31   : > { %v417_v32 = vld [vmem:[%s8392_s2 + $0x20] sm:$0xff]  ;;  %v418_v33 = vld [vmem:[%s8392_s2 + $0x28] sm:$0xff]  ;;  %v5177_v34 = vpack.c.bf16 %v3890_v31, %v3889_v29  ;;  %v435_v37 = vld [vmem:[%s8392_s2 + $0xb0] sm:$0xff]  ;;  %v5179_v39 = vpack.c.bf16 %v3908_v36, %v3907_v35  ;;  %s7194_s20 = scalar_lea.vmem %s8394_s4, %s4302_s29  ;;  %s8339_s18 = scalar_lea.hbm %s8400_s10, %s4303_s27 }
  0x32   : > { %5174 = vmatpush3.bf16.msra.mxu0 %v5173_v21  ;;  %v5209_v38 = vpack.c.bf16 %v418_v33, %v417_v32  ;;  %v436_v40 = vld [vmem:[%s8392_s2 + $0xb8] sm:$0xff]  ;;  %v3891_v41 = vld [vmem:[%s8392_s2 + $0x130] sm:$0xff]  ;;  %v3909_v46 = vld [vmem:[%s8392_s2 + $0x1c0] sm:$0xff]  ;;  %s8349_s17 = scalar_lea.sflag [#allocation4], %s382_s21  ;;  %s5932_s11 = smov [#allocation6]  }
  0x33   : > { %5206 = vmatpush3.bf16.msra.mxu1 %v5205_v25  ;;  %5176 = vmatprep.subr.bf16.mxu0 %v5175_v26  ;;  %v3892_v42 = vld [vmem:[%s8392_s2 + $0x138] sm:$0xff]  ;;  %v5211_v43 = vpack.c.bf16 %v436_v40, %v435_v37  ;;  %v419_v44 = vld [vmem:[%s8392_s2 + $0x30] sm:$0xff]  ;;  %v3910_v47 = vld [vmem:[%s8392_s2 + $0x1c8] sm:$0xff] }
  0x34   : > { %5208 = vmatprep.subr.bf16.mxu1 %v5207_v30  ;;  %v420_v45 = vld [vmem:[%s8392_s2 + $0x38] sm:$0xff]  ;;  %v437_v48 = vld [vmem:[%s8392_s2 + $0xc0] sm:$0xff]  ;;  %v438_v49 = vld [vmem:[%s8392_s2 + $0xc8] sm:$0xff]  ;;  %v5181_v50 = vpack.c.bf16 %v3892_v42, %v3891_v41  ;;  %v5183_v52 = vpack.c.bf16 %v3910_v47, %v3909_v46 }
  0x35   : > { %v5213_v51 = vpack.c.bf16 %v420_v45, %v419_v44  ;;  %v3893_v53 = vld [vmem:[%s8392_s2 + $0x140] sm:$0xff]  ;;  %v3894_v54 = vld [vmem:[%s8392_s2 + $0x148] sm:$0xff]  ;;  %v5215_v56 = vpack.c.bf16 %v438_v49, %v437_v48  ;;  %v3911_v58 = vld [vmem:[%s8392_s2 + $0x1d0] sm:$0xff] }
  0x36   : > { %5178 = vmatpush3.bf16.msra.mxu0 %v5177_v34  ;;  %v421_v55 = vld [vmem:[%s8392_s2 + $0x40] sm:$0xff]  ;;  %v422_v57 = vld [vmem:[%s8392_s2 + $0x48] sm:$0xff]  ;;  %v3912_v59 = vld [vmem:[%s8392_s2 + $0x1d8] sm:$0xff]  ;;  %v5185_v62 = vpack.c.bf16 %v3894_v54, %v3893_v53 }
  0x37   : > { %5210 = vmatpush3.bf16.msra.mxu1 %v5209_v38  ;;  %5180 = vmatprep.subr.bf16.mxu0 %v5179_v39  ;;  %v439_v60 = vld [vmem:[%s8392_s2 + $0xd0] sm:$0xff]  ;;  %v440_v61 = vld [vmem:[%s8392_s2 + $0xd8] sm:$0xff]  ;;  %v5217_v63 = vpack.c.bf16 %v422_v57, %v421_v55  ;;  %v5187_v0 = vpack.c.bf16 %v3912_v59, %v3911_v58  ;;  %v3913_v6 = vld [vmem:[%s8392_s2 + $0x1e0] sm:$0xff] }
  0x38   : > { %5212 = vmatprep.subr.bf16.mxu1 %v5211_v43  ;;  %v3895_v1 = vld [vmem:[%s8392_s2 + $0x150] sm:$0xff]  ;;  %v3896_v2 = vld [vmem:[%s8392_s2 + $0x158] sm:$0xff]  ;;  %v5219_v4 = vpack.c.bf16 %v440_v61, %v439_v60  ;;  %v3914_v7 = vld [vmem:[%s8392_s2 + $0x1e8] sm:$0xff] }
  0x39   : > { %v423_v3 = vld [vmem:[%s8392_s2 + $0x50] sm:$0xff]  ;;  %v424_v5 = vld [vmem:[%s8392_s2 + $0x58] sm:$0xff]  ;;  %v441_v8 = vld [vmem:[%s8392_s2 + $0xe0] sm:$0xff]  ;;  %v5189_v10 = vpack.c.bf16 %v3896_v2, %v3895_v1  ;;  %v5191_v14 = vpack.c.bf16 %v3914_v7, %v3913_v6 }
  0x3a   : > { %5182 = vmatpush3.bf16.msra.mxu0 %v5181_v50  ;;  %v442_v9 = vld [vmem:[%s8392_s2 + $0xe8] sm:$0xff]  ;;  %v3897_v11 = vld [vmem:[%s8392_s2 + $0x160] sm:$0xff]  ;;  %v5221_v13 = vpack.c.bf16 %v424_v5, %v423_v3  ;;  %v3915_v20 = vld [vmem:[%s8392_s2 + $0x1f0] sm:$0xff] }
  0x3b   : > { %5214 = vmatpush3.bf16.msra.mxu1 %v5213_v51  ;;  %5184 = vmatprep.subr.bf16.mxu0 %v5183_v52  ;;  %v3898_v12 = vld [vmem:[%s8392_s2 + $0x168] sm:$0xff]  ;;  %v425_v15 = vld [vmem:[%s8392_s2 + $0x60] sm:$0xff]  ;;  %v5223_v18 = vpack.c.bf16 %v442_v9, %v441_v8  ;;  %v3916_v21 = vld [vmem:[%s8392_s2 + $0x1f8] sm:$0xff] }
  0x3c   : > { %5216 = vmatprep.subr.bf16.mxu1 %v5215_v56  ;;  %v3870_v16 = vld [vmem:[%s6223_s25 + $0x128] sm:$0xff]  ;;  %v443_v22 = vld [vmem:[%s8392_s2 + $0xf0] sm:$0xff]  ;;  %v444_v23 = vld [vmem:[%s8392_s2 + $0xf8] sm:$0xff]  ;;  %v5193_v24 = vpack.c.bf16 %v3898_v12, %v3897_v11  ;;  %v5195_v26 = vpack.c.bf16 %v3916_v21, %v3915_v20 }
  0x3d   : > { %v398_v17 = vld [vmem:[%s6223_s25 + $0x8] sm:$0xff]  ;;  %559 = vmatprep.mubr.f32.mxu0 %v3870_v16  ;;  %v3899_v27 = vld [vmem:[%s8392_s2 + $0x170] sm:$0xff]  ;;  %v3900_v28 = vld [vmem:[%s8392_s2 + $0x178] sm:$0xff]  ;;  %v5227_v30 = vpack.c.bf16 %v444_v23, %v443_v22 }
  0x3e   : > { %5186 = vmatpush3.bf16.msra.mxu0 %v5185_v62  ;;  %v426_v19 = vld [vmem:[%s8392_s2 + $0x68] sm:$0xff]  ;;  %664 = vmatprep.mubr.f32.mxu1 %v398_v17  ;;  %v427_v29 = vld [vmem:[%s8392_s2 + $0x70] sm:$0xff]  ;;  %v428_v31 = vld [vmem:[%s8392_s2 + $0x78] sm:$0xff]  ;;  %v5197_v36 = vpack.c.bf16 %v3900_v28, %v3899_v27 }
  0x3f   : > { %5218 = vmatpush3.bf16.msra.mxu1 %v5217_v63  ;;  %5188 = vmatprep.subr.bf16.mxu0 %v5187_v0  ;;  %v5225_v25 = vpack.c.bf16 %v426_v19, %v425_v15  ;;  %v3933_v32 = vld [vmem:[%s8392_s2 + $0x280] sm:$0xff]  ;;  %v3934_v33 = vld [vmem:[%s8392_s2 + $0x288] sm:$0xff]  ;;  %v5229_v37 = vpack.c.bf16 %v428_v31, %v427_v29  ;;  %v3935_v45 = vld [vmem:[%s8392_s2 + $0x290] sm:$0xff] }
  0x40   : > { %5220 = vmatprep.subr.bf16.mxu1 %v5219_v4  ;;  %v3981_v34 = vld [vmem:[%s8392_s2 + $0x380] sm:$0xff]  ;;  %v3982_v35 = vld [vmem:[%s8392_s2 + $0x388] sm:$0xff]  ;;  %v5231_v38 = vpack.c.bf16 %v3934_v33, %v3933_v32  ;;  %v3936_v46 = vld [vmem:[%s8392_s2 + $0x298] sm:$0xff] }
  0x41   : > { %v3917_v39 = vld [vmem:[%s8392_s2 + $0x200] sm:$0xff]  ;;  %v3918_v40 = vld [vmem:[%s8392_s2 + $0x208] sm:$0xff]  ;;  %v5263_v42 = vpack.c.bf16 %v3982_v35, %v3981_v34  ;;  %v3983_v49 = vld [vmem:[%s8392_s2 + $0x390] sm:$0xff]  ;;  %v5235_v57 = vpack.c.bf16 %v3936_v46, %v3935_v45 }
  0x42   : > { %5190 = vmatpush3.bf16.msra.mxu0 %v5189_v10  ;;  %v3869_v41 = vld [vmem:[%s6223_s25 + $0x120] sm:$0xff]  ;;  %v3966_v44 = vld [vmem:[%s8392_s2 + $0x308] sm:$0xff]  ;;  %v5233_v48 = vpack.c.bf16 %v3918_v40, %v3917_v39  ;;  %v3984_v50 = vld [vmem:[%s8392_s2 + $0x398] sm:$0xff] }
  0x43   : > { %5222 = vmatpush3.bf16.msra.mxu1 %v5221_v13  ;;  %5192 = vmatprep.subr.bf16.mxu0 %v5191_v14  ;;  %v3965_v43 = vld [vmem:[%s8392_s2 + $0x300] sm:$0xff]  ;;  %v3872_v51 = vld [vmem:[%s6223_s25 + $0x148] sm:$0xff]  ;;  %v3919_v52 = vld [vmem:[%s8392_s2 + $0x210] sm:$0xff]  ;;  %v5267_v59 = vpack.c.bf16 %v3984_v50, %v3983_v49 }
  0x44   : > { %5224 = vmatprep.subr.bf16.mxu1 %v5223_v18  ;;  %v397_v47 = vld [vmem:[%s6223_s25] sm:$0xff]  ;;  %v3920_v53 = vld [vmem:[%s8392_s2 + $0x218] sm:$0xff]  ;;  %v400_v54 = vld [vmem:[%s6223_s25 + $0x28] sm:$0xff]  ;;  %v5265_v55 = vpack.c.bf16 %v3966_v44, %v3965_v43 }
  0x45   : > { %v3871_v56 = vld [vmem:[%s6223_s25 + $0x140] sm:$0xff]  ;;  %v3967_v58 = vld [vmem:[%s8392_s2 + $0x310] sm:$0xff]  ;;  %v3968_v60 = vld [vmem:[%s8392_s2 + $0x318] sm:$0xff]  ;;  %v5237_v0 = vpack.c.bf16 %v3920_v53, %v3919_v52 }
  0x46   : > { %5194 = vmatpush3.bf16.msra.mxu0 %v5193_v24  ;;  %v3937_v61 = vld [vmem:[%s8392_s2 + $0x2a0] sm:$0xff]  ;;  %v3938_v62 = vld [vmem:[%s8392_s2 + $0x2a8] sm:$0xff]  ;;  %v5269_v7 = vpack.c.bf16 %v3968_v60, %v3967_v58  ;;  %v3939_v13 = vld [vmem:[%s8392_s2 + $0x2b0] sm:$0xff] }
  0x47   : > { %5226 = vmatpush3.bf16.msra.mxu1 %v5225_v25  ;;  %5196 = vmatprep.subr.bf16.mxu0 %v5195_v26  ;;  %v399_v63 = vld [vmem:[%s6223_s25 + $0x20] sm:$0xff]  ;;  %v3986_v2 = vld [vmem:[%s8392_s2 + $0x3a8] sm:$0xff]  ;;  %v5239_v9 = vpack.c.bf16 %v3938_v62, %v3937_v61  ;;  %v3940_v14 = vld [vmem:[%s8392_s2 + $0x2b8] sm:$0xff] }
  0x48   : > { %5228 = vmatprep.subr.bf16.mxu1 %v5227_v30  ;;  %v3985_v1 = vld [vmem:[%s8392_s2 + $0x3a0] sm:$0xff]  ;;  %v3874_v3 = vld [vmem:[%s6223_s25 + $0x168] sm:$0xff]  ;;  %v3987_v17 = vld [vmem:[%s8392_s2 + $0x3b0] sm:$0xff]  ;;  %v5243_v25 = vpack.c.bf16 %v3940_v14, %v3939_v13 }
  0x49   : > { %v3921_v4 = vld [vmem:[%s8392_s2 + $0x220] sm:$0xff]  ;;  %v3922_v5 = vld [vmem:[%s8392_s2 + $0x228] sm:$0xff]  ;;  %v5271_v11 = vpack.c.bf16 %v3986_v2, %v3985_v1  ;;  %v3988_v18 = vld [vmem:[%s8392_s2 + $0x3b8] sm:$0xff] }
  0x4a   : > { %5198 = vmatpush3.bf16.msra.mxu0 %v5197_v36  ;;  %v402_v6 = vld [vmem:[%s6223_s25 + $0x48] sm:$0xff]  ;;  %v3873_v8 = vld [vmem:[%s6223_s25 + $0x160] sm:$0xff]  ;;  %v5241_v16 = vpack.c.bf16 %v3922_v5, %v3921_v4  ;;  %v3923_v20 = vld [vmem:[%s8392_s2 + $0x230] sm:$0xff]  ;;  %v5275_v27 = vpack.c.bf16 %v3988_v18, %v3987_v17 }
  0x4b   : > { %5230 = vmatpush3.bf16.msra.mxu1 %v5229_v37  ;;  %5232 = vmatprep.subr.bf16.mxu0 %v5231_v38  ;;  %v3969_v10 = vld [vmem:[%s8392_s2 + $0x320] sm:$0xff]  ;;  %v3970_v12 = vld [vmem:[%s8392_s2 + $0x328] sm:$0xff]  ;;  %v3924_v21 = vld [vmem:[%s8392_s2 + $0x238] sm:$0xff] }
  0x4c   : > { %5264 = vmatprep.subr.bf16.mxu1 %v5263_v42  ;;  %v401_v15 = vld [vmem:[%s6223_s25 + $0x40] sm:$0xff]  ;;  %v3876_v19 = vld [vmem:[%s6223_s25 + $0x188] sm:$0xff]  ;;  %v5273_v23 = vpack.c.bf16 %v3970_v12, %v3969_v10  ;;  %v3971_v26 = vld [vmem:[%s8392_s2 + $0x330] sm:$0xff]  ;;  %v5245_v32 = vpack.c.bf16 %v3924_v21, %v3923_v20 }
  0x4d   : > { %560 = vmatmul.mubr.f32.vlgmr.msra.gmra.mrb[0].mxu0 %v3869_v41  ;;  %v404_v22 = vld [vmem:[%s6223_s25 + $0x68] sm:$0xff]  ;;  %v3875_v24 = vld [vmem:[%s6223_s25 + $0x180] sm:$0xff]  ;;  %v3972_v28 = vld [vmem:[%s8392_s2 + $0x338] sm:$0xff] }
  0x4e   : > { %665 = vmatmul.mubr.f32.vlgmr.msra.gmra.mrb[0].mxu1 %v397_v47  ;;  %5234 = vmatpush3.bf16.msra.mxu0 %v5233_v48  ;;  %v3941_v29 = vld [vmem:[%s8392_s2 + $0x2c0] sm:$0xff]  ;;  %v3942_v30 = vld [vmem:[%s8392_s2 + $0x2c8] sm:$0xff]  ;;  %v5277_v39 = vpack.c.bf16 %v3972_v28, %v3971_v26  ;;  %v3943_v45 = vld [vmem:[%s8392_s2 + $0x2d0] sm:$0xff] }
  0x4f   : > { %564 = vmatprep.mubr.f32.mxu0 %v3872_v51  ;;  %669 = vmatprep.mubr.f32.mxu1 %v400_v54  ;;  %v403_v31 = vld [vmem:[%s6223_s25 + $0x60] sm:$0xff]  ;;  %v3990_v34 = vld [vmem:[%s8392_s2 + $0x3c8] sm:$0xff]  ;;  %v5247_v41 = vpack.c.bf16 %v3942_v30, %v3941_v29  ;;  %v3944_v46 = vld [vmem:[%s8392_s2 + $0x2d8] sm:$0xff] }
  0x50   : > { %5266 = vmatpush3.bf16.msra.mxu1 %v5265_v55  ;;  %5236 = vmatprep.subr.bf16.mxu0 %v5235_v57  ;;  %v3989_v33 = vld [vmem:[%s8392_s2 + $0x3c0] sm:$0xff]  ;;  %v3878_v35 = vld [vmem:[%s6223_s25 + $0x1a8] sm:$0xff]  ;;  %v3991_v49 = vld [vmem:[%s8392_s2 + $0x3d0] sm:$0xff]  ;;  %v5251_v57 = vpack.c.bf16 %v3944_v46, %v3943_v45 }
  0x51   : > { %565 = vmatmul.mubr.f32.gmra.mrb[2].mxu0 %v3871_v56  ;;  %5268 = vmatprep.subr.bf16.mxu1 %v5267_v59  ;;  %v3925_v36 = vld [vmem:[%s8392_s2 + $0x240] sm:$0xff]  ;;  %v3926_v37 = vld [vmem:[%s8392_s2 + $0x248] sm:$0xff]  ;;  %v5279_v43 = vpack.c.bf16 %v3990_v34, %v3989_v33  ;;  %v3992_v50 = vld [vmem:[%s8392_s2 + $0x3d8] sm:$0xff] }
  0x52   : > { %670 = vmatmul.mubr.f32.gmra.mrb[2].mxu1 %v399_v63  ;;  %5238 = vmatpush3.bf16.msra.mxu0 %v5237_v0  ;;  %v406_v38 = vld [vmem:[%s6223_s25 + $0x88] sm:$0xff]  ;;  %v3877_v40 = vld [vmem:[%s6223_s25 + $0x1a0] sm:$0xff]  ;;  %v5249_v48 = vpack.c.bf16 %v3926_v37, %v3925_v36  ;;  %v3927_v52 = vld [vmem:[%s8392_s2 + $0x250] sm:$0xff]  ;;  %v5283_v60 = vpack.c.bf16 %v3992_v50, %v3991_v49 }
  0x53   : > { %569 = vmatprep.mubr.f32.mxu0 %v3874_v3  ;;  %674 = vmatprep.mubr.f32.mxu1 %v402_v6  ;;  %v3973_v42 = vld [vmem:[%s8392_s2 + $0x340] sm:$0xff]  ;;  %v3974_v44 = vld [vmem:[%s8392_s2 + $0x348] sm:$0xff]  ;;  %v3928_v53 = vld [vmem:[%s8392_s2 + $0x258] sm:$0xff] }
  0x54   : > { %5270 = vmatpush3.bf16.msra.mxu1 %v5269_v7  ;;  %5240 = vmatprep.subr.bf16.mxu0 %v5239_v9  ;;  %v405_v47 = vld [vmem:[%s6223_s25 + $0x80] sm:$0xff]  ;;  %v3880_v51 = vld [vmem:[%s6223_s25 + $0x1c8] sm:$0xff]  ;;  %v5281_v55 = vpack.c.bf16 %v3974_v44, %v3973_v42  ;;  %v3975_v58 = vld [vmem:[%s8392_s2 + $0x350] sm:$0xff]  ;;  %v5253_v0 = vpack.c.bf16 %v3928_v53, %v3927_v52 }
  0x55   : > { %570 = vmatmul.mubr.f32.gmra.mrb[4].mxu0 %v3873_v8  ;;  %5272 = vmatprep.subr.bf16.mxu1 %v5271_v11  ;;  %v408_v54 = vld [vmem:[%s6223_s25 + $0xa8] sm:$0xff]  ;;  %v3879_v56 = vld [vmem:[%s6223_s25 + $0x1c0] sm:$0xff]  ;;  %v3976_v61 = vld [vmem:[%s8392_s2 + $0x358] sm:$0xff] }
  0x56   : > { %675 = vmatmul.mubr.f32.gmra.mrb[4].mxu1 %v401_v15  ;;  %5242 = vmatpush3.bf16.msra.mxu0 %v5241_v16  ;;  %v407_v59 = vld [vmem:[%s6223_s25 + $0xa0] sm:$0xff]  ;;  %v3946_v63 = vld [vmem:[%s8392_s2 + $0x2e8] sm:$0xff]  ;;  %v5285_v8 = vpack.c.bf16 %v3976_v61, %v3975_v58  ;;  %v3947_v12 = vld [vmem:[%s8392_s2 + $0x2f0] sm:$0xff] }
  0x57   : > { %574 = vmatprep.mubr.f32.mxu0 %v3876_v19  ;;  %679 = vmatprep.mubr.f32.mxu1 %v404_v22  ;;  %v3945_v62 = vld [vmem:[%s8392_s2 + $0x2e0] sm:$0xff]  ;;  %v3882_v1 = vld [vmem:[%s6223_s25 + $0x1e8] sm:$0xff]  ;;  %v3948_v13 = vld [vmem:[%s8392_s2 + $0x2f8] sm:$0xff] }
  0x58   : > { %5274 = vmatpush3.bf16.msra.mxu1 %v5273_v23  ;;  %5244 = vmatprep.subr.bf16.mxu0 %v5243_v25  ;;  %v410_v2 = vld [vmem:[%s6223_s25 + $0xc8] sm:$0xff]  ;;  %v3993_v3 = vld [vmem:[%s8392_s2 + $0x3e0] sm:$0xff]  ;;  %v5255_v10 = vpack.c.bf16 %v3946_v63, %v3945_v62  ;;  %v6474_v16 = vld [vmem:[%s8392_s2 + $0x270] sm:$0xff]  ;;  %v5259_v30 = vpack.c.bf16 %v3948_v13, %v3947_v12 }
  0x59   : > { %575 = vmatmul.mubr.f32.gmra.mrb[6].mxu0 %v3875_v24  ;;  %5276 = vmatprep.subr.bf16.mxu1 %v5275_v27  ;;  %v3994_v4 = vld [vmem:[%s8392_s2 + $0x3e8] sm:$0xff]  ;;  %v3929_v5 = vld [vmem:[%s8392_s2 + $0x260] sm:$0xff]  ;;  %v708_v18 = vld [vmem:[%s6223_s25 + $0x18] sm:$0x1] }
  0x5a   : > { %680 = vmatmul.mubr.f32.gmra.mrb[6].mxu1 %v403_v31  ;;  %5246 = vmatpush3.bf16.msra.mxu0 %v5245_v32  ;;  %v3930_v6 = vld [vmem:[%s8392_s2 + $0x268] sm:$0xff]  ;;  %v6458_v7 = vld [vmem:[%s8392_s2 + $0x360] sm:$0xff]  ;;  %v5287_v15 = vpack.c.bf16 %v3994_v4, %v3993_v3  ;;  %v3932_v22 = vld [vmem:[%s8392_s2 + $0x278] sm:$0xff]  ;;  %v774_v32 = vrot.slane %v708_v18, 1 }
  0x5b   : > { %579 = vmatprep.mubr.f32.mxu0 %v3878_v35  ;;  %684 = vmatprep.mubr.f32.mxu1 %v406_v38  ;;  %v3881_v9 = vld [vmem:[%s6223_s25 + $0x1e0] sm:$0xff]  ;;  %v3978_v11 = vld [vmem:[%s8392_s2 + $0x368] sm:$0xff]  ;;  %v5257_v19 = vpack.c.bf16 %v3930_v6, %v3929_v5  ;;  %v3995_v23 = vld [vmem:[%s8392_s2 + $0x3f0] sm:$0xff] }
  0x5c   : > { %5278 = vmatpush3.bf16.msra.mxu1 %v5277_v39  ;;  %5248 = vmatprep.subr.bf16.mxu0 %v5247_v41  ;;  %v409_v14 = vld [vmem:[%s6223_s25 + $0xc0] sm:$0xff]  ;;  %v706_v17 = vld [vmem:[%s6223_s25 + $0x8] sm:$0xfe]  ;;  %v3996_v24 = vld [vmem:[%s8392_s2 + $0x3f8] sm:$0xff]  ;;  %v5289_v28 = vpack.c.bf16 %v3978_v11, %v6458_v7  ;;  %v5261_v41 = vpack.c.bf16 %v3932_v22, %v6474_v16 }
  0x5d   : > { %580 = vmatmul.mubr.f32.gmra.mrb[8].mxu0 %v3877_v40  ;;  %5280 = vmatprep.subr.bf16.mxu1 %v5279_v43  ;;  %v3884_v20 = vld [vmem:[%s6223_s25 + $0x208] sm:$0xff]  ;;  %v705_v25 = vld [vmem:[%s6223_s25] sm:$0xfe]  ;;  %v707_v26 = vld [vmem:[%s6223_s25 + $0x10] sm:$0x1]  ;;  %v773_v31 = vrot.slane %v706_v17, 1  ;;  %v5291_v37 = vpack.c.bf16 %v3996_v24, %v3995_v23 }
  0x5e   : > { %685 = vmatmul.mubr.f32.gmra.mrb[8].mxu1 %v405_v47  ;;  %5250 = vmatpush3.bf16.msra.mxu0 %v5249_v48  ;;  %v412_v21 = vld [vmem:[%s6223_s25 + $0xe8] sm:$0xff]  ;;  %v3883_v29 = vld [vmem:[%s6223_s25 + $0x200] sm:$0xff]  ;;  %v712_v35 = vld [vmem:[%s6223_s25 + $0x38] sm:$0x1]  ;;  %v770_v42 = vrot.slane %v705_v25, 1  ;;  %v771_v43 = vrot.slane %v707_v26, 1 }
  0x5f   : > { %584 = vmatprep.mubr.f32.mxu0 %v3880_v51  ;;  %689 = vmatprep.mubr.f32.mxu1 %v408_v54  ;;  %v6492_v27 = vld [vmem:[%s6223_s25 + $0x28] sm:$0xfe]  ;;  %v4029_v33 = vld [vmem:[%s8392_s2 + $0x480] sm:$0xff]  ;;  %v3979_v38 = vld [vmem:[%s8392_s2 + $0x370] sm:$0xff]  ;;  %v780_v50 = vrot.slane %v712_v35, 1  ;;  %v775_v54 = vsel %vm769_vm0, %v773_v31, %v774_v32 }
  0x60   : > { %5282 = vmatpush3.bf16.msra.mxu1 %v5281_v55  ;;  %5252 = vmatprep.subr.bf16.mxu0 %v5251_v57  ;;  %v4030_v34 = vld [vmem:[%s8392_s2 + $0x488] sm:$0xff]  ;;  %v411_v36 = vld [vmem:[%s6223_s25 + $0xe0] sm:$0xff]  ;;  %v3980_v39 = vld [vmem:[%s8392_s2 + $0x378] sm:$0xff]  ;;  %v779_v47 = vrot.slane %v6492_v27, 1  ;;  %v772_v63 = vsel %vm769_vm0, %v770_v42, %v771_v43 }
  0x61   : > { %585 = vmatmul.mubr.f32.gmra.mrb[10].mxu0 %v3879_v56  ;;  %5284 = vmatprep.subr.bf16.mxu1 %v5283_v60  ;;  %v6513_v40 = vld [vmem:[%s8392_s2 + $0x400] sm:$0xff]  ;;  %v4014_v44 = vld [vmem:[%s8392_s2 + $0x408] sm:$0xff]  ;;  %v5295_v48 = vpack.c.bf16 %v4030_v34, %v4029_v33  ;;  %v711_v52 = vld [vmem:[%s6223_s25 + $0x30] sm:$0x1]  ;;  %v5293_v55 = vpack.c.bf16 %v3980_v39, %v3979_v38 }
  0x62   : > { %690 = vmatmul.mubr.f32.gmra.mrb[10].mxu1 %v407_v59  ;;  %5254 = vmatpush3.bf16.msra.mxu0 %v5253_v0  ;;  %v4093_v45 = vld [vmem:[%s8392_s2 + $0x580] sm:$0xff]  ;;  %v4094_v46 = vld [vmem:[%s8392_s2 + $0x588] sm:$0xff]  ;;  %v4031_v53 = vld [vmem:[%s8392_s2 + $0x490] sm:$0xff]  ;;  %v5297_v0 = vpack.c.bf16 %v4014_v44, %v6513_v40  ;;  %v777_v3 = vrot.slane %v711_v52, 1  ;;  %v781_v7 = vsel %vm769_vm0, %v779_v47, %v780_v50 }
  0x63   : > { %589 = vmatprep.mubr.f32.mxu0 %v3882_v1  ;;  %694 = vmatprep.mubr.f32.mxu1 %v410_v2  ;;  %v3950_v49 = vld [vmem:[%s6223_s25 + $0x248] sm:$0xff]  ;;  %v709_v51 = vld [vmem:[%s6223_s25 + $0x20] sm:$0xfe]  ;;  %v4032_v56 = vld [vmem:[%s8392_s2 + $0x498] sm:$0xff]  ;;  %v5327_v59 = vpack.c.bf16 %v4094_v46, %v4093_v45 }
  0x64   : > { %5286 = vmatpush3.bf16.msra.mxu1 %v5285_v8  ;;  %5256 = vmatprep.subr.bf16.mxu0 %v5255_v10  ;;  %v714_v57 = vld [vmem:[%s6223_s25 + $0x48] sm:$0xfe]  ;;  %v716_v58 = vld [vmem:[%s6223_s25 + $0x58] sm:$0x1]  ;;  %v4077_v60 = vld [vmem:[%s8392_s2 + $0x500] sm:$0xff]  ;;  %v776_v2 = vrot.slane %v709_v51, 1  ;;  %v5299_v8 = vpack.c.bf16 %v4032_v56, %v4031_v53 }
  0x65   : > { %590 = vmatmul.mubr.f32.gmra.mrb[12].mxu0 %v3881_v9  ;;  %5288 = vmatprep.subr.bf16.mxu1 %v5287_v15  ;;  %v4078_v61 = vld [vmem:[%s8392_s2 + $0x508] sm:$0xff]  ;;  %v6547_v62 = vld [vmem:[%s8392_s2 + $0x410] sm:$0xff]  ;;  %v3949_v1 = vld [vmem:[%s6223_s25 + $0x240] sm:$0xff]  ;;  %v785_v10 = vrot.slane %v714_v57, 1  ;;  %v786_v11 = vrot.slane %v716_v58, 1 }
  0x66   : > { %695 = vmatmul.mubr.f32.gmra.mrb[12].mxu1 %v409_v14  ;;  %5258 = vmatpush3.bf16.msra.mxu0 %v5257_v19  ;;  %v4016_v4 = vld [vmem:[%s8392_s2 + $0x418] sm:$0xff]  ;;  %v4095_v5 = vld [vmem:[%s8392_s2 + $0x590] sm:$0xff]  ;;  %v3952_v9 = vld [vmem:[%s6223_s25 + $0x268] sm:$0xff]  ;;  %v5329_v15 = vpack.c.bf16 %v4078_v61, %v4077_v60  ;;  %v778_v23 = vsel %vm769_vm0, %v776_v2, %v777_v3 }
  0x67   : > { %594 = vmatprep.mubr.f32.mxu0 %v3884_v20  ;;  %699 = vmatprep.mubr.f32.mxu1 %v412_v21  ;;  %v4096_v6 = vld [vmem:[%s8392_s2 + $0x598] sm:$0xff]  ;;  %v6566_v12 = vld [vmem:[%s8392_s2 + $0x510] sm:$0xff]  ;;  %v713_v13 = vld [vmem:[%s6223_s25 + $0x40] sm:$0xfe]  ;;  %v5301_v24 = vpack.c.bf16 %v4016_v4, %v6547_v62  ;;  %v787_v31 = vsel %vm769_vm0, %v785_v10, %v786_v11 }
  0x68   : > { %5290 = vmatpush3.bf16.msra.mxu1 %v5289_v28  ;;  %5260 = vmatprep.subr.bf16.mxu0 %v5259_v30  ;;  %v715_v14 = vld [vmem:[%s6223_s25 + $0x50] sm:$0x1]  ;;  %v4033_v16 = vld [vmem:[%s8392_s2 + $0x4a0] sm:$0xff]  ;;  %v4034_v17 = vld [vmem:[%s8392_s2 + $0x4a8] sm:$0xff]  ;;  %v5331_v19 = vpack.c.bf16 %v4096_v6, %v4095_v5  ;;  %v782_v26 = vrot.slane %v713_v13, 1 }
  0x69   : > { %595 = vmatmul.mubr.f32.gmra.mrb[14].mxu0 %v3883_v29  ;;  %5292 = vmatprep.subr.bf16.mxu1 %v5291_v37  ;;  %v718_v18 = vld [vmem:[%s6223_s25 + $0x68] sm:$0xfe]  ;;  %v4080_v20 = vld [vmem:[%s8392_s2 + $0x518] sm:$0xff]  ;;  %v6583_v21 = vld [vmem:[%s8392_s2 + $0x420] sm:$0xff]  ;;  %v783_v27 = vrot.slane %v715_v14, 1  ;;  %v5303_v32 = vpack.c.bf16 %v4034_v17, %v4033_v16 }
  0x6a   : > { %700 = vmatmul.mubr.f32.gmra.mrb[14].mxu1 %v411_v36  ;;  %5262 = vmatpush3.bf16.msra.mxu0 %v5261_v41  ;;  %v720_v22 = vld [vmem:[%s6223_s25 + $0x78] sm:$0x1]  ;;  %v3951_v25 = vld [vmem:[%s6223_s25 + $0x260] sm:$0xff]  ;;  %v4018_v28 = vld [vmem:[%s8392_s2 + $0x428] sm:$0xff]  ;;  %v791_v34 = vrot.slane %v718_v18, 1  ;;  %v5333_v38 = vpack.c.bf16 %v4080_v20, %v6566_v12 }
  0x6b   : > { %931 = vmatprep.mubr.f32.mxu0 %v775_v54  ;;  %5296 = vmatprep.subr.bf16.mxu0 %v5295_v48  ;;  %v4097_v29 = vld [vmem:[%s8392_s2 + $0x5a0] sm:$0xff]  ;;  %v4098_v30 = vld [vmem:[%s8392_s2 + $0x5a8] sm:$0xff]  ;;  %v792_v35 = vrot.slane %v720_v22, 1  ;;  %v719_v37 = vld [vmem:[%s6223_s25 + $0x70] sm:$0x1]  ;;  %v784_v46 = vsel %vm769_vm0, %v782_v26, %v783_v27  ;;  %v5305_v47 = vpack.c.bf16 %v4018_v28, %v6583_v21 }
  0x6c   : > { %5294 = vmatpush3.bf16.msra.mxu1 %v5293_v55  ;;  %1094 = vmatprep.mubr.f32.mxu1 %v3950_v49  ;;  %v3954_v33 = vld [vmem:[%s6223_s25 + $0x288] sm:$0xff]  ;;  %v717_v36 = vld [vmem:[%s6223_s25 + $0x60] sm:$0xfe]  ;;  %v4035_v40 = vld [vmem:[%s8392_s2 + $0x4b0] sm:$0xff]  ;;  %v5335_v42 = vpack.c.bf16 %v4098_v30, %v4097_v29  ;;  %v789_v50 = vrot.slane %v719_v37, 1 }
  0x6d   : > { %932 = vmatmul.mubr.f32.vlgmr.msra.gmra.mrb[16].mxu0 %v772_v63  ;;  %5328 = vmatprep.subr.bf16.mxu1 %v5327_v59  ;;  %v4081_v39 = vld [vmem:[%s8392_s2 + $0x520] sm:$0xff]  ;;  %v4036_v41 = vld [vmem:[%s8392_s2 + $0x4b8] sm:$0xff]  ;;  %v4082_v43 = vld [vmem:[%s8392_s2 + $0x528] sm:$0xff]  ;;  %v788_v49 = vrot.slane %v717_v36, 1  ;;  %v793_v54 = vsel %vm769_vm0, %v791_v34, %v792_v35 }
  0x6e   : > { %5298 = vmatpush3.bf16.msra.mxu0 %v5297_v0  ;;  %936 = vmatprep.mubr.f32.mxu0 %v781_v7  ;;  %v722_v44 = vld [vmem:[%s6223_s25 + $0x88] sm:$0xfe]  ;;  %v724_v45 = vld [vmem:[%s6223_s25 + $0x98] sm:$0x1]  ;;  %v3953_v48 = vld [vmem:[%s6223_s25 + $0x280] sm:$0xff]  ;;  %v5307_v55 = vpack.c.bf16 %v4036_v41, %v4035_v40  ;;  %v5337_v61 = vpack.c.bf16 %v4082_v43, %v4081_v39 }
  0x6f   : > { %1095 = vmatmul.mubr.f32.vlgmr.msra.gmra.mrb[16].mxu1 %v3949_v1  ;;  %5300 = vmatprep.subr.bf16.mxu0 %v5299_v8  ;;  %v4099_v51 = vld [vmem:[%s8392_s2 + $0x5b0] sm:$0xff]  ;;  %v4100_v52 = vld [vmem:[%s8392_s2 + $0x5b8] sm:$0xff]  ;;  %v721_v53 = vld [vmem:[%s6223_s25 + $0x80] sm:$0xfe]  ;;  %v797_v58 = vrot.slane %v722_v44, 1  ;;  %v798_v59 = vrot.slane %v724_v45, 1  ;;  %v790_v6 = vsel %vm769_vm0, %v788_v49, %v789_v50 }
  0x70   : > { %5330 = vmatpush3.bf16.msra.mxu1 %v5329_v15  ;;  %1099 = vmatprep.mubr.f32.mxu1 %v3952_v9  ;;  %v4019_v56 = vld [vmem:[%s8392_s2 + $0x430] sm:$0xff]  ;;  %v4020_v57 = vld [vmem:[%s8392_s2 + $0x438] sm:$0xff]  ;;  %v3956_v62 = vld [vmem:[%s6223_s25 + $0x2a8] sm:$0xff]  ;;  %v5339_v1 = vpack.c.bf16 %v4100_v52, %v4099_v51  ;;  %v794_v4 = vrot.slane %v721_v53, 1 }
  0x71   : > { %937 = vmatmul.mubr.f32.gmra.mrb[18].mxu0 %v778_v23  ;;  %5332 = vmatprep.subr.bf16.mxu1 %v5331_v19  ;;  %v723_v60 = vld [vmem:[%s6223_s25 + $0x90] sm:$0x1]  ;;  %v4037_v63 = vld [vmem:[%s8392_s2 + $0x4c0] sm:$0xff]  ;;  %v4038_v0 = vld [vmem:[%s8392_s2 + $0x4c8] sm:$0xff]  ;;  %v5309_v7 = vpack.c.bf16 %v4020_v57, %v4019_v56  ;;  %v799_v13 = vsel %vm769_vm0, %v797_v58, %v798_v59 }
  0x72   : > { %5302 = vmatpush3.bf16.msra.mxu0 %v5301_v24  ;;  %941 = vmatprep.mubr.f32.mxu0 %v787_v31  ;;  %v4083_v2 = vld [vmem:[%s8392_s2 + $0x530] sm:$0xff]  ;;  %v4084_v3 = vld [vmem:[%s8392_s2 + $0x538] sm:$0xff]  ;;  %v4101_v5 = vld [vmem:[%s8392_s2 + $0x5c0] sm:$0xff]  ;;  %v795_v9 = vrot.slane %v723_v60, 1  ;;  %v5311_v14 = vpack.c.bf16 %v4038_v0, %v4037_v63 }
  0x73   : > { %1100 = vmatmul.mubr.f32.gmra.mrb[18].mxu1 %v3951_v25  ;;  %5304 = vmatprep.subr.bf16.mxu0 %v5303_v32  ;;  %v3955_v8 = vld [vmem:[%s6223_s25 + $0x2a0] sm:$0xff]  ;;  %v4102_v10 = vld [vmem:[%s8392_s2 + $0x5c8] sm:$0xff]  ;;  %v728_v12 = vld [vmem:[%s6223_s25 + $0xb8] sm:$0x1]  ;;  %v5341_v20 = vpack.c.bf16 %v4084_v3, %v4083_v2 }
  0x74   : > { %5334 = vmatpush3.bf16.msra.mxu1 %v5333_v38  ;;  %1104 = vmatprep.mubr.f32.mxu1 %v3954_v33  ;;  %v726_v11 = vld [vmem:[%s6223_s25 + $0xa8] sm:$0xfe]  ;;  %v4021_v15 = vld [vmem:[%s8392_s2 + $0x440] sm:$0xff]  ;;  %v804_v18 = vrot.slane %v728_v12, 1  ;;  %v727_v21 = vld [vmem:[%s6223_s25 + $0xb0] sm:$0x1]  ;;  %v5343_v25 = vpack.c.bf16 %v4102_v10, %v4101_v5  ;;  %v796_v28 = vsel %vm769_vm0, %v794_v4, %v795_v9 }
  0x75   : > { %942 = vmatmul.mubr.f32.gmra.mrb[20].mxu0 %v784_v46  ;;  %5336 = vmatprep.subr.bf16.mxu1 %v5335_v42  ;;  %v4022_v16 = vld [vmem:[%s8392_s2 + $0x448] sm:$0xff]  ;;  %v803_v17 = vrot.slane %v726_v11, 1  ;;  %v725_v19 = vld [vmem:[%s6223_s25 + $0xa0] sm:$0xfe]  ;;  %v4039_v22 = vld [vmem:[%s8392_s2 + $0x4d0] sm:$0xff]  ;;  %v801_v32 = vrot.slane %v727_v21, 1 }
  0x76   : > { %5306 = vmatpush3.bf16.msra.mxu0 %v5305_v47  ;;  %946 = vmatprep.mubr.f32.mxu0 %v793_v54  ;;  %v4040_v23 = vld [vmem:[%s8392_s2 + $0x4d8] sm:$0xff]  ;;  %v3958_v24 = vld [vmem:[%s6223_s25 + $0x2c8] sm:$0xff]  ;;  %v4085_v26 = vld [vmem:[%s8392_s2 + $0x540] sm:$0xff]  ;;  %v5313_v29 = vpack.c.bf16 %v4022_v16, %v4021_v15  ;;  %v800_v31 = vrot.slane %v725_v19, 1 }
  0x77   : > { %1105 = vmatmul.mubr.f32.gmra.mrb[20].mxu1 %v3953_v48  ;;  %5308 = vmatprep.subr.bf16.mxu0 %v5307_v55  ;;  %v4086_v27 = vld [vmem:[%s8392_s2 + $0x548] sm:$0xff]  ;;  %v3957_v30 = vld [vmem:[%s6223_s25 + $0x2c0] sm:$0xff]  ;;  %v4103_v33 = vld [vmem:[%s8392_s2 + $0x5d0] sm:$0xff]  ;;  %v805_v36 = vsel %vm769_vm0, %v803_v17, %v804_v18  ;;  %v5315_v37 = vpack.c.bf16 %v4040_v23, %v4039_v22 }
  0x78   : > { %5338 = vmatpush3.bf16.msra.mxu1 %v5337_v61  ;;  %1109 = vmatprep.mubr.f32.mxu1 %v3956_v62  ;;  %v4104_v34 = vld [vmem:[%s8392_s2 + $0x5d8] sm:$0xff]  ;;  %v730_v35 = vld [vmem:[%s6223_s25 + $0xc8] sm:$0xfe]  ;;  %v4023_v39 = vld [vmem:[%s8392_s2 + $0x450] sm:$0xff]  ;;  %v5345_v43 = vpack.c.bf16 %v4086_v27, %v4085_v26  ;;  %v802_v52 = vsel %vm769_vm0, %v800_v31, %v801_v32 }
  0x79   : > { %947 = vmatmul.mubr.f32.gmra.mrb[22].mxu0 %v790_v6  ;;  %5340 = vmatprep.subr.bf16.mxu1 %v5339_v1  ;;  %v3960_v38 = vld [vmem:[%s6223_s25 + $0x2e8] sm:$0xff]  ;;  %v4024_v40 = vld [vmem:[%s8392_s2 + $0x458] sm:$0xff]  ;;  %v809_v42 = vrot.slane %v730_v35, 1  ;;  %v729_v45 = vld [vmem:[%s6223_s25 + $0xc0] sm:$0xfe]  ;;  %v5347_v48 = vpack.c.bf16 %v4104_v34, %v4103_v33 }
  0x7a   : > { %5310 = vmatpush3.bf16.msra.mxu0 %v5309_v7  ;;  %951 = vmatprep.mubr.f32.mxu0 %v799_v13  ;;  %v732_v41 = vld [vmem:[%s6223_s25 + $0xd8] sm:$0x1]  ;;  %v731_v46 = vld [vmem:[%s6223_s25 + $0xd0] sm:$0x1]  ;;  %v4041_v47 = vld [vmem:[%s8392_s2 + $0x4e0] sm:$0xff]  ;;  %v5317_v53 = vpack.c.bf16 %v4024_v40, %v4023_v39  ;;  %v806_v55 = vrot.slane %v729_v45, 1 }
  0x7b   : > { %1110 = vmatmul.mubr.f32.gmra.mrb[22].mxu1 %v3955_v8  ;;  %5312 = vmatprep.subr.bf16.mxu0 %v5311_v14  ;;  %v810_v44 = vrot.slane %v732_v41, 1  ;;  %v4087_v49 = vld [vmem:[%s8392_s2 + $0x550] sm:$0xff]  ;;  %v4088_v50 = vld [vmem:[%s8392_s2 + $0x558] sm:$0xff]  ;;  %v4042_v51 = vld [vmem:[%s8392_s2 + $0x4e8] sm:$0xff]  ;;  %v807_v56 = vrot.slane %v731_v46, 1 }
  0x7c   : > { %5342 = vmatpush3.bf16.msra.mxu1 %v5341_v20  ;;  %1114 = vmatprep.mubr.f32.mxu1 %v3958_v24  ;;  %v3959_v54 = vld [vmem:[%s6223_s25 + $0x2e0] sm:$0xff]  ;;  %v4026_v58 = vld [vmem:[%s8392_s2 + $0x468] sm:$0xff]  ;;  %v5319_v61 = vpack.c.bf16 %v4042_v51, %v4041_v47  ;;  %v736_v1 = vld [vmem:[%s6223_s25 + $0xf8] sm:$0x1]  ;;  %v5349_v2 = vpack.c.bf16 %v4088_v50, %v4087_v49 }
  0x7d   : > { %952 = vmatmul.mubr.f32.gmra.mrb[24].mxu0 %v796_v28  ;;  %5344 = vmatprep.subr.bf16.mxu1 %v5343_v25  ;;  %v4025_v57 = vld [vmem:[%s8392_s2 + $0x460] sm:$0xff]  ;;  %v811_v60 = vsel %vm769_vm0, %v809_v42, %v810_v44  ;;  %v3962_v62 = vld [vmem:[%s6223_s25 + $0x308] sm:$0xff]  ;;  %v816_v4 = vrot.slane %v736_v1, 1  ;;  %v735_v9 = vld [vmem:[%s6223_s25 + $0xf0] sm:$0x1]  ;;  %v808_v12 = vsel %vm769_vm0, %v806_v55, %v807_v56 }
  0x7e   : > { %5314 = vmatpush3.bf16.msra.mxu0 %v5313_v29  ;;  %956 = vmatprep.mubr.f32.mxu0 %v805_v36  ;;  %v4105_v59 = vld [vmem:[%s8392_s2 + $0x5e0] sm:$0xff]  ;;  %v4106_v63 = vld [vmem:[%s8392_s2 + $0x5e8] sm:$0xff]  ;;  %v4043_v10 = vld [vmem:[%s8392_s2 + $0x4f0] sm:$0xff]  ;;  %v5321_v13 = vpack.c.bf16 %v4026_v58, %v4025_v57  ;;  %v813_v15 = vrot.slane %v735_v9, 1 }
  0x7f   : > { %1115 = vmatmul.mubr.f32.gmra.mrb[24].mxu1 %v3957_v30  ;;  %5316 = vmatprep.subr.bf16.mxu0 %v5315_v37  ;;  %v734_v0 = vld [vmem:[%s6223_s25 + $0xe8] sm:$0xfe]  ;;  %v4089_v5 = vld [vmem:[%s8392_s2 + $0x560] sm:$0xff]  ;;  %v5351_v8 = vpack.c.bf16 %v4106_v63, %v4105_v59  ;;  %v4044_v11 = vld [vmem:[%s8392_s2 + $0x4f8] sm:$0xff] }
  0x80   : > { %5346 = vmatpush3.bf16.msra.mxu1 %v5345_v43  ;;  %1119 = vmatprep.mubr.f32.mxu1 %v3960_v38  ;;  %v815_v3 = vrot.slane %v734_v0, 1  ;;  %v4090_v6 = vld [vmem:[%s8392_s2 + $0x568] sm:$0xff]  ;;  %v733_v7 = vld [vmem:[%s6223_s25 + $0xe0] sm:$0xfe]  ;;  %v4027_v16 = vld [vmem:[%s8392_s2 + $0x470] sm:$0xff]  ;;  %v5323_v18 = vpack.c.bf16 %v4044_v11, %v4043_v10 }
  0x81   : > { %957 = vmatmul.mubr.f32.gmra.mrb[26].mxu0 %v802_v52  ;;  %5348 = vmatprep.subr.bf16.mxu1 %v5347_v48  ;;  %v812_v14 = vrot.slane %v733_v7, 1  ;;  %v4028_v19 = vld [vmem:[%s8392_s2 + $0x478] sm:$0xff]  ;;  %v4107_v20 = vld [vmem:[%s8392_s2 + $0x5f0] sm:$0xff]  ;;  %v3961_v22 = vld [vmem:[%s6223_s25 + $0x300] sm:$0xff]  ;;  %v5353_v23 = vpack.c.bf16 %v4090_v6, %v4089_v5 }
  0x82   : > { %5318 = vmatpush3.bf16.msra.mxu0 %v5317_v53  ;;  %961 = vmatprep.mubr.f32.mxu0 %v811_v60  ;;  %v817_v17 = vsel %vm769_vm0, %v815_v3, %v816_v4  ;;  %v4108_v21 = vld [vmem:[%s8392_s2 + $0x5f8] sm:$0xff]  ;;  %v3964_v24 = vld [vmem:[%s6223_s25 + $0x328] sm:$0xff]  ;;  %v4091_v25 = vld [vmem:[%s8392_s2 + $0x570] sm:$0xff]  ;;  %v5325_v32 = vpack.c.bf16 %v4028_v19, %v4027_v16 }
  0x83   : > { %1120 = vmatmul.mubr.f32.gmra.mrb[26].mxu1 %v3959_v54  ;;  %5320 = vmatprep.subr.bf16.mxu0 %v5319_v61  ;;  %v5355_v26 = vpack.c.bf16 %v4108_v21, %v4107_v20  ;;  %v3998_v27 = vld [vmem:[%s6223_s25 + $0x368] sm:$0xff]  ;;  %v4092_v28 = vld [vmem:[%s8392_s2 + $0x578] sm:$0xff]  ;;  %v4141_v29 = vld [vmem:[%s8392_s2 + $0x680] sm:$0xff]  ;;  %v814_v31 = vsel %vm769_vm0, %v812_v14, %v813_v15 }
  0x84   : > { %5350 = vmatpush3.bf16.msra.mxu1 %v5349_v2  ;;  %1124 = vmatprep.mubr.f32.mxu1 %v3962_v62  ;;  %v4142_v30 = vld [vmem:[%s8392_s2 + $0x688] sm:$0xff]  ;;  %v3963_v33 = vld [vmem:[%s6223_s25 + $0x320] sm:$0xff]  ;;  %v4048_v35 = vld [vmem:[%s6223_s25 + $0x258] sm:$0x1]  ;;  %v5357_v43 = vpack.c.bf16 %v4092_v28, %v4091_v25 }
  0x85   : > { %962 = vmatmul.mubr.f32.gmra.mrb[28].mxu0 %v808_v12  ;;  %5352 = vmatprep.subr.bf16.mxu1 %v5351_v8  ;;  %v4046_v34 = vld [vmem:[%s6223_s25 + $0x248] sm:$0xfe]  ;;  %v4125_v36 = vld [vmem:[%s8392_s2 + $0x600] sm:$0xff]  ;;  %v5359_v37 = vpack.c.bf16 %v4142_v30, %v4141_v29  ;;  %v1374_v39 = vrot.slane %v4048_v35, 1  ;;  %v4047_v45 = vld [vmem:[%s6223_s25 + $0x250] sm:$0x1] }
  0x86   : > { %5322 = vmatpush3.bf16.msra.mxu0 %v5321_v13  ;;  %966 = vmatprep.mubr.f32.mxu0 %v817_v17  ;;  %v1373_v38 = vrot.slane %v4046_v34, 1  ;;  %v4126_v40 = vld [vmem:[%s8392_s2 + $0x608] sm:$0xff]  ;;  %v4045_v41 = vld [vmem:[%s6223_s25 + $0x240] sm:$0xfe]  ;;  %v1371_v49 = vrot.slane %v4047_v45, 1  ;;  %v4143_v55 = vld [vmem:[%s8392_s2 + $0x690] sm:$0xff] }
  0x87   : > { %1125 = vmatmul.mubr.f32.gmra.mrb[28].mxu1 %v3961_v22  ;;  %5324 = vmatprep.subr.bf16.mxu0 %v5323_v18  ;;  %v4189_v42 = vld [vmem:[%s8392_s2 + $0x780] sm:$0xff]  ;;  %v1370_v46 = vrot.slane %v4045_v41, 1  ;;  %v4190_v47 = vld [vmem:[%s8392_s2 + $0x788] sm:$0xff]  ;;  %v5361_v54 = vpack.c.bf16 %v4126_v40, %v4125_v36  ;;  %v4144_v56 = vld [vmem:[%s8392_s2 + $0x698] sm:$0xff] }
  0x88   : > { %5354 = vmatpush3.bf16.msra.mxu1 %v5353_v23  ;;  %1129 = vmatprep.mubr.f32.mxu1 %v3964_v24  ;;  %v3997_v44 = vld [vmem:[%s6223_s25 + $0x360] sm:$0xff]  ;;  %v1375_v48 = vsel %vm769_vm0, %v1373_v38, %v1374_v39  ;;  %v5391_v50 = vpack.c.bf16 %v4190_v47, %v4189_v42  ;;  %v4000_v51 = vld [vmem:[%s6223_s25 + $0x388] sm:$0xff]  ;;  %v5363_v58 = vpack.c.bf16 %v4144_v56, %v4143_v55  ;;  %v4052_v59 = vld [vmem:[%s6223_s25 + $0x278] sm:$0x1] }
  0x89   : > { %967 = vmatmul.mubr.f32.gmra.mrb[30].mxu0 %v814_v31  ;;  %5356 = vmatprep.subr.bf16.mxu1 %v5355_v26  ;;  %v4173_v52 = vld [vmem:[%s8392_s2 + $0x700] sm:$0xff]  ;;  %v4174_v53 = vld [vmem:[%s8392_s2 + $0x708] sm:$0xff]  ;;  %v4127_v61 = vld [vmem:[%s8392_s2 + $0x610] sm:$0xff]  ;;  %v1372_v63 = vsel %vm769_vm0, %v1370_v46, %v1371_v49  ;;  %v1380_v1 = vrot.slane %v4052_v59, 1 }
  0x8a   : > { %5326 = vmatpush3.bf16.msra.mxu0 %v5325_v32  ;;  %1257 = vmatprep.mubr.f32.mxu0 %v3998_v27  ;;  %v4050_v57 = vld [vmem:[%s6223_s25 + $0x268] sm:$0xfe]  ;;  %v4128_v62 = vld [vmem:[%s8392_s2 + $0x618] sm:$0xff]  ;;  %v5393_v0 = vpack.c.bf16 %v4174_v53, %v4173_v52  ;;  %v4049_v2 = vld [vmem:[%s6223_s25 + $0x260] sm:$0xfe] }
  0x8b   : > { %1130 = vmatmul.mubr.f32.gmra.mrb[30].mxu1 %v3963_v33  ;;  %5360 = vmatprep.subr.bf16.mxu0 %v5359_v37  ;;  %v1379_v60 = vrot.slane %v4050_v57, 1  ;;  %v4051_v3 = vld [vmem:[%s6223_s25 + $0x270] sm:$0x1]  ;;  %v3999_v5 = vld [vmem:[%s6223_s25 + $0x380] sm:$0xff]  ;;  %v1376_v6 = vrot.slane %v4049_v2, 1  ;;  %v4192_v8 = vld [vmem:[%s8392_s2 + $0x798] sm:$0xff]  ;;  %v5365_v11 = vpack.c.bf16 %v4128_v62, %v4127_v61 }
  0x8c   : > { %5358 = vmatpush3.bf16.msra.mxu1 %v5357_v43  ;;  %1531 = vmatprep.mubr.f32.mxu1 %v1375_v48  ;;  %v4191_v4 = vld [vmem:[%s8392_s2 + $0x790] sm:$0xff]  ;;  %v1377_v7 = vrot.slane %v4051_v3, 1  ;;  %v4002_v13 = vld [vmem:[%s6223_s25 + $0x3a8] sm:$0xff]  ;;  %v4176_v14 = vld [vmem:[%s8392_s2 + $0x718] sm:$0xff] }
  0x8d   : > { %1258 = vmatmul.mubr.f32.vlgmr.msra.gmra.mrb[32].mxu0 %v3997_v44  ;;  %5392 = vmatprep.subr.bf16.mxu1 %v5391_v50  ;;  %v4175_v9 = vld [vmem:[%s8392_s2 + $0x710] sm:$0xff]  ;;  %v1381_v10 = vsel %vm769_vm0, %v1379_v60, %v1380_v1  ;;  %v5395_v12 = vpack.c.bf16 %v4192_v8, %v4191_v4  ;;  %v4145_v15 = vld [vmem:[%s8392_s2 + $0x6a0] sm:$0xff]  ;;  %v4146_v17 = vld [vmem:[%s8392_s2 + $0x6a8] sm:$0xff] }
  0x8e   : > { %5362 = vmatpush3.bf16.msra.mxu0 %v5361_v54  ;;  %1262 = vmatprep.mubr.f32.mxu0 %v4000_v51  ;;  %v1378_v16 = vsel %vm769_vm0, %v1376_v6, %v1377_v7  ;;  %v4054_v18 = vld [vmem:[%s6223_s25 + $0x288] sm:$0xfe]  ;;  %v4056_v19 = vld [vmem:[%s6223_s25 + $0x298] sm:$0x1]  ;;  %v5397_v20 = vpack.c.bf16 %v4176_v14, %v4175_v9  ;;  %v5367_v21 = vpack.c.bf16 %v4146_v17, %v4145_v15  ;;  %v4129_v24 = vld [vmem:[%s8392_s2 + $0x620] sm:$0xff] }
  0x8f   : > { %1532 = vmatmul.mubr.f32.vlgmr.msra.gmra.mrb[32].mxu1 %v1372_v63  ;;  %5364 = vmatprep.subr.bf16.mxu0 %v5363_v58  ;;  %v1385_v22 = vrot.slane %v4054_v18, 1  ;;  %v1386_v23 = vrot.slane %v4056_v19, 1  ;;  %v4130_v25 = vld [vmem:[%s8392_s2 + $0x628] sm:$0xff]  ;;  %v4053_v26 = vld [vmem:[%s6223_s25 + $0x280] sm:$0xfe]  ;;  %v4147_v39 = vld [vmem:[%s8392_s2 + $0x6b0] sm:$0xff] }
  0x90   : > { %5394 = vmatpush3.bf16.msra.mxu1 %v5393_v0  ;;  %1536 = vmatprep.mubr.f32.mxu1 %v1381_v10  ;;  %v4055_v27 = vld [vmem:[%s6223_s25 + $0x290] sm:$0x1]  ;;  %v1382_v28 = vrot.slane %v4053_v26, 1  ;;  %v4193_v29 = vld [vmem:[%s8392_s2 + $0x7a0] sm:$0xff]  ;;  %v4194_v30 = vld [vmem:[%s8392_s2 + $0x7a8] sm:$0xff]  ;;  %v5369_v33 = vpack.c.bf16 %v4130_v25, %v4129_v24 }
  0x91   : > { %1263 = vmatmul.mubr.f32.gmra.mrb[34].mxu0 %v3999_v5  ;;  %5396 = vmatprep.subr.bf16.mxu1 %v5395_v12  ;;  %v4001_v31 = vld [vmem:[%s6223_s25 + $0x3a0] sm:$0xff]  ;;  %v1387_v32 = vsel %vm769_vm0, %v1385_v22, %v1386_v23  ;;  %v1383_v34 = vrot.slane %v4055_v27, 1  ;;  %v5399_v35 = vpack.c.bf16 %v4194_v30, %v4193_v29  ;;  %v4178_v37 = vld [vmem:[%s8392_s2 + $0x728] sm:$0xff]  ;;  %v4148_v40 = vld [vmem:[%s8392_s2 + $0x6b8] sm:$0xff] }
  0x92   : > { %5366 = vmatpush3.bf16.msra.mxu0 %v5365_v11  ;;  %1267 = vmatprep.mubr.f32.mxu0 %v4002_v13  ;;  %v4177_v36 = vld [vmem:[%s8392_s2 + $0x720] sm:$0xff]  ;;  %v4004_v38 = vld [vmem:[%s6223_s25 + $0x3c8] sm:$0xff]  ;;  %v5371_v43 = vpack.c.bf16 %v4148_v40, %v4147_v39  ;;  %v4060_v45 = vld [vmem:[%s6223_s25 + $0x2b8] sm:$0x1] }
  0x93   : > { %1537 = vmatmul.mubr.f32.gmra.mrb[34].mxu1 %v1378_v16  ;;  %5368 = vmatprep.subr.bf16.mxu0 %v5367_v21  ;;  %v1384_v41 = vsel %vm769_vm0, %v1382_v28, %v1383_v34  ;;  %v5401_v42 = vpack.c.bf16 %v4178_v37, %v4177_v36  ;;  %v4058_v44 = vld [vmem:[%s6223_s25 + $0x2a8] sm:$0xfe]  ;;  %v4131_v46 = vld [vmem:[%s8392_s2 + $0x630] sm:$0xff]  ;;  %v1392_v48 = vrot.slane %v4060_v45, 1  ;;  %v4132_v49 = vld [vmem:[%s8392_s2 + $0x638] sm:$0xff] }
  0x94   : > { %5398 = vmatpush3.bf16.msra.mxu1 %v5397_v20  ;;  %1541 = vmatprep.mubr.f32.mxu1 %v1387_v32  ;;  %v1391_v47 = vrot.slane %v4058_v44, 1  ;;  %v4057_v50 = vld [vmem:[%s6223_s25 + $0x2a0] sm:$0xfe]  ;;  %v4195_v51 = vld [vmem:[%s8392_s2 + $0x7b0] sm:$0xff]  ;;  %v5373_v53 = vpack.c.bf16 %v4132_v49, %v4131_v46  ;;  %v4196_v56 = vld [vmem:[%s8392_s2 + $0x7b8] sm:$0xff] }
  0x95   : > { %1268 = vmatmul.mubr.f32.gmra.mrb[36].mxu0 %v4001_v31  ;;  %5400 = vmatprep.subr.bf16.mxu1 %v5399_v35  ;;  %v4003_v52 = vld [vmem:[%s6223_s25 + $0x3c0] sm:$0xff]  ;;  %v4059_v54 = vld [vmem:[%s6223_s25 + $0x2b0] sm:$0x1]  ;;  %v1388_v55 = vrot.slane %v4057_v50, 1  ;;  %v5403_v59 = vpack.c.bf16 %v4196_v56, %v4195_v51  ;;  %v4006_v60 = vld [vmem:[%s6223_s25 + $0x3e8] sm:$0xff] }
  0x96   : > { %5370 = vmatpush3.bf16.msra.mxu0 %v5369_v33  ;;  %1272 = vmatprep.mubr.f32.mxu0 %v4004_v38  ;;  %v1393_v57 = vsel %vm769_vm0, %v1391_v47, %v1392_v48  ;;  %v1389_v58 = vrot.slane %v4059_v54, 1  ;;  %v4179_v61 = vld [vmem:[%s8392_s2 + $0x730] sm:$0xff]  ;;  %v4180_v62 = vld [vmem:[%s8392_s2 + $0x738] sm:$0xff]  ;;  %v4005_v0 = vld [vmem:[%s6223_s25 + $0x3e0] sm:$0xff] }
  0x97   : > { %1542 = vmatmul.mubr.f32.gmra.mrb[36].mxu1 %v1384_v41  ;;  %5372 = vmatprep.subr.bf16.mxu0 %v5371_v43  ;;  %v5405_v63 = vpack.c.bf16 %v4180_v62, %v4179_v61  ;;  %v4149_v1 = vld [vmem:[%s8392_s2 + $0x6c0] sm:$0xff]  ;;  %v4150_v2 = vld [vmem:[%s8392_s2 + $0x6c8] sm:$0xff]  ;;  %v4064_v6 = vld [vmem:[%s6223_s25 + $0x2d8] sm:$0x1] }
  0x98   : > { %5402 = vmatpush3.bf16.msra.mxu1 %v5401_v42  ;;  %1546 = vmatprep.mubr.f32.mxu1 %v1393_v57  ;;  %v4062_v3 = vld [vmem:[%s6223_s25 + $0x2c8] sm:$0xfe]  ;;  %v1390_v4 = vsel %vm769_vm0, %v1388_v55, %v1389_v58  ;;  %v5375_v5 = vpack.c.bf16 %v4150_v2, %v4149_v1  ;;  %v4133_v8 = vld [vmem:[%s8392_s2 + $0x640] sm:$0xff]  ;;  %v1398_v10 = vrot.slane %v4064_v6, 1  ;;  %v4063_v13 = vld [vmem:[%s6223_s25 + $0x2d0] sm:$0x1] }
  0x99   : > { %1273 = vmatmul.mubr.f32.gmra.mrb[38].mxu0 %v4003_v52  ;;  %5404 = vmatprep.subr.bf16.mxu1 %v5403_v59  ;;  %v1397_v7 = vrot.slane %v4062_v3, 1  ;;  %v4134_v9 = vld [vmem:[%s8392_s2 + $0x648] sm:$0xff]  ;;  %v4061_v12 = vld [vmem:[%s6223_s25 + $0x2c0] sm:$0xfe]  ;;  %v1395_v16 = vrot.slane %v4063_v13, 1  ;;  %v4151_v24 = vld [vmem:[%s8392_s2 + $0x6d0] sm:$0xff] }
  0x9a   : > { %5374 = vmatpush3.bf16.msra.mxu0 %v5373_v53  ;;  %1277 = vmatprep.mubr.f32.mxu0 %v4006_v60  ;;  %v5377_v11 = vpack.c.bf16 %v4134_v9, %v4133_v8  ;;  %v4197_v14 = vld [vmem:[%s8392_s2 + $0x7c0] sm:$0xff]  ;;  %v1394_v15 = vrot.slane %v4061_v12, 1  ;;  %v4198_v17 = vld [vmem:[%s8392_s2 + $0x7c8] sm:$0xff]  ;;  %v4152_v27 = vld [vmem:[%s8392_s2 + $0x6d8] sm:$0xff] }
  0x9b   : > { %1547 = vmatmul.mubr.f32.gmra.mrb[38].mxu1 %v1390_v4  ;;  %5376 = vmatprep.subr.bf16.mxu0 %v5375_v5  ;;  %v4008_v18 = vld [vmem:[%s6223_s25 + $0x408] sm:$0xff]  ;;  %v4181_v19 = vld [vmem:[%s8392_s2 + $0x740] sm:$0xff]  ;;  %v1399_v20 = vsel %vm769_vm0, %v1397_v7, %v1398_v10  ;;  %v5407_v21 = vpack.c.bf16 %v4198_v17, %v4197_v14  ;;  %v4068_v29 = vld [vmem:[%s6223_s25 + $0x2f8] sm:$0x1]  ;;  %v5379_v30 = vpack.c.bf16 %v4152_v27, %v4151_v24 }
  0x9c   : > { %5406 = vmatpush3.bf16.msra.mxu1 %v5405_v63  ;;  %v4182_v22 = vld [vmem:[%s8392_s2 + $0x748] sm:$0xff]  ;;  %v4007_v23 = vld [vmem:[%s6223_s25 + $0x400] sm:$0xff]  ;;  %1551 = vmatprep.mubr.f32.mxu1 %v1399_v20  ;;  %v1396_v25 = vsel %vm769_vm0, %v1394_v15, %v1395_v16  ;;  %v1404_v32 = vrot.slane %v4068_v29, 1  ;;  %v4135_v33 = vld [vmem:[%s8392_s2 + $0x650] sm:$0xff] }
  0x9d   : > { %1278 = vmatmul.mubr.f32.gmra.mrb[40].mxu0 %v4005_v0  ;;  %v5409_v26 = vpack.c.bf16 %v4182_v22, %v4181_v19  ;;  %v4066_v28 = vld [vmem:[%s6223_s25 + $0x2e8] sm:$0xfe]  ;;  %5408 = vmatprep.subr.bf16.mxu1 %v5407_v21  ;;  %v4136_v34 = vld [vmem:[%s8392_s2 + $0x658] sm:$0xff]  ;;  %v4065_v35 = vld [vmem:[%s6223_s25 + $0x2e0] sm:$0xfe] }
  0x9e   : > { %5378 = vmatpush3.bf16.msra.mxu0 %v5377_v11  ;;  %v1403_v31 = vrot.slane %v4066_v28, 1  ;;  %1282 = vmatprep.mubr.f32.mxu0 %v4008_v18  ;;  %v5381_v36 = vpack.c.bf16 %v4136_v34, %v4135_v33  ;;  %v4067_v37 = vld [vmem:[%s6223_s25 + $0x2f0] sm:$0x1]  ;;  %v1400_v38 = vrot.slane %v4065_v35, 1  ;;  %v4200_v40 = vld [vmem:[%s8392_s2 + $0x7d8] sm:$0xff]  ;;  %v4010_v44 = vld [vmem:[%s6223_s25 + $0x428] sm:$0xff] }
  0x9f   : > { %1552 = vmatmul.mubr.f32.gmra.mrb[40].mxu1 %v1396_v25  ;;  %v4199_v39 = vld [vmem:[%s8392_s2 + $0x7d0] sm:$0xff]  ;;  %5380 = vmatprep.subr.bf16.mxu0 %v5379_v30  ;;  %v1401_v42 = vrot.slane %v4067_v37, 1  ;;  %v4184_v46 = vld [vmem:[%s8392_s2 + $0x758] sm:$0xff]  ;;  %v4009_v48 = vld [vmem:[%s6223_s25 + $0x420] sm:$0xff] }
  0xa0   : > { %5410 = vmatpush3.bf16.msra.mxu1 %v5409_v26  ;;  %v1405_v41 = vsel %vm769_vm0, %v1403_v31, %v1404_v32  ;;  %v5411_v43 = vpack.c.bf16 %v4200_v40, %v4199_v39  ;;  %v4183_v45 = vld [vmem:[%s8392_s2 + $0x750] sm:$0xff]  ;;  %v4153_v49 = vld [vmem:[%s8392_s2 + $0x6e0] sm:$0xff]  ;;  %v4154_v50 = vld [vmem:[%s8392_s2 + $0x6e8] sm:$0xff] }
  0xa1   : > { %1283 = vmatmul.mubr.f32.gmra.mrb[42].mxu0 %v4007_v23  ;;  %1556 = vmatprep.mubr.f32.mxu1 %v1405_v41  ;;  %v5413_v47 = vpack.c.bf16 %v4184_v46, %v4183_v45  ;;  %v1402_v51 = vsel %vm769_vm0, %v1400_v38, %v1401_v42  ;;  %v5383_v52 = vpack.c.bf16 %v4154_v50, %v4153_v49  ;;  %v4070_v53 = vld [vmem:[%s6223_s25 + $0x308] sm:$0xfe]  ;;  %v4072_v54 = vld [vmem:[%s6223_s25 + $0x318] sm:$0x1]  ;;  %v4137_v55 = vld [vmem:[%s8392_s2 + $0x660] sm:$0xff] }
  0xa2   : > { %5382 = vmatpush3.bf16.msra.mxu0 %v5381_v36  ;;  %5412 = vmatprep.subr.bf16.mxu1 %v5411_v43  ;;  %v1409_v56 = vrot.slane %v4070_v53, 1  ;;  %v1410_v57 = vrot.slane %v4072_v54, 1  ;;  %v4138_v58 = vld [vmem:[%s8392_s2 + $0x668] sm:$0xff]  ;;  %v4069_v59 = vld [vmem:[%s6223_s25 + $0x300] sm:$0xfe]  ;;  %v4155_v9 = vld [vmem:[%s8392_s2 + $0x6f0] sm:$0xff] }
  0xa3   : > { %1557 = vmatmul.mubr.f32.gmra.mrb[42].mxu1 %v1402_v51  ;;  %1287 = vmatprep.mubr.f32.mxu0 %v4010_v44  ;;  %v4201_v60 = vld [vmem:[%s8392_s2 + $0x7e0] sm:$0xff]  ;;  %v5385_v61 = vpack.c.bf16 %v4138_v58, %v4137_v55  ;;  %v4071_v62 = vld [vmem:[%s6223_s25 + $0x310] sm:$0x1]  ;;  %v1406_v63 = vrot.slane %v4069_v59, 1  ;;  %v4202_v0 = vld [vmem:[%s8392_s2 + $0x7e8] sm:$0xff] }
  0xa4   : > { %5414 = vmatpush3.bf16.msra.mxu1 %v5413_v47  ;;  %5384 = vmatprep.subr.bf16.mxu0 %v5383_v52  ;;  %v4012_v1 = vld [vmem:[%s6223_s25 + $0x448] sm:$0xff]  ;;  %v1411_v2 = vsel %vm769_vm0, %v1409_v56, %v1410_v57  ;;  %v1407_v3 = vrot.slane %v4071_v62, 1  ;;  %v5415_v4 = vpack.c.bf16 %v4202_v0, %v4201_v60  ;;  %v4185_v5 = vld [vmem:[%s8392_s2 + $0x760] sm:$0xff]  ;;  %v4156_v10 = vld [vmem:[%s8392_s2 + $0x6f8] sm:$0xff] }
  0xa5   : > { %1288 = vmatmul.mubr.f32.gmra.mrb[44].mxu0 %v4009_v48  ;;  %v4186_v6 = vld [vmem:[%s8392_s2 + $0x768] sm:$0xff]  ;;  %v4011_v7 = vld [vmem:[%s6223_s25 + $0x440] sm:$0xff]  ;;  %1561 = vmatprep.mubr.f32.mxu1 %v1411_v2  ;;  %v5387_v13 = vpack.c.bf16 %v4156_v10, %v4155_v9  ;;  %v4076_v14 = vld [vmem:[%s6223_s25 + $0x338] sm:$0x1] }
  0xa6   : > { %5386 = vmatpush3.bf16.msra.mxu0 %v5385_v61  ;;  %v5417_v8 = vpack.c.bf16 %v4186_v6, %v4185_v5  ;;  %v4074_v11 = vld [vmem:[%s6223_s25 + $0x328] sm:$0xfe]  ;;  %v1408_v12 = vsel %vm769_vm0, %v1406_v63, %v1407_v3  ;;  %5416 = vmatprep.subr.bf16.mxu1 %v5415_v4  ;;  %v4139_v16 = vld [vmem:[%s8392_s2 + $0x670] sm:$0xff]  ;;  %v4140_v17 = vld [vmem:[%s8392_s2 + $0x678] sm:$0xff]  ;;  %v1416_v18 = vrot.slane %v4076_v14, 1 }
  0xa7   : > { %1292 = vmatprep.mubr.f32.mxu0 %v4012_v1  ;;  %v1415_v15 = vrot.slane %v4074_v11, 1  ;;  %1562 = vmatmul.mubr.f32.gmra.mrb[44].mxu1 %v1408_v12  ;;  %v5389_v19 = vpack.c.bf16 %v4140_v17, %v4139_v16  ;;  %v4073_v20 = vld [vmem:[%s6223_s25 + $0x320] sm:$0xfe]  ;;  %v4075_v21 = vld [vmem:[%s6223_s25 + $0x330] sm:$0x1]  ;;  %v4204_v25 = vld [vmem:[%s8392_s2 + $0x7f8] sm:$0xff] }
  0xa8   : > { %v4203_v22 = vld [vmem:[%s8392_s2 + $0x7f0] sm:$0xff]  ;;  %5418 = vmatpush3.bf16.msra.mxu1 %v5417_v8  ;;  %v1412_v23 = vrot.slane %v4073_v20, 1  ;;  %v1413_v24 = vrot.slane %v4075_v21, 1  ;;  %v4110_v26 = vld [vmem:[%s6223_s25 + $0x28] sm:$0xff]  ;;  %5388 = vmatprep.subr.bf16.mxu0 %v5387_v13  ;;  %v4188_v30 = vld [vmem:[%s8392_s2 + $0x778] sm:$0xff] }
  0xa9   : > { %1293 = vmatmul.mubr.f32.gmra.mrb[46].mxu0 %v4011_v7  ;;  %v4187_v27 = vld [vmem:[%s8392_s2 + $0x770] sm:$0xff]  ;;  %v1417_v28 = vsel %vm769_vm0, %v1415_v15, %v1416_v18  ;;  %v5419_v29 = vpack.c.bf16 %v4204_v25, %v4203_v22  ;;  %v4109_v31 = vld [vmem:[%s6223_s25 + $0x20] sm:$0xff]  ;;  %v4254_v35 = vld [vmem:[%s8392_s2 + $0x888] sm:$0xff] }
  0xaa   : > { %1694 = vmatprep.mubr.f32.mxu0 %v4110_v26  ;;  %v4253_v32 = vld [vmem:[%s8392_s2 + $0x880] sm:$0xff]  ;;  %1566 = vmatprep.mubr.f32.mxu1 %v1417_v28  ;;  %v1414_v33 = vsel %vm769_vm0, %v1412_v23, %v1413_v24  ;;  %v5421_v34 = vpack.c.bf16 %v4188_v30, %v4187_v27  ;;  %v4158_v36 = vld [vmem:[%s6223_s25 + $0x148] sm:$0xff]  ;;  %v4255_v43 = vld [vmem:[%s8392_s2 + $0x890] sm:$0xff] }
  0xab   : > { %5390 = vmatpush3.bf16.msra.mxu0 %v5389_v19  ;;  %v4237_v37 = vld [vmem:[%s8392_s2 + $0x800] sm:$0xff]  ;;  %1567 = vmatmul.mubr.f32.gmra.mrb[46].mxu1 %v1414_v33  ;;  %v5423_v38 = vpack.c.bf16 %v4254_v35, %v4253_v32  ;;  %v4238_v39 = vld [vmem:[%s8392_s2 + $0x808] sm:$0xff]  ;;  %v4256_v44 = vld [vmem:[%s8392_s2 + $0x898] sm:$0xff] }
  0xac   : > { %5420 = vmatprep.subr.bf16.mxu1 %v5419_v29  ;;  %v4112_v40 = vld [vmem:[%s6223_s25 + $0x48] sm:$0xff]  ;;  %1857 = vmatprep.mubr.f32.mxu1 %v4158_v36  ;;  %v5425_v41 = vpack.c.bf16 %v4238_v39, %v4237_v37  ;;  %v4157_v42 = vld [vmem:[%s6223_s25 + $0x140] sm:$0xff]  ;;  %v5427_v45 = vpack.c.bf16 %v4256_v44, %v4255_v43  ;;  %v4239_v47 = vld [vmem:[%s8392_s2 + $0x810] sm:$0xff] }
  0xad   : > { %5422 = vmatpush3.bf16.msra.mxu1 %v5421_v34  ;;  %5424 = vmatprep.subr.bf16.mxu0 %v5423_v38  ;;  %v4160_v46 = vld [vmem:[%s6223_s25 + $0x168] sm:$0xff]  ;;  %v4240_v48 = vld [vmem:[%s8392_s2 + $0x818] sm:$0xff]  ;;  %v4111_v49 = vld [vmem:[%s6223_s25 + $0x40] sm:$0xff] }
  0xae   : > { %1695 = vmatmul.mubr.f32.vlgmr.msra.gmra.mrb[48].mxu0 %v4109_v31  ;;  %v5429_v50 = vpack.c.bf16 %v4240_v48, %v4239_v47  ;;  %v4114_v51 = vld [vmem:[%s6223_s25 + $0x68] sm:$0xff]  ;;  %v4257_v52 = vld [vmem:[%s8392_s2 + $0x8a0] sm:$0xff]  ;;  %v4259_v0 = vld [vmem:[%s8392_s2 + $0x8b0] sm:$0xff] }
  0xaf   : > { %5426 = vmatpush3.bf16.msra.mxu0 %v5425_v41  ;;  %1699 = vmatprep.mubr.f32.mxu0 %v4112_v40  ;;  %v4258_v53 = vld [vmem:[%s8392_s2 + $0x8a8] sm:$0xff]  ;;  %v2211_v54 = vld [vmem:[%s8395_s5] sm:$0xff]  ;;  %v4260_v1 = vld [vmem:[%s8392_s2 + $0x8b8] sm:$0xff] }
  0xb0   : > { %1858 = vmatmul.mubr.f32.vlgmr.msra.gmra.mrb[48].mxu1 %v4157_v42  ;;  %5428 = vmatprep.subr.bf16.mxu0 %v5427_v45  ;;  %v4159_v55 = vld [vmem:[%s6223_s25 + $0x160] sm:$0xff]  ;;  %v5431_v56 = vpack.c.bf16 %v4258_v53, %v4257_v52  ;;  %v2212_v57 = vld [vmem:[%s8395_s5 + $0x8] sm:$0xff]  ;;  %v5435_v3 = vpack.c.bf16 %v4260_v1, %v4259_v0  ;;  %v4243_v4 = vld [vmem:[%s8392_s2 + $0x830] sm:$0xff] }
  0xb1   : > { %1862 = vmatprep.mubr.f32.mxu1 %v4160_v46  ;;  %v4241_v58 = vld [vmem:[%s8392_s2 + $0x820] sm:$0xff]  ;;  %v5455_v59 = vpack.c.bf16 %v2212_v57, %v2211_v54  ;;  %v4162_v60 = vld [vmem:[%s6223_s25 + $0x188] sm:$0xff]  ;;  %v4244_v5 = vld [vmem:[%s8392_s2 + $0x838] sm:$0xff] }
  0xb2   : > { %1700 = vmatmul.mubr.f32.gmra.mrb[50].mxu0 %v4111_v49  ;;  %v4242_v61 = vld [vmem:[%s8392_s2 + $0x828] sm:$0xff]  ;;  %v4113_v62 = vld [vmem:[%s6223_s25 + $0x60] sm:$0xff]  ;;  %v2213_v7 = vld [vmem:[%s8395_s5 + $0x10] sm:$0xff]  ;;  %v5437_v12 = vpack.c.bf16 %v4244_v5, %v4243_v4 }
  0xb3   : > { %5430 = vmatpush3.bf16.msra.mxu0 %v5429_v50  ;;  %1704 = vmatprep.mubr.f32.mxu0 %v4114_v51  ;;  %v5433_v63 = vpack.c.bf16 %v4242_v61, %v4241_v58  ;;  %v4116_v2 = vld [vmem:[%s6223_s25 + $0x88] sm:$0xff]  ;;  %v4161_v6 = vld [vmem:[%s6223_s25 + $0x180] sm:$0xff]  ;;  %v2214_v9 = vld [vmem:[%s8395_s5 + $0x18] sm:$0xff] }
  0xb4   : > { %1863 = vmatmul.mubr.f32.gmra.mrb[50].mxu1 %v4159_v55  ;;  %5432 = vmatprep.subr.bf16.mxu0 %v5431_v56  ;;  %v4164_v8 = vld [vmem:[%s6223_s25 + $0x1a8] sm:$0xff]  ;;  %v4261_v10 = vld [vmem:[%s8392_s2 + $0x8c0] sm:$0xff]  ;;  %v5459_v13 = vpack.c.bf16 %v2214_v9, %v2213_v7  ;;  %v4263_v20 = vld [vmem:[%s8392_s2 + $0x8d0] sm:$0xff] }
  0xb5   : > { %5456 = vmatprep.subr.bf16.mxu1 %v5455_v59  ;;  %1867 = vmatprep.mubr.f32.mxu1 %v4162_v60  ;;  %v4115_v11 = vld [vmem:[%s6223_s25 + $0x80] sm:$0xff]  ;;  %v4262_v14 = vld [vmem:[%s8392_s2 + $0x8c8] sm:$0xff]  ;;  %v4264_v21 = vld [vmem:[%s8392_s2 + $0x8d8] sm:$0xff] }
  0xb6   : > { %1705 = vmatmul.mubr.f32.gmra.mrb[52].mxu0 %v4113_v62  ;;  %5458 = vmatpush3.bf16.msra.mxu1 %v5455_v59  ;;  %v4118_v15 = vld [vmem:[%s6223_s25 + $0xa8] sm:$0xff]  ;;  %v5439_v16 = vpack.c.bf16 %v4262_v14, %v4261_v10  ;;  %v4245_v17 = vld [vmem:[%s8392_s2 + $0x840] sm:$0xff]  ;;  %v5443_v28 = vpack.c.bf16 %v4264_v21, %v4263_v20  ;;  %v4247_v29 = vld [vmem:[%s8392_s2 + $0x850] sm:$0xff] }
  0xb7   : > { %5434 = vmatpush3.bf16.msra.mxu0 %v5433_v63  ;;  %1709 = vmatprep.mubr.f32.mxu0 %v4116_v2  ;;  %v4246_v18 = vld [vmem:[%s8392_s2 + $0x848] sm:$0xff]  ;;  %v4163_v19 = vld [vmem:[%s6223_s25 + $0x1a0] sm:$0xff]  ;;  %v4248_v30 = vld [vmem:[%s8392_s2 + $0x858] sm:$0xff] }
  0xb8   : > { %1868 = vmatmul.mubr.f32.gmra.mrb[52].mxu1 %v4161_v6  ;;  %5436 = vmatprep.subr.bf16.mxu0 %v5435_v3  ;;  %v4166_v22 = vld [vmem:[%s6223_s25 + $0x1c8] sm:$0xff]  ;;  %v4117_v23 = vld [vmem:[%s6223_s25 + $0xa0] sm:$0xff]  ;;  %v5441_v24 = vpack.c.bf16 %v4246_v18, %v4245_v17  ;;  %v5445_v37 = vpack.c.bf16 %v4248_v30, %v4247_v29  ;;  %v2217_v43 = vld [vmem:[%s8395_s5 + $0x30] sm:$0xff] }
  0xb9   : > { %1872 = vmatprep.mubr.f32.mxu1 %v4164_v8  ;;  %5460 = vmatprep.subr.bf16.mxu1 %v5459_v13  ;;  %v2215_v25 = vld [vmem:[%s8395_s5 + $0x20] sm:$0xff]  ;;  %v2216_v26 = vld [vmem:[%s8395_s5 + $0x28] sm:$0xff]  ;;  %v2218_v44 = vld [vmem:[%s8395_s5 + $0x38] sm:$0xff] }
  0xba   : > { %1710 = vmatmul.mubr.f32.gmra.mrb[54].mxu0 %v4115_v11  ;;  %5462 = vmatpush3.bf16.msra.mxu1 %v5459_v13  ;;  %v4120_v27 = vld [vmem:[%s6223_s25 + $0xc8] sm:$0xff]  ;;  %v5463_v31 = vpack.c.bf16 %v2216_v26, %v2215_v25  ;;  %v4165_v32 = vld [vmem:[%s6223_s25 + $0x1c0] sm:$0xff]  ;;  %v4267_v46 = vld [vmem:[%s8392_s2 + $0x8f0] sm:$0xff]  ;;  %v5467_v48 = vpack.c.bf16 %v2218_v44, %v2217_v43 }
  0xbb   : > { %5438 = vmatpush3.bf16.msra.mxu0 %v5437_v12  ;;  %1714 = vmatprep.mubr.f32.mxu0 %v4118_v15  ;;  %v4265_v33 = vld [vmem:[%s8392_s2 + $0x8e0] sm:$0xff]  ;;  %v4266_v34 = vld [vmem:[%s8392_s2 + $0x8e8] sm:$0xff]  ;;  %v4268_v47 = vld [vmem:[%s8392_s2 + $0x8f8] sm:$0xff] }
  0xbc   : > { %1873 = vmatmul.mubr.f32.gmra.mrb[54].mxu1 %v4163_v19  ;;  %5440 = vmatprep.subr.bf16.mxu0 %v5439_v16  ;;  %v4119_v35 = vld [vmem:[%s6223_s25 + $0xc0] sm:$0xff]  ;;  %v4168_v36 = vld [vmem:[%s6223_s25 + $0x1e8] sm:$0xff]  ;;  %v5447_v41 = vpack.c.bf16 %v4266_v34, %v4265_v33  ;;  %v4208_v51 = vld [vmem:[%s6223_s25 + $0x38] sm:$0x1]  ;;  %v5451_v56 = vpack.c.bf16 %v4268_v47, %v4267_v46 }
  0xbd   : > { %1877 = vmatprep.mubr.f32.mxu1 %v4166_v22  ;;  %5464 = vmatprep.subr.bf16.mxu1 %v5463_v31  ;;  %v4167_v38 = vld [vmem:[%s6223_s25 + $0x1e0] sm:$0xff]  ;;  %v4122_v39 = vld [vmem:[%s6223_s25 + $0xe8] sm:$0xff]  ;;  %v4251_v54 = vld [vmem:[%s8392_s2 + $0x870] sm:$0xff]  ;;  %v1974_v58 = vrot.slane %v4208_v51, 1 }
  0xbe   : > { %1715 = vmatmul.mubr.f32.gmra.mrb[56].mxu0 %v4117_v23  ;;  %v4249_v40 = vld [vmem:[%s8392_s2 + $0x860] sm:$0xff]  ;;  %v4250_v42 = vld [vmem:[%s8392_s2 + $0x868] sm:$0xff]  ;;  %5466 = vmatpush3.bf16.msra.mxu1 %v5463_v31  ;;  %v4252_v55 = vld [vmem:[%s8392_s2 + $0x878] sm:$0xff] }
  0xbf   : > { %5442 = vmatpush3.bf16.msra.mxu0 %v5441_v24  ;;  %1719 = vmatprep.mubr.f32.mxu0 %v4120_v27  ;;  %v4121_v45 = vld [vmem:[%s6223_s25 + $0xe0] sm:$0xff]  ;;  %v4170_v49 = vld [vmem:[%s6223_s25 + $0x208] sm:$0xff]  ;;  %v5449_v52 = vpack.c.bf16 %v4250_v42, %v4249_v40  ;;  %v4207_v60 = vld [vmem:[%s6223_s25 + $0x30] sm:$0x1]  ;;  %v5453_v3 = vpack.c.bf16 %v4252_v55, %v4251_v54 }
  0xc0   : > { %1878 = vmatmul.mubr.f32.gmra.mrb[56].mxu1 %v4165_v32  ;;  %5444 = vmatprep.subr.bf16.mxu0 %v5443_v28  ;;  %v4206_v50 = vld [vmem:[%s6223_s25 + $0x28] sm:$0xfe]  ;;  %v4205_v59 = vld [vmem:[%s6223_s25 + $0x20] sm:$0xfe]  ;;  %v4212_v63 = vld [vmem:[%s6223_s25 + $0x58] sm:$0x1] }
  0xc1   : > { %1882 = vmatprep.mubr.f32.mxu1 %v4168_v36  ;;  %v4124_v53 = vld [vmem:[%s6223_s25 + $0x108] sm:$0xff]  ;;  %v1973_v57 = vrot.slane %v4206_v50, 1  ;;  %v4169_v61 = vld [vmem:[%s6223_s25 + $0x200] sm:$0xff]  ;;  %5468 = vmatprep.subr.bf16.mxu1 %v5467_v48  ;;  %v1970_v4 = vrot.slane %v4205_v59, 1  ;;  %v1971_v5 = vrot.slane %v4207_v60, 1  ;;  %v1980_v8 = vrot.slane %v4212_v63, 1 }
  0xc2   : > { %1720 = vmatmul.mubr.f32.gmra.mrb[58].mxu0 %v4119_v35  ;;  %v4210_v62 = vld [vmem:[%s6223_s25 + $0x48] sm:$0xfe]  ;;  %5470 = vmatpush3.bf16.msra.mxu1 %v5467_v48  ;;  %v2219_v1 = vld [vmem:[%s8395_s5 + $0x40] sm:$0xff]  ;;  %v4211_v10 = vld [vmem:[%s6223_s25 + $0x50] sm:$0x1] }
  0xc3   : > { %5446 = vmatpush3.bf16.msra.mxu0 %v5445_v37  ;;  %1724 = vmatprep.mubr.f32.mxu0 %v4122_v39  ;;  %v4172_v0 = vld [vmem:[%s6223_s25 + $0x228] sm:$0xff]  ;;  %v4123_v2 = vld [vmem:[%s6223_s25 + $0x100] sm:$0xff]  ;;  %v1975_v6 = vsel %vm769_vm0, %v1973_v57, %v1974_v58  ;;  %v1979_v7 = vrot.slane %v4210_v62, 1  ;;  %v4216_v13 = vld [vmem:[%s6223_s25 + $0x78] sm:$0x1]  ;;  %v1972_v15 = vsel %vm769_vm0, %v1970_v4, %v1971_v5  ;;  %v1977_v17 = vrot.slane %v4211_v10, 1 }
  0xc4   : > { %1883 = vmatmul.mubr.f32.gmra.mrb[58].mxu1 %v4167_v38  ;;  %5448 = vmatprep.subr.bf16.mxu0 %v5447_v41  ;;  %v4209_v9 = vld [vmem:[%s6223_s25 + $0x40] sm:$0xfe]  ;;  %v4214_v12 = vld [vmem:[%s6223_s25 + $0x68] sm:$0xfe]  ;;  %v1986_v20 = vrot.slane %v4216_v13, 1  ;;  %v2205_v26 = vld [vmem:[%s7194_s20 + $0x10] sm:$0xff] }
  0xc5   : > { %1887 = vmatprep.mubr.f32.mxu1 %v4170_v49  ;;  %v4171_v11 = vld [vmem:[%s6223_s25 + $0x220] sm:$0xff]  ;;  %5097 = vmatprep.subr.mxu1 %v2219_v1  ;;  %v1976_v16 = vrot.slane %v4209_v9, 1  ;;  %v1981_v18 = vsel %vm769_vm0, %v1979_v7, %v1980_v8  ;;  %v1985_v19 = vrot.slane %v4214_v12, 1  ;;  %v4215_v22 = vld [vmem:[%s6223_s25 + $0x70] sm:$0x1]  ;;  %v2204_v23 = vld [vmem:[%s7194_s20 + $0x8] sm:$0xff] }
  0xc6   : > { %1725 = vmatmul.mubr.f32.gmra.mrb[60].mxu0 %v4121_v45  ;;  %5098 = vmatpush3.msra.mxu1 %v2219_v1  ;;  %v2203_v14 = vld [vmem:[%s7194_s20] sm:$0xff]  ;;  %v4218_v24 = vld [vmem:[%s6223_s25 + $0x88] sm:$0xfe]  ;;  %v4220_v25 = vld [vmem:[%s6223_s25 + $0x98] sm:$0x1]  ;;  %v1983_v29 = vrot.slane %v4215_v22, 1 }
  0xc7   : > { %5450 = vmatpush3.bf16.msra.mxu0 %v5449_v52  ;;  %1729 = vmatprep.mubr.f32.mxu0 %v4124_v53  ;;  %v4213_v21 = vld [vmem:[%s6223_s25 + $0x60] sm:$0xfe]  ;;  %v1978_v27 = vsel %vm769_vm0, %v1976_v16, %v1977_v17  ;;  %v1987_v30 = vsel %vm769_vm0, %v1985_v19, %v1986_v20  ;;  %v1991_v31 = vrot.slane %v4218_v24, 1  ;;  %v1992_v32 = vrot.slane %v4220_v25, 1  ;;  %v4219_v34 = vld [vmem:[%s6223_s25 + $0x90] sm:$0x1] }
  0xc8   : > { %1888 = vmatmul.mubr.f32.gmra.mrb[60].mxu1 %v4169_v61  ;;  %5452 = vmatprep.subr.bf16.mxu0 %v5451_v56  ;;  %v1982_v28 = vrot.slane %v4213_v21, 1  ;;  %v4217_v33 = vld [vmem:[%s6223_s25 + $0x80] sm:$0xfe]  ;;  %v4222_v35 = vld [vmem:[%s6223_s25 + $0xa8] sm:$0xfe]  ;;  %v2206_v37 = vld [vmem:[%s7194_s20 + $0x18] sm:$0xff] }
  0xc9   : > { %1892 = vmatprep.mubr.f32.mxu1 %v4172_v0  ;;  %v4224_v36 = vld [vmem:[%s6223_s25 + $0xb8] sm:$0x1]  ;;  %v2207_v38 = vld [vmem:[%s7194_s20 + $0x20] sm:$0xff]  ;;  %v1988_v40 = vrot.slane %v4217_v33, 1  ;;  %v1989_v41 = vrot.slane %v4219_v34, 1  ;;  %v1993_v42 = vsel %vm769_vm0, %v1991_v31, %v1992_v32  ;;  %v1997_v43 = vrot.slane %v4222_v35, 1 }
  0xca   : > { %1730 = vmatmul.mubr.f32.gmra.mrb[62].mxu0 %v4123_v2  ;;  %v1984_v39 = vsel %vm769_vm0, %v1982_v28, %v1983_v29  ;;  %v1998_v44 = vrot.slane %v4224_v36, 1  ;;  %v4221_v45 = vld [vmem:[%s6223_s25 + $0xa0] sm:$0xfe]  ;;  %v4223_v46 = vld [vmem:[%s6223_s25 + $0xb0] sm:$0x1]  ;;  %v2208_v49 = vld [vmem:[%s7194_s20 + $0x28] sm:$0xff] }
  0xcb   : > { %5454 = vmatpush3.bf16.msra.mxu0 %v5453_v3  ;;  %2131 = vmatprep.mubr.f32.mxu0 %v1975_v6  ;;  %v4226_v47 = vld [vmem:[%s6223_s25 + $0xc8] sm:$0xfe]  ;;  %v4228_v48 = vld [vmem:[%s6223_s25 + $0xd8] sm:$0x1]  ;;  %v2209_v50 = vld [vmem:[%s7194_s20 + $0x30] sm:$0xff]  ;;  %v1990_v51 = vsel %vm769_vm0, %v1988_v40, %v1989_v41  ;;  %v1994_v52 = vrot.slane %v4221_v45, 1 }
  0xcc   : > { %1893 = vmatmul.mubr.f32.gmra.mrb[62].mxu1 %v4171_v11  ;;  %v1995_v53 = vrot.slane %v4223_v46, 1  ;;  %v1999_v54 = vsel %vm769_vm0, %v1997_v43, %v1998_v44  ;;  %v2003_v55 = vrot.slane %v4226_v47, 1  ;;  %v2004_v56 = vrot.slane %v4228_v48, 1  ;;  %v4225_v57 = vld [vmem:[%s6223_s25 + $0xc0] sm:$0xfe]  ;;  %v2210_v61 = vld [vmem:[%s7194_s20 + $0x38] sm:$0xff] }
  0xcd   : > { %5099 = vmatprep.mubr.msk.f32.mxu1 %vm2220_vm1, %v2203_v14  ;;  %v4227_v58 = vld [vmem:[%s6223_s25 + $0xd0] sm:$0x1]  ;;  %v4230_v59 = vld [vmem:[%s6223_s25 + $0xe8] sm:$0xfe]  ;;  %v4232_v60 = vld [vmem:[%s6223_s25 + $0xf8] sm:$0x1] }
  0xce   : > { %2132 = vmatmul.mubr.f32.vlgmr.msra.gmra.mrb[64].mxu0 %v1972_v15  ;;  %v1996_v62 = vsel %vm769_vm0, %v1994_v52, %v1995_v53  ;;  %v2000_v63 = vrot.slane %v4225_v57, 1  ;;  %v2001_v0 = vrot.slane %v4227_v58, 1  ;;  %v2005_v1 = vsel %vm769_vm0, %v2003_v55, %v2004_v56  ;;  %v4229_v4 = vld [vmem:[%s6223_s25 + $0xe0] sm:$0xfe]  ;;  %v4231_v5 = vld [vmem:[%s6223_s25 + $0xf0] sm:$0x1] }
  0xcf   : > { %2136 = vmatprep.mubr.f32.mxu0 %v1981_v18  ;;  %v2009_v2 = vrot.slane %v4230_v59, 1  ;;  %v2010_v3 = vrot.slane %v4232_v60, 1  ;;  %v4234_v6 = vld [vmem:[%s6223_s25 + $0x108] sm:$0xfe]  ;;  %v4236_v7 = vld [vmem:[%s6223_s25 + $0x118] sm:$0x1] }
  0xd0   : > { %5100 = vmatmul.mubr.msk.f32.vlgmr.msra.gmra.mrb[64].mxu1 %vm2220_vm1, %v2204_v23  ;;  %v2002_v8 = vsel %vm769_vm0, %v2000_v63, %v2001_v0  ;;  %v2006_v9 = vrot.slane %v4229_v4, 1  ;;  %v2007_v10 = vrot.slane %v4231_v5, 1  ;;  %v2015_v12 = vrot.slane %v4234_v6, 1  ;;  %v4233_v14 = vld [vmem:[%s6223_s25 + $0x100] sm:$0xfe]  ;;  %s5865_s20 = sshll.u32 %s5932_s11, 4  ;;  %s5866_s20 = int_to_ptr.vmem [resolvable:$false] %s5865_s20 }
  0xd1   : > { %5102 = vmatprep.mubr.msk.f32.mxu1 %vm2220_vm1, %v2205_v26  ;;  %v2011_v11 = vsel %vm769_vm0, %v2009_v2, %v2010_v3  ;;  %v2016_v13 = vrot.slane %v4236_v7, 1  ;;  %v4235_v15 = vld [vmem:[%s6223_s25 + $0x110] sm:$0x1]  ;;  %v2012_v17 = vrot.slane %v4233_v14, 1  ;;  %s5867_s25 = scalar_lea.vmem %s5866_s20, 2048 }
  0xd2   : > { %2137 = vmatmul.mubr.f32.gmra.mrb[66].mxu0 %v1978_v27  ;;  %v2008_v16 = vsel %vm769_vm0, %v2006_v9, %v2007_v10  ;;  %v2013_v18 = vrot.slane %v4235_v15, 1 }
  0xd3   : > { %2141 = vmatprep.mubr.f32.mxu0 %v1987_v30  ;;  %v2017_v19 = vsel %vm769_vm0, %v2015_v12, %v2016_v13 }
  0xd4   : > { %5103 = vmatmul.mubr.msk.f32.gmra.mrb[66].mxu1 %vm2220_vm1, %v2206_v37  ;;  %v2014_v20 = vsel %vm769_vm0, %v2012_v17, %v2013_v18 }
  0xd5   : > { %5105 = vmatprep.mubr.msk.f32.mxu1 %vm2220_vm1, %v2207_v38 }
  0xd6   : > { %2142 = vmatmul.mubr.f32.gmra.mrb[68].mxu0 %v1984_v39 }
  0xd7   : > { %2146 = vmatprep.mubr.f32.mxu0 %v1993_v42 }
  0xd8   : > { %5106 = vmatmul.mubr.msk.f32.gmra.mrb[68].mxu1 %vm2220_vm1, %v2208_v49  ;;  %v5930_v49 = vmov 0.0  }
  0xd9   : > { %5108 = vmatprep.mubr.msk.f32.mxu1 %vm2220_vm1, %v2209_v50  ;;  %2392 = vst.msk [vmem:[#allocation2 + $0x20] sm:$0xff] %vm2386_vm2, %v5930_v49  ;;  %2387 = vst.msk [vmem:[#allocation2] sm:$0xff] %vm2386_vm2, %v5930_v49 }
  0xda   : > { %2147 = vmatmul.mubr.f32.gmra.mrb[70].mxu0 %v1990_v51  ;;  %2393 = vst.msk [vmem:[#allocation2 + $0x28] sm:$0x3] %vm2388_vm3, %v5930_v49  ;;  %2389 = vst.msk [vmem:[#allocation2 + $0x8] sm:$0x3] %vm2388_vm3, %v5930_v49 }
  0xdb   : > { %2151 = vmatprep.mubr.f32.mxu0 %v1999_v54  ;;  %2390 = vst.msk [vmem:[#allocation2 + $0x10] sm:$0xff] %vm2386_vm2, %v5930_v49  ;;  %2394 = vst.msk [vmem:[#allocation2 + $0x30] sm:$0xff] %vm2386_vm2, %v5930_v49 }
  0xdc   : > { %5109 = vmatmul.mubr.msk.f32.gmra.mrb[70].mxu1 %vm2220_vm1, %v2210_v61  ;;  %2391 = vst.msk [vmem:[#allocation2 + $0x18] sm:$0x3] %vm2388_vm3, %v5930_v49  ;;  %2395 = vst.msk [vmem:[#allocation2 + $0x38] sm:$0x3] %vm2388_vm3, %v5930_v49 }
  0xdd   : > { %2396 = vst.msk [vmem:[#allocation2 + $0x40] sm:$0xff] %vm2386_vm2, %v5930_v49  ;;  %2398 = vst.msk [vmem:[#allocation2 + $0x50] sm:$0xff] %vm2386_vm2, %v5930_v49 }
  0xde   : > { %2152 = vmatmul.mubr.f32.gmra.mrb[72].mxu0 %v1996_v62  ;;  %2397 = vst.msk [vmem:[#allocation2 + $0x48] sm:$0x3] %vm2388_vm3, %v5930_v49  ;;  %2399 = vst.msk [vmem:[#allocation2 + $0x58] sm:$0x3] %vm2388_vm3, %v5930_v49 }
  0xdf   : > { %2156 = vmatprep.mubr.f32.mxu0 %v2005_v1  ;;  %2400 = vst.msk [vmem:[#allocation2 + $0x60] sm:$0xff] %vm2386_vm2, %v5930_v49  ;;  %2402 = vst.msk [vmem:[#allocation2 + $0x70] sm:$0xff] %vm2386_vm2, %v5930_v49 }
  0xe0   : > { %2401 = vst.msk [vmem:[#allocation2 + $0x68] sm:$0x3] %vm2388_vm3, %v5930_v49  ;;  %2403 = vst.msk [vmem:[#allocation2 + $0x78] sm:$0x3] %vm2388_vm3, %v5930_v49 }
  0xe1   : > { %2404 = vst.msk [vmem:[#allocation2 + $0x80] sm:$0xff] %vm2386_vm2, %v5930_v49  ;;  %2406 = vst.msk [vmem:[#allocation2 + $0x90] sm:$0xff] %vm2386_vm2, %v5930_v49 }
  0xe2   : > { %2157 = vmatmul.mubr.f32.gmra.mrb[74].mxu0 %v2002_v8  ;;  %2405 = vst.msk [vmem:[#allocation2 + $0x88] sm:$0x3] %vm2388_vm3, %v5930_v49  ;;  %2407 = vst.msk [vmem:[#allocation2 + $0x98] sm:$0x3] %vm2388_vm3, %v5930_v49 }
  0xe3   : > { %2161 = vmatprep.mubr.f32.mxu0 %v2011_v11 }
  0xe6   : > { %2162 = vmatmul.mubr.f32.gmra.mrb[76].mxu0 %v2008_v16 }
  0xe7   : > { %2166 = vmatprep.mubr.f32.mxu0 %v2017_v19 }
  0xea   : > { %2167 = vmatmul.mubr.f32.gmra.mrb[78].mxu0 %v2014_v20 }
 0x120   : > { %v4336_v21 = vpop.f32.mrb[0].mxu0 }
 0x121   : > { %v4392_v22 = vpop.f32.mrb[0].mxu1  ;;  %v4337_v23 = vpop.f32.mrb[1].mxu0 }
 0x122   : > { %v4338_v24 = vadd.f32 %v4337_v23, %v4336_v21  ;;  %v4393_v25 = vpop.f32.mrb[1].mxu1 }
 0x123   : > { %v4394_v26 = vadd.f32 %v4393_v25, %v4392_v22 }
 0x124   : > { %v4339_v27 = vpop.f32.mrb[2].mxu0 }
 0x125   : > { %v7255_v28 = vadd.f32 %v4394_v26, %v4338_v24  ;;  %v4395_v29 = vpop.f32.mrb[2].mxu1  ;;  %v4340_v30 = vpop.f32.mrb[3].mxu0 }
 0x126   : > { %v4341_v31 = vadd.f32 %v4340_v30, %v4339_v27  ;;  %v4396_v32 = vpop.f32.mrb[3].mxu1 }
 0x127   : > { %v4397_v33 = vadd.f32 %v4396_v32, %v4395_v29 }
 0x128   : > { %v4342_v34 = vpop.f32.mrb[4].mxu0 }
 0x129   : > { %v7257_v35 = vadd.f32 %v4397_v33, %v4341_v31  ;;  %v4398_v36 = vpop.f32.mrb[4].mxu1  ;;  %v4343_v37 = vpop.f32.mrb[5].mxu0 }
 0x12a   : > { %v4344_v38 = vadd.f32 %v4343_v37, %v4342_v34  ;;  %v4399_v39 = vpop.f32.mrb[5].mxu1 }
 0x12b   : > { %v4400_v40 = vadd.f32 %v4399_v39, %v4398_v36 }
 0x12c   : > { %v4345_v41 = vpop.f32.mrb[6].mxu0 }
 0x12d   : > { %v7259_v42 = vadd.f32 %v4400_v40, %v4344_v38  ;;  %v4401_v43 = vpop.f32.mrb[6].mxu1  ;;  %v4346_v44 = vpop.f32.mrb[7].mxu0 }
 0x12e   : > { %v4347_v45 = vadd.f32 %v4346_v44, %v4345_v41  ;;  %v4402_v46 = vpop.f32.mrb[7].mxu1 }
 0x12f   : > { %v4403_v47 = vadd.f32 %v4402_v46, %v4401_v43 }
 0x130   : > { %v4348_v48 = vpop.f32.mrb[8].mxu0 }
 0x131   : > { %v682_v50 = vadd.f32 %v4403_v47, %v4347_v45  ;;  %v4404_v51 = vpop.f32.mrb[8].mxu1  ;;  %v4349_v52 = vpop.f32.mrb[9].mxu0 }
 0x132   : > { %v4350_v53 = vadd.f32 %v4349_v52, %v4348_v48  ;;  %v4405_v54 = vpop.f32.mrb[9].mxu1 }
 0x133   : > { %v4406_v55 = vadd.f32 %v4405_v54, %v4404_v51 }
 0x134   : > { %v4351_v56 = vpop.f32.mrb[10].mxu0 }
 0x135   : > { %v687_v57 = vadd.f32 %v4406_v55, %v4350_v53  ;;  %v4407_v58 = vpop.f32.mrb[10].mxu1  ;;  %v4352_v59 = vpop.f32.mrb[11].mxu0 }
 0x136   : > { %v4353_v60 = vadd.f32 %v4352_v59, %v4351_v56  ;;  %v4408_v61 = vpop.f32.mrb[11].mxu1 }
 0x137   : > { %v4409_v62 = vadd.f32 %v4408_v61, %v4407_v58 }
 0x138   : > { %v4354_v63 = vpop.f32.mrb[12].mxu0 }
 0x139   : > { %v692_v0 = vadd.f32 %v4409_v62, %v4353_v60  ;;  %v4410_v1 = vpop.f32.mrb[12].mxu1  ;;  %v4355_v2 = vpop.f32.mrb[13].mxu0 }
 0x13a   : > { %v4356_v3 = vadd.f32 %v4355_v2, %v4354_v63  ;;  %v4411_v4 = vpop.f32.mrb[13].mxu1 }
 0x13b   : > { %v4412_v5 = vadd.f32 %v4411_v4, %v4410_v1 }
 0x13c   : > { %v4357_v6 = vpop.f32.mrb[14].mxu0 }
 0x13d   : > { %v697_v7 = vadd.f32 %v4412_v5, %v4356_v3  ;;  %v4413_v8 = vpop.f32.mrb[14].mxu1  ;;  %v4358_v9 = vpop.f32.mrb[15].mxu0 }
 0x13e   : > { %v4359_v10 = vadd.f32 %v4358_v9, %v4357_v6  ;;  %v4414_v11 = vpop.f32.mrb[15].mxu1 }
 0x13f   : > { %v4415_v12 = vadd.f32 %v4414_v11, %v4413_v8 }
 0x140   : > { %v4448_v13 = vpop.f32.mrb[16].mxu0 }
 0x141   : > { %v702_v14 = vadd.f32 %v4415_v12, %v4359_v10  ;;  %v4449_v15 = vpop.f32.mrb[17].mxu0 }
 0x142   : > { %v4450_v16 = vadd.f32 %v4449_v15, %v4448_v13  ;;  %v4504_v17 = vpop.f32.mrb[16].mxu1 }
 0x143   : > { %v4505_v18 = vpop.f32.mrb[17].mxu1 }
 0x144   : > { %v972_v19 = vadd.f32 %v4450_v16, %v7255_v28  ;;  %v4506_v20 = vadd.f32 %v4505_v18, %v4504_v17  ;;  %v4451_v21 = vpop.f32.mrb[18].mxu0 }
 0x145   : > { %v4452_v22 = vpop.f32.mrb[19].mxu0 }
 0x146   : > { %v1135_v23 = vadd.f32 %v4506_v20, %v972_v19  ;;  %v4453_v24 = vadd.f32 %v4452_v22, %v4451_v21  ;;  %v4507_v25 = vpop.f32.mrb[18].mxu1 }
 0x147   : > { %v4508_v26 = vpop.f32.mrb[19].mxu1 }
 0x148   : > { %v973_v27 = vadd.f32 %v4453_v24, %v7257_v35  ;;  %v4509_v29 = vadd.f32 %v4508_v26, %v4507_v25  ;;  %v4454_v30 = vpop.f32.mrb[20].mxu0 }
 0x149   : > { %v4455_v31 = vpop.f32.mrb[21].mxu0 }
 0x14a   : > { %v7283_v32 = vadd.f32 %v4509_v29, %v973_v27  ;;  %v4456_v33 = vadd.f32 %v4455_v31, %v4454_v30  ;;  %v4510_v34 = vpop.f32.mrb[20].mxu1  ;;  %v2667_v30 = vld [vmem:[%s8396_s6 + $0x88] sm:$0xff] }
 0x14b   : > { %v4511_v36 = vpop.f32.mrb[21].mxu1 }
 0x14c   : > { %v974_v37 = vadd.f32 %v4456_v33, %v7259_v42  ;;  %v4512_v28 = vadd.f32 %v4511_v36, %v4510_v34  ;;  %v4457_v38 = vpop.f32.mrb[22].mxu0 }
 0x14d   : > { %v4458_v39 = vpop.f32.mrb[23].mxu0 }
 0x14e   : > { %v7286_v40 = vadd.f32 %v4512_v28, %v974_v37  ;;  %v4459_v41 = vadd.f32 %v4458_v39, %v4457_v38  ;;  %v4513_v43 = vpop.f32.mrb[22].mxu1  ;;  %v2651_v37 = vld [vmem:[%s8396_s6 + $0x8] sm:$0xff]  ;;  %v2668_v28 = vld [vmem:[%s8396_s6 + $0x90] sm:$0xff]  ;;  %v2669_v38 = vld [vmem:[%s8396_s6 + $0x98] sm:$0xff] }
 0x14f   : > { %v4514_v44 = vpop.f32.mrb[23].mxu1 }
 0x150   : > { %v975_v45 = vadd.f32 %v4459_v41, %v682_v50  ;;  %v4515_v35 = vadd.f32 %v4514_v44, %v4513_v43  ;;  %v4460_v46 = vpop.f32.mrb[24].mxu0  ;;  %v5475_v43 = vpack.c.bf16 %v2669_v38, %v2668_v28  ;;  %v2653_v44 = vld [vmem:[%s8396_s6 + $0x18] sm:$0xff]  ;;  %v2660_v28 = vld [vmem:[%s8396_s6 + $0x50] sm:$0xff] }
 0x151   : > { %v4461_v47 = vpop.f32.mrb[25].mxu0  ;;  %v2661_v38 = vld [vmem:[%s8396_s6 + $0x58] sm:$0xff] }
 0x152   : > { %v7288_v48 = vadd.f32 %v4515_v35, %v975_v45  ;;  %v4462_v49 = vadd.f32 %v4461_v47, %v4460_v46  ;;  %v4516_v51 = vpop.f32.mrb[24].mxu1  ;;  %v2670_v45 = vld [vmem:[%s8396_s6 + $0xa0] sm:$0xff] }
 0x153   : > { %v4517_v52 = vpop.f32.mrb[25].mxu1 }
 0x154   : > { %v976_v53 = vadd.f32 %v4462_v49, %v687_v57  ;;  %v4518_v54 = vadd.f32 %v4517_v52, %v4516_v51  ;;  %v4463_v42 = vpop.f32.mrb[26].mxu0  ;;  %v2671_v49 = vld [vmem:[%s8396_s6 + $0xa8] sm:$0xff] }
 0x155   : > { %v4464_v55 = vpop.f32.mrb[27].mxu0 }
 0x156   : > { %v7290_v56 = vadd.f32 %v4518_v54, %v976_v53  ;;  %v4465_v58 = vadd.f32 %v4464_v55, %v4463_v42  ;;  %v4519_v59 = vpop.f32.mrb[26].mxu1  ;;  %v5479_v55 = vpack.c.bf16 %v2671_v49, %v2670_v45  ;;  %v5493_v45 = vpack.c.bf16 %v2661_v38, %v2660_v28 }
 0x157   : > { %v4520_v60 = vpop.f32.mrb[27].mxu1 }
 0x158   : > { %v977_v61 = vadd.f32 %v4465_v58, %v692_v0  ;;  %v4521_v62 = vadd.f32 %v4520_v60, %v4519_v59  ;;  %v4466_v50 = vpop.f32.mrb[28].mxu0  ;;  %v2654_v58 = vld [vmem:[%s8396_s6 + $0x20] sm:$0xff]  ;;  %v2655_v59 = vld [vmem:[%s8396_s6 + $0x28] sm:$0xff] }
 0x159   : > { %v4467_v63 = vpop.f32.mrb[29].mxu0 }
 0x15a   : > { %v7292_v1 = vadd.f32 %v4521_v62, %v977_v61  ;;  %v4468_v2 = vadd.f32 %v4467_v63, %v4466_v50  ;;  %v4522_v3 = vpop.f32.mrb[28].mxu1  ;;  %v2672_v61 = vld [vmem:[%s8396_s6 + $0xb0] sm:$0xff] }
 0x15b   : > { %v4523_v4 = vpop.f32.mrb[29].mxu1 }
 0x15c   : > { %v978_v5 = vadd.f32 %v4468_v2, %v697_v7  ;;  %v4524_v6 = vadd.f32 %v4523_v4, %v4522_v3  ;;  %v4469_v57 = vpop.f32.mrb[30].mxu0  ;;  %v5481_v3 = vpack.c.bf16 %v2655_v59, %v2654_v58 }
 0x15d   : > { %v4470_v8 = vpop.f32.mrb[31].mxu0 }
 0x15e   : > { %v7294_v9 = vadd.f32 %v4524_v6, %v978_v5  ;;  %v4471_v10 = vadd.f32 %v4470_v8, %v4469_v57  ;;  %v4525_v11 = vpop.f32.mrb[30].mxu1  ;;  %v2656_v8 = vld [vmem:[%s8396_s6 + $0x30] sm:$0xff] }
 0x15f   : > { %v4526_v12 = vpop.f32.mrb[31].mxu1 }
 0x160   : > { %v979_v13 = vadd.f32 %v4471_v10, %v702_v14  ;;  %v4527_v15 = vadd.f32 %v4526_v12, %v4525_v11  ;;  %v4560_v0 = vpop.f32.mrb[32].mxu0  ;;  %v2666_v14 = vld [vmem:[%s8396_s6 + $0x80] sm:$0xff]  ;;  %v2657_v10 = vld [vmem:[%s8396_s6 + $0x38] sm:$0xff] }
 0x161   : > { %v4561_v16 = vpop.f32.mrb[33].mxu0  ;;  %v5471_v36 = vpack.c.bf16 %v2667_v30, %v2666_v14  ;;  %v2674_v12 = vld [vmem:[%s8396_s6 + $0xc0] sm:$0xff] }
 0x162   : > { %v7296_v17 = vadd.f32 %v4527_v15, %v979_v13  ;;  %v4562_v18 = vadd.f32 %v4561_v16, %v4560_v0  ;;  %v4616_v19 = vpop.f32.mrb[32].mxu1 }
 0x163   : > { %v4617_v20 = vpop.f32.mrb[33].mxu1  ;;  %5472 = vmatprep.subr.bf16.mxu0 %v5471_v36 }
 0x164   : > { %v1298_v21 = vadd.f32 %v4562_v18, %v1135_v23  ;;  %v4618_v22 = vadd.f32 %v4617_v20, %v4616_v19  ;;  %v4563_v7 = vpop.f32.mrb[34].mxu0  ;;  %v2650_v23 = vld [vmem:[%s8396_s6] sm:$0xff]  ;;  %v5485_v18 = vpack.c.bf16 %v2657_v10, %v2656_v8 }
 0x165   : > { %v4564_v24 = vpop.f32.mrb[35].mxu0  ;;  %v5473_v41 = vpack.c.bf16 %v2651_v37, %v2650_v23 }
 0x166   : > { %v7298_v25 = vadd.f32 %v4618_v22, %v1298_v21  ;;  %v4565_v26 = vadd.f32 %v4564_v24, %v4563_v7  ;;  %v4619_v27 = vpop.f32.mrb[34].mxu1  ;;  %v2658_v7 = vld [vmem:[%s8396_s6 + $0x40] sm:$0xff]  ;;  %v2659_v24 = vld [vmem:[%s8396_s6 + $0x48] sm:$0xff] }
 0x167   : > { %v4620_v29 = vpop.f32.mrb[35].mxu1  ;;  %5474 = vmatpush3.bf16.msra.mxu0 %v5473_v41  ;;  %v2678_v41 = vld [vmem:[%s8396_s6 + $0xe0] sm:$0xff] }
 0x168   : > { %v1299_v31 = vadd.f32 %v4565_v26, %v7283_v32  ;;  %v4621_v33 = vadd.f32 %v4620_v29, %v4619_v27  ;;  %v4566_v34 = vpop.f32.mrb[36].mxu0  ;;  %v2652_v32 = vld [vmem:[%s8396_s6 + $0x10] sm:$0xff]  ;;  %5476 = vmatprep.subr.bf16.mxu0 %v5475_v43 }
 0x169   : > { %v4567_v39 = vpop.f32.mrb[37].mxu0  ;;  %v5477_v52 = vpack.c.bf16 %v2653_v44, %v2652_v32  ;;  %v2676_v27 = vld [vmem:[%s8396_s6 + $0xd0] sm:$0xff] }
 0x16a   : > { %v7328_v35 = vadd.f32 %v4621_v33, %v1299_v31  ;;  %v4568_v46 = vadd.f32 %v4567_v39, %v4566_v34  ;;  %v4622_v47 = vpop.f32.mrb[36].mxu1  ;;  %v5489_v31 = vpack.c.bf16 %v2659_v24, %v2658_v7 }
 0x16b   : > { %v4623_v51 = vpop.f32.mrb[37].mxu1  ;;  %5478 = vmatpush3.bf16.msra.mxu0 %v5477_v52  ;;  %v2662_v52 = vld [vmem:[%s8396_s6 + $0x60] sm:$0xff] }
 0x16c   : > { %v1300_v53 = vadd.f32 %v4568_v46, %v7286_v40  ;;  %v4624_v54 = vadd.f32 %v4623_v51, %v4622_v47  ;;  %v4569_v42 = vpop.f32.mrb[38].mxu0  ;;  %v2673_v40 = vld [vmem:[%s8396_s6 + $0xb8] sm:$0xff]  ;;  %5480 = vmatprep.subr.bf16.mxu0 %v5479_v55 }
 0x16d   : > { %v4570_v60 = vpop.f32.mrb[39].mxu0  ;;  %v5483_v57 = vpack.c.bf16 %v2673_v40, %v2672_v61 }
 0x16e   : > { %v7346_v62 = vadd.f32 %v4624_v54, %v1300_v53  ;;  %v4571_v50 = vadd.f32 %v4570_v60, %v4569_v42  ;;  %v4625_v63 = vpop.f32.mrb[38].mxu1  ;;  %v2663_v53 = vld [vmem:[%s8396_s6 + $0x68] sm:$0xff] }
 0x16f   : > { %v4626_v2 = vpop.f32.mrb[39].mxu1  ;;  %5482 = vmatpush3.bf16.msra.mxu0 %v5481_v3 }
 0x170   : > { %v1301_v4 = vadd.f32 %v4571_v50, %v7288_v48  ;;  %v4627_v5 = vadd.f32 %v4626_v2, %v4625_v63  ;;  %v4572_v6 = vpop.f32.mrb[40].mxu0  ;;  %v2675_v48 = vld [vmem:[%s8396_s6 + $0xc8] sm:$0xff]  ;;  %5484 = vmatprep.subr.bf16.mxu0 %v5483_v57 }
 0x171   : > { %v4573_v11 = vpop.f32.mrb[41].mxu0  ;;  %v5487_v22 = vpack.c.bf16 %v2675_v48, %v2674_v12 }
 0x172   : > { %v7361_v13 = vadd.f32 %v4627_v5, %v1301_v4  ;;  %v4574_v15 = vadd.f32 %v4573_v11, %v4572_v6  ;;  %v4628_v0 = vpop.f32.mrb[40].mxu1 }
 0x173   : > { %v4629_v16 = vpop.f32.mrb[41].mxu1  ;;  %5486 = vmatpush3.bf16.msra.mxu0 %v5485_v18 }
 0x174   : > { %v1302_v19 = vadd.f32 %v4574_v15, %v7290_v56  ;;  %v4630_v20 = vadd.f32 %v4629_v16, %v4628_v0  ;;  %v4575_v21 = vpop.f32.mrb[42].mxu0  ;;  %v2677_v56 = vld [vmem:[%s8396_s6 + $0xd8] sm:$0xff]  ;;  %5488 = vmatprep.subr.bf16.mxu0 %v5487_v22 }
 0x175   : > { %v4576_v26 = vpop.f32.mrb[43].mxu0  ;;  %v5491_v37 = vpack.c.bf16 %v2677_v56, %v2676_v27 }
 0x176   : > { %v7376_v29 = vadd.f32 %v4630_v20, %v1302_v19  ;;  %v4577_v14 = vadd.f32 %v4576_v26, %v4575_v21  ;;  %v4631_v30 = vpop.f32.mrb[42].mxu1 }
 0x177   : > { %v4632_v23 = vpop.f32.mrb[43].mxu1  ;;  %5490 = vmatpush3.bf16.msra.mxu0 %v5489_v31 }
 0x178   : > { %v1303_v33 = vadd.f32 %v4577_v14, %v7292_v1  ;;  %v4633_v34 = vadd.f32 %v4632_v23, %v4631_v30  ;;  %v4578_v36 = vpop.f32.mrb[44].mxu0  ;;  %v2679_v1 = vld [vmem:[%s8396_s6 + $0xe8] sm:$0xff]  ;;  %5492 = vmatprep.subr.bf16.mxu0 %v5491_v37 }
 0x179   : > { %v4579_v39 = vpop.f32.mrb[45].mxu0  ;;  %v5495_v51 = vpack.c.bf16 %v2679_v1, %v2678_v41 }
 0x17a   : > { %v7391_v43 = vadd.f32 %v4633_v34, %v1303_v33  ;;  %v4580_v32 = vadd.f32 %v4579_v39, %v4578_v36  ;;  %v4634_v44 = vpop.f32.mrb[44].mxu1 }
 0x17b   : > { %v4635_v47 = vpop.f32.mrb[45].mxu1  ;;  %5494 = vmatpush3.bf16.msra.mxu0 %v5493_v45 }
 0x17c   : > { %v1304_v46 = vadd.f32 %v4580_v32, %v7294_v9  ;;  %v4581_v49 = vpop.f32.mrb[46].mxu0  ;;  %v4636_v54 = vadd.f32 %v4635_v47, %v4634_v44  ;;  %v5497_v9 = vpack.c.bf16 %v2663_v53, %v2662_v52  ;;  %5496 = vmatprep.subr.bf16.mxu0 %v5495_v51 }
 0x17d   : > { %v4582_v42 = vpop.f32.mrb[47].mxu0 }
 0x17e   : > { %v4583_v55 = vadd.f32 %v4582_v42, %v4581_v49  ;;  %v7400_v58 = vadd.f32 %v4636_v54, %v1304_v46  ;;  %v4637_v59 = vpop.f32.mrb[46].mxu1 }
 0x17f   : > { %v4638_v61 = vpop.f32.mrb[47].mxu1  ;;  %5498 = vmatpush3.bf16.msra.mxu0 %v5497_v9 }
 0x180   : > { %v1305_v60 = vadd.f32 %v4583_v55, %v7296_v17  ;;  %v4639_v40 = vadd.f32 %v4638_v61, %v4637_v59 }
 0x181   : > { %v4672_v50 = vpop.f32.mrb[48].mxu0 }
 0x182   : > { %v4673_v63 = vpop.f32.mrb[49].mxu0  ;;  %v7403_v2 = vadd.f32 %v4639_v40, %v1305_v60 }
 0x183   : > { %v4674_v3 = vadd.f32 %v4673_v63, %v4672_v50  ;;  %v4728_v4 = vpop.f32.mrb[48].mxu1 }
 0x184   : > { %v4729_v5 = vpop.f32.mrb[49].mxu1 }
 0x185   : > { %v1735_v6 = vadd.f32 %v4674_v3, %v7298_v25  ;;  %v4730_v57 = vadd.f32 %v4729_v5, %v4728_v4  ;;  %v4675_v8 = vpop.f32.mrb[50].mxu0 }
 0x186   : > { %v4676_v10 = vpop.f32.mrb[51].mxu0 }
 0x187   : > { %v7406_v11 = vadd.f32 %v4730_v57, %v1735_v6  ;;  %v4677_v12 = vadd.f32 %v4676_v10, %v4675_v8  ;;  %v4731_v17 = vpop.f32.mrb[50].mxu1 }
 0x188   : > { %v4732_v48 = vpop.f32.mrb[51].mxu1 }
 0x189   : > { %v1736_v15 = vadd.f32 %v4677_v12, %v7328_v35  ;;  %v4733_v0 = vadd.f32 %v4732_v48, %v4731_v17  ;;  %v4678_v16 = vpop.f32.mrb[52].mxu0  ;;  %v7435_v17 = vstv %s4278_s0  ;;  %s5931_s0 = smov 64  }
 0x18a   : > { %v4679_v18 = vpop.f32.mrb[53].mxu0 }
 0x18b   : > { %v7409_v19 = vadd.f32 %v4733_v0, %v1736_v15  ;;  %v4680_v20 = vadd.f32 %v4679_v18, %v4678_v16  ;;  %v4734_v21 = vpop.f32.mrb[52].mxu1  ;;  %v7440_v0 = vstv %s2350_s30 }
 0x18c   : > { %v4735_v22 = vpop.f32.mrb[53].mxu1 }
 0x18d   : > { %v1737_v25 = vadd.f32 %v4680_v20, %v7346_v62  ;;  %v4736_v7 = vadd.f32 %v4735_v22, %v4734_v21  ;;  %v4681_v24 = vpop.f32.mrb[54].mxu0 }
 0x18e   : > { %v4682_v26 = vpop.f32.mrb[55].mxu0 }
 0x18f   : > { %v7412_v27 = vadd.f32 %v4736_v7, %v1737_v25  ;;  %v4683_v56 = vadd.f32 %v4682_v26, %v4681_v24  ;;  %v4737_v14 = vpop.f32.mrb[54].mxu1 }
 0x190   : > { %v4738_v30 = vpop.f32.mrb[55].mxu1 }
 0x191   : > { %v1738_v35 = vadd.f32 %v4683_v56, %v7361_v13  ;;  %v4739_v23 = vadd.f32 %v4738_v30, %v4737_v14  ;;  %v4684_v31 = vpop.f32.mrb[56].mxu0  ;;  %v2680_v14 = vld [vmem:[%s8396_s6 + $0xf0] sm:$0xff]  ;;  %v2698_v30 = vld [vmem:[%s8396_s6 + $0x180] sm:$0xff] }
 0x192   : > { %v4685_v33 = vpop.f32.mrb[57].mxu0 }
 0x193   : > { %v7415_v34 = vadd.f32 %v4739_v23, %v1738_v35  ;;  %v4686_v36 = vadd.f32 %v4685_v33, %v4684_v31  ;;  %v4740_v37 = vpop.f32.mrb[56].mxu1 }
 0x194   : > { %v4741_v28 = vpop.f32.mrb[57].mxu1 }
 0x195   : > { %v1739_v62 = vadd.f32 %v4686_v36, %v7376_v29  ;;  %v4742_v38 = vadd.f32 %v4741_v28, %v4740_v37  ;;  %v4687_v39 = vpop.f32.mrb[58].mxu0  ;;  %v2699_v36 = vld [vmem:[%s8396_s6 + $0x188] sm:$0xff]  ;;  %v2664_v37 = vld [vmem:[%s8396_s6 + $0x70] sm:$0xff]  ;;  %v2665_v28 = vld [vmem:[%s8396_s6 + $0x78] sm:$0xff] }
 0x196   : > { %v4688_v41 = vpop.f32.mrb[59].mxu0 }
 0x197   : > { %v7418_v1 = vadd.f32 %v4742_v38, %v1739_v62  ;;  %v4689_v32 = vadd.f32 %v4688_v41, %v4687_v39  ;;  %v4743_v44 = vpop.f32.mrb[58].mxu1  ;;  %v5501_v41 = vpack.c.bf16 %v2665_v28, %v2664_v37 }
 0x198   : > { %v4744_v45 = vpop.f32.mrb[59].mxu1 }
 0x199   : > { %v1740_v13 = vadd.f32 %v4689_v32, %v7391_v43  ;;  %v4745_v46 = vadd.f32 %v4744_v45, %v4743_v44  ;;  %v4690_v47 = vpop.f32.mrb[60].mxu0  ;;  %v2682_v32 = vld [vmem:[%s8396_s6 + $0x100] sm:$0xff]  ;;  %v2683_v44 = vld [vmem:[%s8396_s6 + $0x108] sm:$0xff] }
 0x19a   : > { %v4691_v49 = vpop.f32.mrb[61].mxu0 }
 0x19b   : > { %v7421_v51 = vadd.f32 %v4745_v46, %v1740_v13  ;;  %v4692_v52 = vadd.f32 %v4691_v49, %v4690_v47  ;;  %v4746_v53 = vpop.f32.mrb[60].mxu1 }
 0x19c   : > { %v4747_v54 = vpop.f32.mrb[61].mxu1 }
 0x19d   : > { %v1741_v29 = vadd.f32 %v4692_v52, %v7400_v58  ;;  %v4748_v42 = vadd.f32 %v4747_v54, %v4746_v53  ;;  %v4693_v55 = vpop.f32.mrb[62].mxu0  ;;  %v7432_v58 = vld [vmem:[%s8393_s3] ss:$0 sm:$0xff]  ;;  %v5505_v53 = vpack.c.bf16 %v2683_v44, %v2682_v32  ;;  %v2700_v54 = vld [vmem:[%s8396_s6 + $0x190] sm:$0xff] }
 0x19e   : > { %v4694_v59 = vpop.f32.mrb[63].mxu0 }
 0x19f   : > { %v7424_v9 = vadd.f32 %v4748_v42, %v1741_v29  ;;  %v4695_v60 = vadd.f32 %v4694_v59, %v4693_v55  ;;  %v4749_v61 = vpop.f32.mrb[62].mxu1  ;;  %v2701_v29 = vld [vmem:[%s8396_s6 + $0x198] sm:$0xff] }
 0x1a0   : > { %v4750_v40 = vpop.f32.mrb[63].mxu1 }
 0x1a1   : > { %v1742_v43 = vadd.f32 %v4695_v60, %v7403_v2  ;;  %v4751_v50 = vadd.f32 %v4750_v40, %v4749_v61  ;;  %v4784_v63 = vpop.f32.mrb[64].mxu0  ;;  %v2684_v40 = vld [vmem:[%s8396_s6 + $0x110] sm:$0xff] }
 0x1a2   : > { %v4785_v3 = vpop.f32.mrb[65].mxu0 }
 0x1a3   : > { %v7427_v4 = vadd.f32 %v4751_v50, %v1742_v43  ;;  %v4786_v5 = vadd.f32 %v4785_v3, %v4784_v63  ;;  %v5101_v6 = vpop.f32.mrb[64].mxu1  ;;  %v2685_v43 = vld [vmem:[%s8396_s6 + $0x118] sm:$0xff]  ;;  %v5507_v63 = vpack.c.bf16 %v2701_v29, %v2700_v54  ;;  %v2714_v3 = vld [vmem:[%s8396_s6 + $0x200] sm:$0xff] }
 0x1a4   : > { %v2311_v57 = vpop.f32.mrb[65].mxu1  ;;  %v2363_v62 = vmul.f32 %v5101_v6, %v7435_v17 }
 0x1a5   : > { %v2172_v8 = vadd.f32 %v4786_v5, %v7406_v11  ;;  %v4787_v10 = vpop.f32.mrb[66].mxu0  ;;  %v2362_v22 = vmul.f32 %v7435_v17, %v2311_v57  ;;  %v5509_v5 = vpack.c.bf16 %v2685_v43, %v2684_v40  ;;  %v2706_v43 = vld [vmem:[%s8396_s6 + $0x1c0] sm:$0xff] }
 0x1a6   : > { %v4788_v12 = vpop.f32.mrb[67].mxu0 }
 0x1a7   : > { %v2187_v2 = vadd.f32 %v7432_v58, %v2172_v8  ;;  %v4789_v48 = vadd.f32 %v4788_v12, %v4787_v10  ;;  %v7438_v15 = vpop.f32.mrb[66].mxu1 }
 0x1a8   : > { %v2321_v16 = vpop.f32.mrb[67].mxu1 }
 0x1a9   : > { %v2195_v18 = vmax.f32 %v2187_v2, 0.0  ;;  %v2173_v20 = vadd.f32 %v4789_v48, %v7409_v19  ;;  %v4790_v21 = vpop.f32.mrb[68].mxu0  ;;  %v2681_v19 = vld [vmem:[%s8396_s6 + $0xf8] sm:$0xff]  ;;  %v2364_v61 = vmul.f32 %v7435_v17, %v2321_v16  ;;  %v2702_v2 = vld [vmem:[%s8396_s6 + $0x1a0] sm:$0xff]  ;;  %v2703_v48 = vld [vmem:[%s8396_s6 + $0x1a8] sm:$0xff] }
 0x1aa   : > { %v4791_v25 = vpop.f32.mrb[69].mxu0  ;;  %v5499_v39 = vpack.c.bf16 %v2681_v19, %v2680_v14  ;;  %v7535_v14 = vld [vmem:[#allocation2 + $0x1] sm:$0xff] }
 0x1ab   : > { %v2188_v11 = vadd.f32 %v7432_v58, %v2173_v20  ;;  %v4792_v7 = vadd.f32 %v4791_v25, %v4790_v21  ;;  %v2352_v24 = vmul.f32 %v7440_v0, %v2195_v18  ;;  %v7446_v26 = vpop.f32.mrb[68].mxu1  ;;  %v2686_v25 = vld [vmem:[%s8396_s6 + $0x120] sm:$0xff] }
 0x1ac   : > { %v7448_v56 = vpop.f32.mrb[69].mxu1  ;;  %5500 = vmatprep.subr.bf16.mxu0 %v5499_v39  ;;  %v2704_v39 = vld [vmem:[%s8396_s6 + $0x1b0] sm:$0xff] }
 0x1ad   : > { %v2196_v35 = vmax.f32 %v2188_v11, 0.0  ;;  %v2174_v23 = vadd.f32 %v4792_v7, %v7412_v27  ;;  %v7460_v31 = vadd.f32 %v2362_v22, %v2352_v24  ;;  %v4793_v33 = vpop.f32.mrb[70].mxu0  ;;  %v5503_v27 = vpack.c.bf16 %v2699_v36, %v2698_v30  ;;  %5502 = vmatpush3.bf16.msra.mxu0 %v5501_v41  ;;  %v2687_v11 = vld [vmem:[%s8396_s6 + $0x128] sm:$0xff] }
 0x1ae   : > { %v4794_v38 = vpop.f32.mrb[71].mxu0  ;;  %v5511_v22 = vpack.c.bf16 %v2703_v48, %v2702_v2  ;;  %v2365_v7 = vmul.f32 %v7438_v15, %v7435_v17 }
 0x1af   : > { %v2353_v45 = vmul.f32 %v7440_v0, %v2196_v35  ;;  %v2189_v13 = vadd.f32 %v7432_v58, %v2174_v23  ;;  %v2378_v46 = vmax.f32 %v7460_v31, 0.0  ;;  %v4795_v47 = vadd.f32 %v4794_v38, %v4793_v33  ;;  %v7481_v49 = vpop.f32.mrb[70].mxu1  ;;  %5504 = vmatprep.subr.bf16.mxu1 %v5503_v27  ;;  %v2688_v27 = vld [vmem:[%s8396_s6 + $0x130] sm:$0xff] }
 0x1b0   : > { %v7483_v52 = vpop.f32.mrb[71].mxu1  ;;  %5506 = vmatpush3.bf16.msra.mxu1 %v5505_v53  ;;  %v2366_v33 = vmul.f32 %v7435_v17, %v7448_v56  ;;  %v2705_v56 = vld [vmem:[%s8396_s6 + $0x1b8] sm:$0xff] }
 0x1b1   : > { %v7491_v42 = vadd.f32 %v2363_v62, %v2353_v45  ;;  %v2197_v55 = vmax.f32 %v2189_v13, 0.0  ;;  %2409 = vst.msk [vmem:[#allocation2 + $0x11] sm:$0xff] %vm2386_vm2, %v2378_v46  ;;  %v2175_v59 = vadd.f32 %v4795_v47, %v7415_v34  ;;  %v4796_v60 = vpop.f32.mrb[72].mxu0  ;;  %v2715_v34 = vld [vmem:[%s8396_s6 + $0x208] sm:$0xff]  ;;  %5508 = vmatprep.subr.bf16.mxu1 %v5507_v63  ;;  %v5515_v32 = vpack.c.bf16 %v2705_v56, %v2704_v39  ;;  %v2690_v63 = vld [vmem:[%s8396_s6 + $0x140] sm:$0xff] }
 0x1b2   : > { %v4797_v50 = vpop.f32.mrb[73].mxu0  ;;  %v7513_v12 = vpack.c.bf16 %v2715_v34, %v2714_v3  ;;  %v2368_v48 = vmul.f32 %v7435_v17, %v7483_v52  ;;  %v2708_v52 = vld [vmem:[%s8396_s6 + $0x1d0] sm:$0xff]  ;;  %v2710_v39 = vld [vmem:[%s8396_s6 + $0x1e0] sm:$0xff]  ;;  %v2711_v56 = vld [vmem:[%s8396_s6 + $0x1e8] sm:$0xff] }
 0x1b3   : > { %v2379_v6 = vmax.f32 %v7491_v42, 0.0  ;;  %v2190_v57 = vadd.f32 %v7432_v58, %v2175_v59  ;;  %v4798_v8 = vadd.f32 %v4797_v50, %v4796_v60  ;;  %v2354_v10 = vmul.f32 %v7440_v0, %v2197_v55  ;;  %v2707_v50 = vld [vmem:[%s8396_s6 + $0x1c8] sm:$0xff] }
 0x1b4   : > { %5536 = vmatprep.subr.bf16.mxu0 %v7513_v12  ;;  %5510 = vmatpush3.bf16.msra.mxu1 %v5509_v5  ;;  %v5519_v34 = vpack.c.bf16 %v2707_v50, %v2706_v43  ;;  %v2691_v5 = vld [vmem:[%s8396_s6 + $0x148] sm:$0xff]  ;;  %v2697_v43 = vld [vmem:[%s8396_s6 + $0x178] sm:$0xff] }
 0x1b5   : > { %2410 = vst.msk [vmem:[#allocation2 + $0x21] sm:$0xff] %vm2386_vm2, %v2379_v6  ;;  %v2198_v16 = vmax.f32 %v2190_v57, 0.0  ;;  %v2176_v18 = vadd.f32 %v4798_v8, %v7418_v1  ;;  %v7525_v20 = vadd.f32 %v2364_v61, %v2354_v10  ;;  %v4799_v21 = vpop.f32.mrb[74].mxu0  ;;  %v5513_v1 = vpack.c.bf16 %v2687_v11, %v2686_v25  ;;  %5512 = vmatprep.subr.bf16.mxu1 %v5511_v22 }
 0x1b6   : > { %v4800_v24 = vpop.f32.mrb[75].mxu0 }
 0x1b7   : > { %v2355_v19 = vmul.f32 %v7440_v0, %v2198_v16  ;;  %v2191_v30 = vadd.f32 %v7432_v58, %v2176_v18  ;;  %v2380_v35 = vmax.f32 %v7525_v20, 0.0  ;;  %v4801_v23 = vadd.f32 %v4800_v24, %v4799_v21  ;;  %v2692_v24 = vld [vmem:[%s8396_s6 + $0x150] sm:$0xff] }
 0x1b8   : > { %v7543_v36 = vld [vmem:[#allocation2 + $0x10] sm:$0xff]  ;;  %5514 = vmatpush3.bf16.msra.mxu1 %v5513_v1  ;;  %v5521_v18 = vpack.c.bf16 %v2691_v5, %v2690_v63 }
 0x1b9   : > { %v7545_v15 = vadd.f32 %v2365_v7, %v2355_v19  ;;  %v2199_v37 = vmax.f32 %v2191_v30, 0.0  ;;  %2411 = vst.msk [vmem:[#allocation2 + $0x31] sm:$0xff] %vm2386_vm2, %v2380_v35  ;;  %v2177_v28 = vadd.f32 %v4801_v23, %v7421_v51  ;;  %v4802_v62 = vpop.f32.mrb[76].mxu0  ;;  %v5686_v38 = vpack.i.bf16 %v7535_v14, %v7543_v36  ;;  %v2689_v51 = vld [vmem:[%s8396_s6 + $0x138] sm:$0xff]  ;;  %5516 = vmatprep.subr.bf16.mxu1 %v5515_v32  ;;  %v2695_v32 = vld [vmem:[%s8396_s6 + $0x168] sm:$0xff] }
 0x1ba   : > { %v4803_v41 = vpop.f32.mrb[77].mxu0  ;;  %v7569_v53 = vld [vmem:[#allocation2 + $0x11] sm:$0xff]  ;;  %v5517_v29 = vpack.c.bf16 %v2689_v51, %v2688_v27  ;;  %v2694_v27 = vld [vmem:[%s8396_s6 + $0x160] sm:$0xff] }
 0x1bb   : > { %v2381_v44 = vmax.f32 %v7545_v15, 0.0  ;;  %v2192_v45 = vadd.f32 %v7432_v58, %v2177_v28  ;;  %v4804_v13 = vadd.f32 %v4803_v41, %v4802_v62  ;;  %v2356_v47 = vmul.f32 %v7440_v0, %v2199_v37  ;;  %5687 = vrot.lane.b32.xlu0 %v5686_v38, %s5931_s0  ;;  %v2709_v7 = vld [vmem:[%s8396_s6 + $0x1d8] sm:$0xff] }
 0x1bc   : > { %v7571_v54 = vld [vmem:[#allocation2 + $0x20] sm:$0xff]  ;;  %5518 = vmatpush3.bf16.msra.mxu1 %v5517_v29  ;;  %v5523_v1 = vpack.c.bf16 %v2709_v7, %v2708_v52  ;;  %v5527_v41 = vpack.c.bf16 %v2711_v56, %v2710_v39 }
 0x1bd   : > { %2412 = vst.msk [vmem:[#allocation2 + $0x41] sm:$0xff] %vm2386_vm2, %v2381_v44  ;;  %v2200_v55 = vmax.f32 %v2192_v45, 0.0  ;;  %v2178_v59 = vadd.f32 %v4804_v13, %v7424_v9  ;;  %v7577_v60 = vadd.f32 %v2366_v33, %v2356_v47  ;;  %v4805_v61 = vpop.f32.mrb[78].mxu0  ;;  %v5691_v40 = vpack.i.bf16 %v7569_v53, %v7571_v54  ;;  %5520 = vmatprep.subr.bf16.mxu1 %v5519_v34 }
 0x1be   : > { %v2367_v9 = vmul.f32 %v7446_v26, %v7435_v17  ;;  %v4806_v3 = vpop.f32.mrb[79].mxu0  ;;  %v7601_v26 = vld [vmem:[#allocation2 + $0x21] sm:$0xff]  ;;  %v2369_v45 = vmul.f32 %v7481_v49, %v7435_v17  ;;  %v5529_v47 = vpack.c.bf16 %v2695_v32, %v2694_v27  ;;  %v2712_v17 = vld [vmem:[%s8396_s6 + $0x1f0] sm:$0xff]  ;;  %v2713_v49 = vld [vmem:[%s8396_s6 + $0x1f8] sm:$0xff] }
 0x1bf   : > { %v2357_v57 = vmul.f32 %v7440_v0, %v2200_v55  ;;  %v2193_v8 = vadd.f32 %v7432_v58, %v2178_v59  ;;  %v2382_v10 = vmax.f32 %v7577_v60, 0.0  ;;  %v4807_v2 = vadd.f32 %v4806_v3, %v4805_v61  ;;  %5692 = vrot.lane.b32.xlu0 %v5691_v40, %s5931_s0  ;;  %v2696_v61 = vld [vmem:[%s8396_s6 + $0x170] sm:$0xff] }
 0x1c0   : > { %v7603_v16 = vld [vmem:[#allocation2 + $0x30] sm:$0xff]  ;;  %5522 = vmatpush3.bf16.msra.mxu1 %v5521_v18  ;;  %v5531_v40 = vpack.c.bf16 %v2713_v49, %v2712_v17  ;;  %v5533_v63 = vpack.c.bf16 %v2697_v43, %v2696_v61  ;;  %v2717_v17 = vld [vmem:[%s8396_s6 + $0x218] sm:$0xff] }
 0x1c1   : > { %v7605_v21 = vadd.f32 %v2367_v9, %v2357_v57  ;;  %v2201_v22 = vmax.f32 %v2193_v8, 0.0  ;;  %2413 = vst.msk [vmem:[#allocation2 + $0x51] sm:$0xff] %vm2386_vm2, %v2382_v10  ;;  %v2179_v25 = vadd.f32 %v4807_v2, %v7427_v4  ;;  %v5696_v11 = vpack.i.bf16 %v7601_v26, %v7603_v16  ;;  %v2693_v4 = vld [vmem:[%s8396_s6 + $0x158] sm:$0xff]  ;;  %5524 = vmatprep.subr.bf16.mxu1 %v5523_v1 }
 0x1c2   : > { %v7629_v33 = vld [vmem:[#allocation2 + $0x31] sm:$0xff]  ;;  %v5525_v28 = vpack.c.bf16 %v2693_v4, %v2692_v24 }
 0x1c3   : > { %v2383_v19 = vmax.f32 %v7605_v21, 0.0  ;;  %v2194_v30 = vadd.f32 %v7432_v58, %v2179_v25  ;;  %v2358_v23 = vmul.f32 %v7440_v0, %v2201_v22  ;;  %5697 = vrot.lane.b32.xlu1 %v5696_v11, %s5931_s0  ;;  %v2457_v18 = vld [vmem:[#allocation2 + $0x12] sm:$0xff]  ;;  %v7708_v11 = vld [vmem:[#allocation2 + $0x22] sm:$0xff] }
 0x1c4   : > { %v7631_v37 = vld [vmem:[#allocation2 + $0x40] sm:$0xff]  ;;  %5526 = vmatpush3.bf16.msra.mxu1 %v5525_v28  ;;  %v7710_v52 = vld [vmem:[#allocation2 + $0x32] sm:$0xff]  ;;  %v5731_v7 = vpack.i.bf16 %v7708_v11, %v7629_v33 }
 0x1c5   : > { %2414 = vst.msk [vmem:[#allocation2 + $0x61] sm:$0xff] %vm2386_vm2, %v2383_v19  ;;  %v2202_v62 = vmax.f32 %v2194_v30, 0.0  ;;  %v7636_v38 = vadd.f32 %v2368_v48, %v2358_v23  ;;  %v5701_v58 = vpack.i.bf16 %v7629_v33, %v7631_v37  ;;  %v7657_v29 = vld [vmem:[#allocation2 + $0x41] sm:$0xff]  ;;  %5528 = vmatprep.subr.bf16.mxu1 %v5527_v41  ;;  %v7740_v41 = vld [vmem:[#allocation2 + $0x91] sm:$0xff] }
 0x1c6   : > { %v5736_v24 = vpack.i.bf16 %v7710_v52, %v7657_v29  ;;  %v7718_v1 = vld [vmem:[#allocation2 + $0x42] sm:$0xff] }
 0x1c7   : > { %v2359_v51 = vmul.f32 %v7440_v0, %v2202_v62  ;;  %v2384_v13 = vmax.f32 %v7636_v38, 0.0  ;;  %5702 = vrot.lane.b32.xlu1 %v5701_v58, %s5931_s0 }
 0x1c8   : > { %v7659_v55 = vld [vmem:[#allocation2 + $0x50] sm:$0xff]  ;;  %5530 = vmatpush3.bf16.msra.mxu1 %v5529_v47  ;;  %v7749_v47 = vld [vmem:[#allocation2] sm:$0xff] }
 0x1c9   : > { %v7661_v59 = vadd.f32 %v2369_v45, %v2359_v51  ;;  %2415 = vst.msk [vmem:[#allocation2 + $0x71] sm:$0xff] %vm2386_vm2, %v2384_v13  ;;  %v5706_v0 = vpack.i.bf16 %v7657_v29, %v7659_v55  ;;  %v7682_v9 = vld [vmem:[#allocation2 + $0x51] sm:$0xff]  ;;  %5532 = vmatprep.subr.bf16.mxu1 %v5531_v40  ;;  %v7747_v51 = vld [vmem:[#allocation2 + $0x2] sm:$0xff] }
 0x1ca   : > { %v7720_v4 = vld [vmem:[#allocation2 + $0x52] sm:$0xff]  ;;  %v5741_v30 = vpack.i.bf16 %v7718_v1, %v7682_v9 }
 0x1cb   : > { %v2385_v50 = vmax.f32 %v7661_v59, 0.0  ;;  %5707 = vrot.lane.b32.xlu0 %v5706_v0, %s5931_s0  ;;  %v2716_v0 = vld [vmem:[%s8396_s6 + $0x210] sm:$0xff] }
 0x1cc   : > { %v7684_v3 = vld [vmem:[#allocation2 + $0x60] sm:$0xff]  ;;  %5534 = vmatpush3.bf16.msra.mxu1 %v5533_v63  ;;  %v5539_v63 = vpack.c.bf16 %v2717_v17, %v2716_v0 }
 0x1cd   : > { %2416 = vst.msk [vmem:[#allocation2 + $0x81] sm:$0xff] %vm2386_vm2, %v2385_v50  ;;  %v5711_v34 = vpack.i.bf16 %v7682_v9, %v7684_v3  ;;  %v7692_v5 = vld [vmem:[#allocation2 + $0x61] sm:$0xff] }
 0x1ce   : > { %v5746_v23 = vpack.i.bf16 %v7720_v4, %v7692_v5  ;;  %v7730_v62 = vld [vmem:[#allocation2 + $0x62] sm:$0xff] }
 0x1cf   : > { %5712 = vrot.lane.b32.xlu1 %v5711_v34, %s5931_s0 }
 0x1d0   : > { %v7694_v57 = vld [vmem:[#allocation2 + $0x70] sm:$0xff] }
 0x1d1   : > { %v5716_v8 = vpack.i.bf16 %v7692_v5, %v7694_v57  ;;  %v7698_v2 = vld [vmem:[#allocation2 + $0x71] sm:$0xff] }
 0x1d2   : > { %v5721_v25 = vpack.i.bf16 %v2457_v18, %v7698_v2  ;;  %v7732_v58 = vld [vmem:[#allocation2 + $0x72] sm:$0xff]  ;;  %v5751_v39 = vpack.i.bf16 %v7730_v62, %v7698_v2 }
 0x1d3   : > { %5717 = vrot.lane.b32.xlu0 %v5716_v8, %s5931_s0  ;;  %v2718_v8 = vld [vmem:[%s8396_s6 + $0x220] sm:$0xff] }
 0x1d4   : > { %v7701_v48 = vld [vmem:[#allocation2 + $0x80] sm:$0xff] }
 0x1d5   : > { %v5726_v22 = vpack.i.bf16 %v7601_v26, %v7701_v48  ;;  %v7726_v28 = vld [vmem:[#allocation2 + $0x81] sm:$0xff] }
 0x1d6   : > { %v5756_v56 = vpack.i.bf16 %v7732_v58, %v7726_v28  ;;  %v7738_v27 = vld [vmem:[#allocation2 + $0x82] sm:$0xff] }
 0x1d7   : > { %5727 = vrot.lane.b32.xlu1 %v5726_v22, %s5931_s0  ;;  %5722 = vrot.lane.b32.xlu0 %v5721_v25, %s5931_s0  ;;  %v5761_v32 = vpack.i.bf16 %v7738_v27, %v7740_v41  ;;  %v2719_v22 = vld [vmem:[%s8396_s6 + $0x228] sm:$0xff] }
 0x1db   : > { %5732 = vrot.lane.b32.xlu1 %v5731_v7, %s5931_s0  ;;  %5737 = vrot.lane.b32.xlu0 %v5736_v24, %s5931_s0 }
 0x1df   : > { %5742 = vrot.lane.b32.xlu1 %v5741_v30, %s5931_s0  ;;  %5747 = vrot.lane.b32.xlu0 %v5746_v23, %s5931_s0  ;;  %v5543_v23 = vpack.c.bf16 %v2719_v22, %v2718_v8 }
 0x1e3   : > { %5752 = vrot.lane.b32.xlu1 %v5751_v39, %s5931_s0  ;;  %5757 = vrot.lane.b32.xlu0 %v5756_v56, %s5931_s0  ;;  %v2720_v56 = vld [vmem:[%s8396_s6 + $0x230] sm:$0xff] }
 0x1e7   : > { %5762 = vrot.lane.b32.xlu1 %v5761_v32, %s5931_s0  ;;  %v2721_v32 = vld [vmem:[%s8396_s6 + $0x238] sm:$0xff] }
 0x22d   : > { %v5688_v45 = vpop.permute.xlu0 %5687 }
 0x22e   : > { %v5690_v49 = vunpack.i.h.bf16 %v5688_v45  ;;  %v5689_v61 = vunpack.i.l.bf16 %v5688_v45 }
 0x230   : > { %v2626_v40 = vsel %vm2386_vm2, %v7747_v51, %v5689_v61  ;;  %v2618_v43 = vsel %vm2386_vm2, %v7749_v47, %v5690_v49 }
 0x231   : > { %2817 = vmatprep.mubr.f32.mxu0 %v2626_v40  ;;  %v5693_v34 = vpop.permute.xlu0 %5692 }
 0x232   : > { %v5695_v25 = vunpack.i.h.bf16 %v5693_v34  ;;  %v5694_v7 = vunpack.i.l.bf16 %v5693_v34  ;;  %2818 = vmatmul.mubr.f32.vlgmr.msra.gmra.mrb[80].mxu0 %v2618_v43 }
 0x233   : > { %5538 = vmatpush3.bf16.msra.mxu0 %v7513_v12 }
 0x234   : > { %v2627_v24 = vsel %vm2386_vm2, %v2457_v18, %v5694_v7  ;;  %v2619_v30 = vsel %vm2386_vm2, %v7543_v36, %v5695_v25  ;;  %5540 = vmatprep.subr.bf16.mxu0 %v5539_v63  ;;  %v5547_v18 = vpack.c.bf16 %v2721_v32, %v2720_v56 }
 0x235   : > { %v5698_v39 = vpop.permute.xlu1 %5697  ;;  %2822 = vmatprep.mubr.f32.mxu0 %v2627_v24 }
 0x236   : > { %v5700_v45 = vunpack.i.h.bf16 %v5698_v39  ;;  %v5699_v0 = vunpack.i.l.bf16 %v5698_v39  ;;  %2823 = vmatmul.mubr.f32.gmra.mrb[82].mxu0 %v2619_v30 }
 0x237   : > { %5542 = vmatpush3.bf16.msra.mxu0 %v5539_v63 }
 0x238   : > { %v2628_v12 = vsel %vm2386_vm2, %v7708_v11, %v5699_v0  ;;  %v2620_v36 = vsel %vm2386_vm2, %v7571_v54, %v5700_v45  ;;  %5544 = vmatprep.subr.bf16.mxu0 %v5543_v23 }
 0x239   : > { %v5703_v17 = vpop.permute.xlu1 %5702  ;;  %2827 = vmatprep.mubr.f32.mxu0 %v2628_v12 }
 0x23a   : > { %v5705_v49 = vunpack.i.h.bf16 %v5703_v17  ;;  %v5704_v61 = vunpack.i.l.bf16 %v5703_v17  ;;  %2828 = vmatmul.mubr.f32.gmra.mrb[84].mxu0 %v2620_v36 }
 0x23b   : > { %5546 = vmatpush3.bf16.msra.mxu0 %v5543_v23 }
 0x23c   : > { %v2629_v40 = vsel %vm2386_vm2, %v7710_v52, %v5704_v61  ;;  %v2621_v43 = vsel %vm2386_vm2, %v7603_v16, %v5705_v49  ;;  %5548 = vmatprep.subr.bf16.mxu0 %v5547_v18 }
 0x23d   : > { %v5708_v63 = vpop.permute.xlu0 %5707  ;;  %2832 = vmatprep.mubr.f32.mxu0 %v2629_v40 }
 0x23e   : > { %v5710_v34 = vunpack.i.h.bf16 %v5708_v63  ;;  %v5709_v8 = vunpack.i.l.bf16 %v5708_v63  ;;  %2833 = vmatmul.mubr.f32.gmra.mrb[86].mxu0 %v2621_v43 }
 0x23f   : > { %5550 = vmatpush3.bf16.msra.mxu0 %v5547_v18 }
 0x240   : > { %v2630_v22 = vsel %vm2386_vm2, %v7718_v1, %v5709_v8  ;;  %v2622_v25 = vsel %vm2386_vm2, %v7631_v37, %v5710_v34 }
 0x241   : > { %v5713_v7 = vpop.permute.xlu1 %5712  ;;  %2837 = vmatprep.mubr.f32.mxu0 %v2630_v22 }
 0x242   : > { %v5715_v24 = vunpack.i.h.bf16 %v5713_v7  ;;  %v5714_v30 = vunpack.i.l.bf16 %v5713_v7  ;;  %2838 = vmatmul.mubr.f32.gmra.mrb[88].mxu0 %v2622_v25 }
 0x244   : > { %v2631_v23 = vsel %vm2386_vm2, %v7720_v4, %v5714_v30  ;;  %v2623_v39 = vsel %vm2386_vm2, %v7659_v55, %v5715_v24 }
 0x245   : > { %v5718_v56 = vpop.permute.xlu0 %5717  ;;  %2842 = vmatprep.mubr.f32.mxu0 %v2631_v23 }
 0x246   : > { %v5720_v32 = vunpack.i.h.bf16 %v5718_v56  ;;  %v5719_v45 = vunpack.i.l.bf16 %v5718_v56  ;;  %2843 = vmatmul.mubr.f32.gmra.mrb[90].mxu0 %v2623_v39 }
 0x248   : > { %v2632_v0 = vsel %vm2386_vm2, %v7730_v62, %v5719_v45  ;;  %v2624_v12 = vsel %vm2386_vm2, %v7684_v3, %v5720_v32 }
 0x249   : > { %v5728_v36 = vpop.permute.xlu1 %5727  ;;  %v5723_v18 = vpop.permute.xlu0 %5722  ;;  %2847 = vmatprep.mubr.f32.mxu0 %v2632_v0 }
 0x24a   : > { %v5730_v17 = vunpack.i.h.bf16 %v5728_v36  ;;  %v5729_v49 = vunpack.i.l.bf16 %v5728_v36  ;;  %v5725_v61 = vunpack.i.h.bf16 %v5723_v18  ;;  %v5724_v40 = vunpack.i.l.bf16 %v5723_v18  ;;  %2848 = vmatmul.mubr.f32.gmra.mrb[92].mxu0 %v2624_v12 }
 0x24c   : > { %v2642_v43 = vsel %vm2386_vm2, %v7571_v54, %v5730_v17  ;;  %v2633_v63 = vsel %vm2386_vm2, %v7732_v58, %v5729_v49  ;;  %v2625_v34 = vsel %vm2386_vm2, %v7694_v57, %v5724_v40  ;;  %v2634_v8 = vsel %vm2386_vm2, %v7569_v53, %v5725_v61 }
 0x24d   : > { %v5733_v22 = vpop.permute.xlu1 %5732  ;;  %2922 = vmatprep.mubr.f32.mxu1 %v2642_v43  ;;  %v5738_v25 = vpop.permute.xlu0 %5737  ;;  %2852 = vmatprep.mubr.f32.mxu0 %v2633_v63  ;;  %v3333_v43 = vld [vmem:[%s8398_s8 + $0x88] sm:$0xff] }
 0x24e   : > { %v5735_v7 = vunpack.i.h.bf16 %v5733_v22  ;;  %v5734_v24 = vunpack.i.l.bf16 %v5733_v22  ;;  %v5739_v30 = vunpack.i.l.bf16 %v5738_v25  ;;  %2853 = vmatmul.mubr.f32.gmra.mrb[94].mxu0 %v2625_v34  ;;  %2923 = vmatmul.mubr.f32.vlgmr.msra.gmra.mrb[72].mxu1 %v2634_v8  ;;  %v5740_v39 = vunpack.i.h.bf16 %v5738_v25  ;;  %v3317_v34 = vld [vmem:[%s8398_s8 + $0x8] sm:$0xff]  ;;  %v3335_v8 = vld [vmem:[%s8398_s8 + $0x98] sm:$0xff] }
 0x24f   : > { %5127 = vmatprep.mubr.msk.f32.mxu0 %vm2386_vm2, %v7708_v11 }
 0x250   : > { %v2643_v54 = vsel %vm2386_vm2, %v7603_v16, %v5734_v24  ;;  %v2635_v23 = vsel %vm2386_vm2, %v7601_v26, %v5735_v7  ;;  %v2644_v32 = vsel %vm2386_vm2, %v7631_v37, %v5739_v30  ;;  %v2636_v26 = vsel %vm2386_vm2, %v7629_v33, %v5740_v39  ;;  %v3318_v7 = vld [vmem:[%s8398_s8 + $0x10] sm:$0xff]  ;;  %v3319_v24 = vld [vmem:[%s8398_s8 + $0x18] sm:$0xff]  ;;  %v3336_v30 = vld [vmem:[%s8398_s8 + $0xa0] sm:$0xff] }
 0x251   : > { %v5743_v53 = vpop.permute.xlu1 %5742  ;;  %2927 = vmatprep.mubr.f32.mxu1 %v2643_v54  ;;  %v5748_v45 = vpop.permute.xlu0 %5747  ;;  %v3337_v54 = vld [vmem:[%s8398_s8 + $0xa8] sm:$0xff]  ;;  %v3320_v39 = vld [vmem:[%s8398_s8 + $0x20] sm:$0xff] }
 0x252   : > { %v5744_v56 = vunpack.i.l.bf16 %v5743_v53  ;;  %2928 = vmatmul.mubr.f32.gmra.mrb[74].mxu1 %v2635_v23  ;;  %5128 = vmatmul.mubr.msk.f32.vlgmr.msra.gmra.mrb[96].mxu0 %vm2386_vm2, %v7710_v52  ;;  %v5745_v16 = vunpack.i.h.bf16 %v5743_v53  ;;  %v5749_v11 = vunpack.i.l.bf16 %v5748_v45  ;;  %v5750_v37 = vunpack.i.h.bf16 %v5748_v45  ;;  %v3364_v53 = vld [vmem:[%s8398_s8 + $0x180] sm:$0xff]  ;;  %v3338_v45 = vld [vmem:[%s8398_s8 + $0xb0] sm:$0xff] }
 0x253   : > { %2932 = vmatprep.mubr.f32.mxu1 %v2644_v32  ;;  %5130 = vmatprep.mubr.msk.f32.mxu0 %vm2386_vm2, %v7718_v1  ;;  %v5557_v23 = vpack.c.bf16 %v3319_v24, %v3318_v7  ;;  %v3321_v32 = vld [vmem:[%s8398_s8 + $0x28] sm:$0xff]  ;;  %v3354_v24 = vld [vmem:[%s8398_s8 + $0x130] sm:$0xff] }
 0x254   : > { %v2645_v52 = vsel %vm2386_vm2, %v7659_v55, %v5744_v56  ;;  %v2637_v1 = vsel %vm2386_vm2, %v7657_v29, %v5745_v16  ;;  %v2646_v33 = vsel %vm2386_vm2, %v7684_v3, %v5749_v11  ;;  %v7833_v55 = vld [vmem:[#allocation2 + $0x92] sm:$0xff]  ;;  %v2638_v36 = vsel %vm2386_vm2, %v7682_v9, %v5750_v37  ;;  %v3365_v16 = vld [vmem:[%s8398_s8 + $0x188] sm:$0xff] }
 0x255   : > { %v5753_v0 = vpop.permute.xlu1 %5752  ;;  %v7845_v9 = vld [vmem:[#allocation2 + $0x90] sm:$0xff]  ;;  %v5559_v56 = vpack.c.bf16 %v3337_v54, %v3336_v30  ;;  %v5583_v11 = vpack.c.bf16 %v3365_v16, %v3364_v53  ;;  %v3355_v30 = vld [vmem:[%s8398_s8 + $0x138] sm:$0xff] }
 0x256   : > { %2933 = vmatmul.mubr.f32.gmra.mrb[76].mxu1 %v2636_v26  ;;  %5131 = vmatmul.mubr.msk.f32.gmra.mrb[98].mxu0 %vm2386_vm2, %v7720_v4  ;;  %v5754_v12 = vunpack.i.l.bf16 %v5753_v0  ;;  %v5758_v4 = vpop.permute.xlu0 %5757  ;;  %v3339_v26 = vld [vmem:[%s8398_s8 + $0xb8] sm:$0xff] }
 0x257   : > { %2937 = vmatprep.mubr.f32.mxu1 %v2645_v52  ;;  %5133 = vmatprep.mubr.msk.f32.mxu0 %vm2386_vm2, %v7730_v62  ;;  %v5755_v62 = vunpack.i.h.bf16 %v5753_v0  ;;  %v5759_v29 = vunpack.i.l.bf16 %v5758_v4  ;;  %v3348_v52 = vld [vmem:[%s8398_s8 + $0x100] sm:$0xff]  ;;  %v3349_v0 = vld [vmem:[%s8398_s8 + $0x108] sm:$0xff]  ;;  %v3327_v53 = vld [vmem:[%s8398_s8 + $0x58] sm:$0xff] }
 0x258   : > { %v2647_v18 = vsel %vm2386_vm2, %v7694_v57, %v5754_v12  ;;  %v5585_v37 = vpack.c.bf16 %v3349_v0, %v3348_v52  ;;  %v3367_v12 = vld [vmem:[%s8398_s8 + $0x198] sm:$0xff]  ;;  %5584 = vmatprep.subr.bf16.mxu0 %v5583_v11  ;;  %v3328_v11 = vld [vmem:[%s8398_s8 + $0x60] sm:$0xff]  ;;  %v3329_v52 = vld [vmem:[%s8398_s8 + $0x68] sm:$0xff] }
 0x259   : > { %v5763_v3 = vpop.permute.xlu1 %5762  ;;  %v2648_v49 = vsel %vm2386_vm2, %v7701_v48, %v5759_v29  ;;  %v3332_v48 = vld [vmem:[%s8398_s8 + $0x80] sm:$0xff]  ;;  %v5563_v29 = vpack.c.bf16 %v3339_v26, %v3338_v45  ;;  %v3345_v45 = vld [vmem:[%s8398_s8 + $0xe8] sm:$0xff]  ;;  %v5577_v0 = vpack.c.bf16 %v3329_v52, %v3328_v11 }
 0x25a   : > { %2938 = vmatmul.mubr.f32.gmra.mrb[78].mxu1 %v2637_v1  ;;  %5134 = vmatmul.mubr.msk.f32.gmra.mrb[100].mxu0 %vm2386_vm2, %v7732_v58  ;;  %v5760_v58 = vunpack.i.h.bf16 %v5758_v4  ;;  %v5764_v17 = vunpack.i.l.bf16 %v5763_v3  ;;  %v5765_v61 = vunpack.i.h.bf16 %v5763_v3  ;;  %v5551_v63 = vpack.c.bf16 %v3333_v43, %v3332_v48  ;;  %v3366_v1 = vld [vmem:[%s8398_s8 + $0x190] sm:$0xff]  ;;  %v3340_v3 = vld [vmem:[%s8398_s8 + $0xc0] sm:$0xff] }
 0x25b   : > { %2942 = vmatprep.mubr.f32.mxu1 %v2646_v33  ;;  %5136 = vmatprep.mubr.msk.f32.mxu0 %vm2386_vm2, %v7738_v27  ;;  %v2639_v27 = vsel %vm2386_vm2, %v7692_v5, %v5755_v62  ;;  %v5561_v33 = vpack.c.bf16 %v3321_v32, %v3320_v39  ;;  %v3322_v4 = vld [vmem:[%s8398_s8 + $0x30] sm:$0xff]  ;;  %v5587_v62 = vpack.c.bf16 %v3367_v12, %v3366_v1  ;;  %v3324_v43 = vld [vmem:[%s8398_s8 + $0x40] sm:$0xff] }
 0x25c   : > { %v2640_v57 = vsel %vm2386_vm2, %v7698_v2, %v5760_v58  ;;  %v2649_v40 = vsel %vm2386_vm2, %v7845_v9, %v5764_v17  ;;  %v2641_v5 = vsel %vm2386_vm2, %v7726_v28, %v5765_v61  ;;  %v3316_v2 = vld [vmem:[%s8398_s8] sm:$0xff]  ;;  %v3334_v28 = vld [vmem:[%s8398_s8 + $0x90] sm:$0xff]  ;;  %5552 = vmatprep.subr.bf16.mxu1 %v5551_v63  ;;  %5586 = vmatpush3.bf16.msra.mxu0 %v5585_v37  ;;  %v3351_v58 = vld [vmem:[%s8398_s8 + $0x118] sm:$0xff] }
 0x25d   : > { %v5553_v22 = vpack.c.bf16 %v3317_v34, %v3316_v2  ;;  %v5555_v25 = vpack.c.bf16 %v3335_v8, %v3334_v28  ;;  %5588 = vmatprep.subr.bf16.mxu0 %v5587_v62  ;;  %v3369_v61 = vld [vmem:[%s8398_s8 + $0x1a8] sm:$0xff]  ;;  %v3370_v2 = vld [vmem:[%s8398_s8 + $0x1b0] sm:$0xff]  ;;  %v3344_v32 = vld [vmem:[%s8398_s8 + $0xe0] sm:$0xff] }
 0x25e   : > { %2943 = vmatmul.mubr.f32.gmra.mrb[80].mxu1 %v2638_v36  ;;  %5137 = vmatmul.mubr.msk.f32.gmra.mrb[102].mxu0 %vm2386_vm2, %v7833_v55  ;;  %v3350_v36 = vld [vmem:[%s8398_s8 + $0x110] sm:$0xff]  ;;  %v3325_v34 = vld [vmem:[%s8398_s8 + $0x48] sm:$0xff]  ;;  %v5575_v26 = vpack.c.bf16 %v3345_v45, %v3344_v32  ;;  %v3347_v32 = vld [vmem:[%s8398_s8 + $0xf8] sm:$0xff] }
 0x25f   : > { %2947 = vmatprep.mubr.f32.mxu1 %v2647_v18  ;;  %5554 = vmatpush3.bf16.msra.mxu1 %v5553_v22  ;;  %v3323_v18 = vld [vmem:[%s8398_s8 + $0x38] sm:$0xff]  ;;  %v5589_v17 = vpack.c.bf16 %v3351_v58, %v3350_v36  ;;  %v3342_v28 = vld [vmem:[%s8398_s8 + $0xd0] sm:$0xff]  ;;  %v5569_v54 = vpack.c.bf16 %v3325_v34, %v3324_v43  ;;  %v3372_v45 = vld [vmem:[%s8398_s8 + $0x1c0] sm:$0xff] }
 0x260   : > { %5556 = vmatprep.subr.bf16.mxu1 %v5555_v25  ;;  %v5565_v48 = vpack.c.bf16 %v3323_v18, %v3322_v4  ;;  %v3371_v22 = vld [vmem:[%s8398_s8 + $0x1b8] sm:$0xff]  ;;  %v3326_v39 = vld [vmem:[%s8398_s8 + $0x50] sm:$0xff] }
 0x261   : > { %5590 = vmatpush3.bf16.msra.mxu0 %v5589_v17  ;;  %v3343_v25 = vld [vmem:[%s8398_s8 + $0xd8] sm:$0xff]  ;;  %v5595_v7 = vpack.c.bf16 %v3371_v22, %v3370_v2  ;;  %v5573_v16 = vpack.c.bf16 %v3327_v53, %v3326_v39 }
 0x262   : > { %2948 = vmatmul.mubr.f32.gmra.mrb[82].mxu1 %v2639_v27  ;;  %v3341_v27 = vld [vmem:[%s8398_s8 + $0xc8] sm:$0xff] }
 0x263   : > { %2952 = vmatprep.mubr.f32.mxu1 %v2648_v49  ;;  %5558 = vmatpush3.bf16.msra.mxu1 %v5557_v23  ;;  %v3368_v49 = vld [vmem:[%s8398_s8 + $0x1a0] sm:$0xff]  ;;  %v5567_v63 = vpack.c.bf16 %v3341_v27, %v3340_v3  ;;  %v5571_v23 = vpack.c.bf16 %v3343_v25, %v3342_v28 }
 0x264   : > { %5560 = vmatprep.subr.bf16.mxu1 %v5559_v56  ;;  %v5597_v56 = vpack.c.bf16 %v3355_v30, %v3354_v24 }
 0x266   : > { %2953 = vmatmul.mubr.f32.gmra.mrb[84].mxu1 %v2640_v57  ;;  %v5591_v57 = vpack.c.bf16 %v3369_v61, %v3368_v49 }
 0x267   : > { %2957 = vmatprep.mubr.f32.mxu1 %v2649_v40  ;;  %v3352_v40 = vld [vmem:[%s8398_s8 + $0x120] sm:$0xff]  ;;  %5562 = vmatpush3.bf16.msra.mxu1 %v5561_v33 }
 0x268   : > { %5564 = vmatprep.subr.bf16.mxu1 %v5563_v29  ;;  %5592 = vmatprep.subr.bf16.mxu0 %v5591_v57 }
 0x26a   : > { %2958 = vmatmul.mubr.f32.gmra.mrb[86].mxu1 %v2641_v5  ;;  %v3353_v5 = vld [vmem:[%s8398_s8 + $0x128] sm:$0xff] }
 0x26b   : > { %v5593_v8 = vpack.c.bf16 %v3353_v5, %v3352_v40  ;;  %5566 = vmatpush3.bf16.msra.mxu1 %v5565_v48 }
 0x26c   : > { %5568 = vmatprep.subr.bf16.mxu1 %v5567_v63  ;;  %v7996_v63 = vld [vmem:[%s8397_s7] ss:$0 sm:$0xff] }
 0x26d   : > { %5594 = vmatpush3.bf16.msra.mxu0 %v5593_v8 }
 0x26e   : > { %5596 = vmatprep.subr.bf16.mxu0 %v5595_v7 }
 0x26f   : > { %5570 = vmatpush3.bf16.msra.mxu1 %v5569_v54 }
 0x270   : > { %5572 = vmatprep.subr.bf16.mxu1 %v5571_v23 }
 0x271   : > { %5598 = vmatpush3.bf16.msra.mxu0 %v5597_v56  ;;  %v3346_v56 = vld [vmem:[%s8398_s8 + $0xf0] sm:$0xff] }
 0x272   : > { %v5579_v52 = vpack.c.bf16 %v3347_v32, %v3346_v56 }
 0x273   : > { %5574 = vmatpush3.bf16.msra.mxu1 %v5573_v16 }
 0x274   : > { %5576 = vmatprep.subr.bf16.mxu1 %v5575_v26 }
 0x277   : > { %5578 = vmatpush3.bf16.msra.mxu1 %v5577_v0  ;;  %v3373_v0 = vld [vmem:[%s8398_s8 + $0x1c8] sm:$0xff] }
 0x278   : > { %5580 = vmatprep.subr.bf16.mxu1 %v5579_v52 }
 0x305   : > { %v4857_v37 = vpop.f32.mrb[80].mxu0 }
 0x306   : > { %v4858_v1 = vpop.f32.mrb[81].mxu0 }
 0x307   : > { %v4859_v12 = vadd.f32 %v4858_v1, %v4857_v37  ;;  %v3330_v37 = vld [vmem:[%s8398_s8 + $0x70] sm:$0xff]  ;;  %v3331_v1 = vld [vmem:[%s8398_s8 + $0x78] sm:$0xff] }
 0x309   : > { %v4860_v33 = vpop.f32.mrb[82].mxu0  ;;  %v2820_v25 = vadd.f32 %v4859_v12, %v7996_v63  ;;  %v5599_v12 = vpack.c.bf16 %v3373_v0, %v3372_v45 }
 0x30a   : > { %v4861_v4 = vpop.f32.mrb[83].mxu0 }
 0x30b   : > { %v4862_v62 = vadd.f32 %v4861_v4, %v4860_v33  ;;  %v5581_v33 = vpack.c.bf16 %v3331_v1, %v3330_v37  ;;  %v3356_v4 = vld [vmem:[%s8398_s8 + $0x140] sm:$0xff]  ;;  %5600 = vmatprep.subr.bf16.mxu0 %v5599_v12  ;;  %v3361_v1 = vld [vmem:[%s8398_s8 + $0x168] sm:$0xff] }
 0x30d   : > { %v4863_v36 = vpop.f32.mrb[84].mxu0  ;;  %v2825_v16 = vadd.f32 %v4862_v62, %v7996_v63  ;;  %v3357_v62 = vld [vmem:[%s8398_s8 + $0x148] sm:$0xff]  ;;  %5582 = vmatpush3.bf16.msra.mxu1 %v5581_v33 }
 0x30e   : > { %v4864_v29 = vpop.f32.mrb[85].mxu0 }
 0x30f   : > { %v4865_v18 = vadd.f32 %v4864_v29, %v4863_v36 }
 0x311   : > { %v4866_v3 = vpop.f32.mrb[86].mxu0 }
 0x312   : > { %v4867_v58 = vpop.f32.mrb[87].mxu0 }
 0x313   : > { %v7985_v27 = vadd.f32 %v4867_v58, %v4866_v3 }
 0x315   : > { %v4869_v17 = vpop.f32.mrb[88].mxu0  ;;  %v2835_v32 = vadd.f32 %v7985_v27, %v7996_v63  ;;  %v3360_v27 = vld [vmem:[%s8398_s8 + $0x160] sm:$0xff] }
 0x316   : > { %v4870_v49 = vpop.f32.mrb[89].mxu0  ;;  %v5609_v12 = vpack.c.bf16 %v3361_v1, %v3360_v27 }
 0x317   : > { %v7987_v61 = vadd.f32 %v4870_v49, %v4869_v17  ;;  %v5601_v17 = vpack.c.bf16 %v3357_v62, %v3356_v4 }
 0x319   : > { %v4872_v57 = vpop.f32.mrb[90].mxu0  ;;  %5602 = vmatpush3.bf16.msra.mxu0 %v5601_v17 }
 0x31a   : > { %v4873_v40 = vpop.f32.mrb[91].mxu0 }
 0x31b   : > { %v7989_v5 = vadd.f32 %v4873_v40, %v4872_v57  ;;  %v3374_v40 = vld [vmem:[%s8398_s8 + $0x1d0] sm:$0xff] }
 0x31d   : > { %v4875_v48 = vpop.f32.mrb[92].mxu0 }
 0x31e   : > { %v4876_v43 = vpop.f32.mrb[93].mxu0 }
 0x31f   : > { %v7991_v2 = vadd.f32 %v4876_v43, %v4875_v48  ;;  %v3375_v48 = vld [vmem:[%s8398_s8 + $0x1d8] sm:$0xff]  ;;  %v2830_v43 = vadd.f32 %v4865_v18, %v7996_v63  ;;  %v3381_v18 = vld [vmem:[%s8398_s8 + $0x208] sm:$0xff] }
 0x321   : > { %v4878_v34 = vpop.f32.mrb[94].mxu0  ;;  %v4913_v28 = vpop.f32.mrb[72].mxu1 }
 0x322   : > { %v4879_v8 = vpop.f32.mrb[95].mxu0  ;;  %v4914_v22 = vpop.f32.mrb[73].mxu1 }
 0x323   : > { %v7999_v7 = vadd.f32 %v4879_v8, %v4878_v34  ;;  %v4915_v24 = vadd.f32 %v4914_v22, %v4913_v28  ;;  %v5603_v8 = vpack.c.bf16 %v3375_v48, %v3374_v40  ;;  %v3358_v22 = vld [vmem:[%s8398_s8 + $0x150] sm:$0xff] }
 0x325   : > { %v4916_v30 = vpop.f32.mrb[74].mxu1  ;;  %v5129_v54 = vpop.f32.mrb[96].mxu0  ;;  %v2925_v23 = vadd.f32 %v4915_v24, %v2820_v25  ;;  %v3359_v25 = vld [vmem:[%s8398_s8 + $0x158] sm:$0xff]  ;;  %v3380_v24 = vld [vmem:[%s8398_s8 + $0x200] sm:$0xff]  ;;  %5604 = vmatprep.subr.bf16.mxu0 %v5603_v8 }
 0x326   : > { %v4917_v39 = vpop.f32.mrb[75].mxu1  ;;  %v3029_v53 = vpop.f32.mrb[97].mxu0  ;;  %v8046_v56 = vpack.c.bf16 %v3381_v18, %v3380_v24 }
 0x327   : > { %v4918_v26 = vadd.f32 %v4917_v39, %v4916_v30  ;;  %v3030_v11 = vadd.f32 %v3029_v53, %v2925_v23  ;;  %v5605_v30 = vpack.c.bf16 %v3359_v25, %v3358_v22 }
 0x328   : > { %5616 = vmatprep.subr.bf16.mxu1 %v8046_v56 }
 0x329   : > { %v2930_v36 = vadd.f32 %v4918_v26, %v2825_v16  ;;  %v3068_v29 = vmax.f32 %v3030_v11, 0.0  ;;  %v4919_v3 = vpop.f32.mrb[76].mxu1  ;;  %v5132_v58 = vpop.f32.mrb[98].mxu0  ;;  %v3376_v26 = vld [vmem:[%s8398_s8 + $0x1e0] sm:$0xff]  ;;  %v3377_v11 = vld [vmem:[%s8398_s8 + $0x1e8] sm:$0xff]  ;;  %5606 = vmatpush3.bf16.msra.mxu0 %v5605_v30 }
 0x32a   : > { %v4920_v49 = vpop.f32.mrb[77].mxu1  ;;  %v3039_v57 = vpop.f32.mrb[99].mxu0  ;;  %v5607_v37 = vpack.c.bf16 %v3377_v11, %v3376_v26 }
 0x32b   : > { %v3035_v34 = vadd.f32 %v5129_v54, %v2930_v36  ;;  %3076 = vst.msk [vmem:[#allocation2 + $0x11] sm:$0xff] %vm2386_vm2, %v3068_v29  ;;  %v4921_v28 = vadd.f32 %v4920_v49, %v4919_v3  ;;  %v2840_v49 = vadd.f32 %v7987_v61, %v7996_v63  ;;  %v3362_v61 = vld [vmem:[%s8398_s8 + $0x170] sm:$0xff] }
 0x32c   : > { %5608 = vmatprep.subr.bf16.mxu0 %v5607_v37 }
 0x32d   : > { %v3069_v54 = vmax.f32 %v3035_v34, 0.0  ;;  %v2935_v23 = vadd.f32 %v4921_v28, %v2830_v43  ;;  %v4922_v39 = vpop.f32.mrb[78].mxu1  ;;  %v5135_v53 = vpop.f32.mrb[100].mxu0  ;;  %5610 = vmatpush3.bf16.msra.mxu0 %v5609_v12  ;;  %v3378_v43 = vld [vmem:[%s8398_s8 + $0x1f0] sm:$0xff]  ;;  %v3379_v34 = vld [vmem:[%s8398_s8 + $0x1f8] sm:$0xff] }
 0x32e   : > { %v4923_v45 = vpop.f32.mrb[79].mxu1  ;;  %v3049_v16 = vpop.f32.mrb[101].mxu0  ;;  %v5611_v28 = vpack.c.bf16 %v3379_v34, %v3378_v43 }
 0x32f   : > { %3077 = vst.msk [vmem:[#allocation2 + $0x21] sm:$0xff] %vm2386_vm2, %v3069_v54  ;;  %v3040_v52 = vadd.f32 %v3039_v57, %v2935_v23  ;;  %v4924_v0 = vadd.f32 %v4923_v45, %v4922_v39  ;;  %v2845_v54 = vadd.f32 %v7989_v5, %v7996_v63  ;;  %v2850_v5 = vadd.f32 %v7991_v2, %v7996_v63 }
 0x330   : > { %5612 = vmatprep.subr.bf16.mxu0 %v5611_v28 }
 0x331   : > { %v3070_v33 = vmax.f32 %v3040_v52, 0.0  ;;  %v2940_v4 = vadd.f32 %v4924_v0, %v2835_v32  ;;  %v4925_v62 = vpop.f32.mrb[80].mxu1  ;;  %v8064_v36 = vpop.f32.mrb[102].mxu0 }
 0x332   : > { %v4926_v29 = vpop.f32.mrb[81].mxu1  ;;  %v8066_v3 = vld [vmem:[#allocation2 + $0x10] sm:$0xff]  ;;  %v3059_v17 = vpop.f32.mrb[103].mxu0 }
 0x333   : > { %3078 = vst.msk [vmem:[#allocation2 + $0x31] sm:$0xff] %vm2386_vm2, %v3070_v33  ;;  %v3045_v57 = vadd.f32 %v5132_v58, %v2940_v4  ;;  %v4927_v40 = vadd.f32 %v4926_v29, %v4925_v62  ;;  %v5766_v48 = vpack.i.bf16 %v7535_v14, %v8066_v3  ;;  %v3363_v58 = vld [vmem:[%s8398_s8 + $0x178] sm:$0xff]  ;;  %v2855_v29 = vadd.f32 %v7999_v7, %v7996_v63 }
 0x334   : > { %v5613_v25 = vpack.c.bf16 %v3363_v58, %v3362_v61  ;;  %v8086_v18 = vld [vmem:[#allocation2 + $0x11] sm:$0xff] }
 0x335   : > { %v3071_v8 = vmax.f32 %v3045_v57, 0.0  ;;  %v2945_v14 = vadd.f32 %v4927_v40, %v2840_v49  ;;  %v4928_v22 = vpop.f32.mrb[82].mxu1  ;;  %5767 = vrot.lane.b32.xlu0 %v5766_v48, %s5931_s0  ;;  %v8112_v2 = vld [vmem:[#allocation2 + $0x12] sm:$0xff] }
 0x336   : > { %v4929_v24 = vpop.f32.mrb[83].mxu1  ;;  %v8088_v30 = vld [vmem:[#allocation2 + $0x20] sm:$0xff]  ;;  %5614 = vmatpush3.bf16.msra.mxu0 %v5613_v25 }
 0x337   : > { %3079 = vst.msk [vmem:[#allocation2 + $0x41] sm:$0xff] %vm2386_vm2, %v3071_v8  ;;  %v3050_v23 = vadd.f32 %v3049_v16, %v2945_v14  ;;  %v4930_v39 = vadd.f32 %v4929_v24, %v4928_v22  ;;  %v5771_v32 = vpack.i.bf16 %v8086_v18, %v8088_v30  ;;  %v8096_v0 = vld [vmem:[#allocation2 + $0x21] sm:$0xff] }
 0x338   : > { %v8125_v7 = vld [vmem:[#allocation2 + $0x22] sm:$0xff] }
 0x339   : > { %v3072_v45 = vmax.f32 %v3050_v23, 0.0  ;;  %v2950_v26 = vadd.f32 %v4930_v39, %v2845_v54  ;;  %v4931_v11 = vpop.f32.mrb[84].mxu1  ;;  %5772 = vrot.lane.b32.xlu1 %v5771_v32, %s5931_s0 }
 0x33a   : > { %v4932_v52 = vpop.f32.mrb[85].mxu1  ;;  %v8098_v37 = vld [vmem:[#allocation2 + $0x30] sm:$0xff] }
 0x33b   : > { %3080 = vst.msk [vmem:[#allocation2 + $0x51] sm:$0xff] %vm2386_vm2, %v3072_v45  ;;  %v3055_v16 = vadd.f32 %v5135_v53, %v2950_v26  ;;  %v4933_v27 = vadd.f32 %v4932_v52, %v4931_v11  ;;  %v5776_v1 = vpack.i.bf16 %v8096_v0, %v8098_v37  ;;  %v8105_v12 = vld [vmem:[#allocation2 + $0x31] sm:$0xff] }
 0x33c   : > { %v5786_v43 = vpack.i.bf16 %v8112_v2, %v8105_v12  ;;  %v8139_v24 = vld [vmem:[#allocation2 + $0x32] sm:$0xff] }
 0x33d   : > { %v3073_v33 = vmax.f32 %v3055_v16, 0.0  ;;  %v4934_v4 = vpop.f32.mrb[86].mxu1  ;;  %5777 = vrot.lane.b32.xlu0 %v5776_v1, %s5931_s0  ;;  %v2955_v62 = vadd.f32 %v4933_v27, %v2850_v5 }
 0x33e   : > { %v4935_v49 = vpop.f32.mrb[87].mxu1  ;;  %v8110_v57 = vld [vmem:[#allocation2 + $0x40] sm:$0xff] }
 0x33f   : > { %3081 = vst.msk [vmem:[#allocation2 + $0x61] sm:$0xff] %vm2386_vm2, %v3073_v33  ;;  %v4936_v53 = vadd.f32 %v4935_v49, %v4934_v4  ;;  %v3060_v40 = vadd.f32 %v3059_v17, %v2955_v62  ;;  %v5781_v48 = vpack.i.bf16 %v8096_v0, %v8110_v57  ;;  %v8119_v34 = vld [vmem:[#allocation2 + $0x41] sm:$0xff] }
 0x340   : > { %v5791_v8 = vpack.i.bf16 %v8125_v7, %v8119_v34  ;;  %v8152_v32 = vld [vmem:[#allocation2 + $0x42] sm:$0xff] }
 0x341   : > { %v2960_v61 = vadd.f32 %v4936_v53, %v2855_v29  ;;  %v3074_v28 = vmax.f32 %v3060_v40, 0.0  ;;  %5782 = vrot.lane.b32.xlu1 %v5781_v48, %s5931_s0  ;;  %5787 = vrot.lane.b32.xlu0 %v5786_v43, %s5931_s0  ;;  %v3382_v48 = vld [vmem:[%s8398_s8 + $0x210] sm:$0xff]  ;;  %v3383_v43 = vld [vmem:[%s8398_s8 + $0x218] sm:$0xff] }
 0x342   : > { %v8123_v63 = vld [vmem:[#allocation2 + $0x50] sm:$0xff] }
 0x343   : > { %v3065_v17 = vadd.f32 %v8064_v36, %v2960_v61  ;;  %3082 = vst.msk [vmem:[#allocation2 + $0x71] sm:$0xff] %vm2386_vm2, %v3074_v28  ;;  %v5796_v58 = vpack.i.bf16 %v8105_v12, %v8123_v63  ;;  %v8133_v14 = vld [vmem:[#allocation2 + $0x51] sm:$0xff] }
 0x344   : > { %v5806_v54 = vpack.i.bf16 %v8139_v24, %v8133_v14  ;;  %v8164_v5 = vld [vmem:[#allocation2 + $0x52] sm:$0xff] }
 0x345   : > { %v3075_v22 = vmax.f32 %v3065_v17, 0.0  ;;  %5797 = vrot.lane.b32.xlu1 %v5796_v58, %s5931_s0  ;;  %5792 = vrot.lane.b32.xlu0 %v5791_v8, %s5931_s0 }
 0x346   : > { %v8137_v25 = vld [vmem:[#allocation2 + $0x60] sm:$0xff] }
 0x347   : > { %3083 = vst.msk [vmem:[#allocation2 + $0x81] sm:$0xff] %vm2386_vm2, %v3075_v22  ;;  %v5801_v36 = vpack.i.bf16 %v8119_v34, %v8137_v25  ;;  %v8146_v23 = vld [vmem:[#allocation2 + $0x61] sm:$0xff] }
 0x348   : > { %v5811_v26 = vpack.i.bf16 %v8152_v32, %v8146_v23  ;;  %v8174_v33 = vld [vmem:[#allocation2 + $0x62] sm:$0xff] }
 0x349   : > { %5802 = vrot.lane.b32.xlu1 %v5801_v36, %s5931_s0  ;;  %5807 = vrot.lane.b32.xlu0 %v5806_v54, %s5931_s0  ;;  %v3384_v22 = vld [vmem:[%s8398_s8 + $0x220] sm:$0xff]  ;;  %v3385_v36 = vld [vmem:[%s8398_s8 + $0x228] sm:$0xff] }
 0x34a   : > { %v8150_v39 = vld [vmem:[#allocation2 + $0x70] sm:$0xff] }
 0x34b   : > { %v5816_v45 = vpack.i.bf16 %v8133_v14, %v8150_v39  ;;  %v8158_v11 = vld [vmem:[#allocation2 + $0x71] sm:$0xff] }
 0x34c   : > { %v5826_v27 = vpack.i.bf16 %v8164_v5, %v8158_v11  ;;  %v8176_v4 = vld [vmem:[#allocation2 + $0x72] sm:$0xff]  ;;  %v5831_v62 = vpack.i.bf16 %v8174_v33, %v8158_v11 }
 0x34d   : > { %5817 = vrot.lane.b32.xlu1 %v5816_v45, %s5931_s0  ;;  %5812 = vrot.lane.b32.xlu0 %v5811_v26, %s5931_s0  ;;  %v5623_v26 = vpack.c.bf16 %v3385_v36, %v3384_v22 }
 0x34e   : > { %v8162_v52 = vld [vmem:[#allocation2 + $0x80] sm:$0xff] }
 0x34f   : > { %v5821_v16 = vpack.i.bf16 %v8146_v23, %v8162_v52  ;;  %v8170_v1 = vld [vmem:[#allocation2 + $0x81] sm:$0xff] }
 0x350   : > { %v5836_v29 = vpack.i.bf16 %v8176_v4, %v8170_v1  ;;  %v8182_v49 = vld [vmem:[#allocation2 + $0x82] sm:$0xff] }
 0x351   : > { %5822 = vrot.lane.b32.xlu1 %v5821_v16, %s5931_s0  ;;  %5827 = vrot.lane.b32.xlu0 %v5826_v27, %s5931_s0  ;;  %v5841_v53 = vpack.i.bf16 %v8182_v49, %v7740_v41  ;;  %v5619_v41 = vpack.c.bf16 %v3383_v43, %v3382_v48  ;;  %v3386_v27 = vld [vmem:[%s8398_s8 + $0x230] sm:$0xff] }
 0x355   : > { %5832 = vrot.lane.b32.xlu1 %v5831_v62, %s5931_s0  ;;  %5837 = vrot.lane.b32.xlu0 %v5836_v29, %s5931_s0  ;;  %v3387_v62 = vld [vmem:[%s8398_s8 + $0x238] sm:$0xff] }
 0x359   : > { %5842 = vrot.lane.b32.xlu1 %v5841_v53, %s5931_s0  ;;  %v5627_v53 = vpack.c.bf16 %v3387_v62, %v3386_v27  ;;  %s8307_s0 = scalar_lea.vmem [#allocation6], %s3864_s26 }
 0x35a   : > { %s3772_s12 = sshll.u32 %s8307_s0, 4  ;;  %s8341_s12 = int_to_ptr.vmem [resolvable:$true] %s3772_s12 }
 0x35b   : > { %s5861_s30 = scalar_lea.vmem %s8341_s12, 1024  ;;  %p5868_p0 = scmp.lt.s32.totalorder %s8341_s12, %s5866_s20 }
 0x35c   : > { %p5862_p11 = scmp.ne.s32.totalorder %s8341_s12, %s5861_s30  ;;  %p5869_p1 = scmp.lt.s32.totalorder %s5867_s25, %s5861_s30 }
 0x35e   : > { %p5863_p12 = pnand %p5862_p11, %p6028_p5  ;;  %p5870_p2 = por %p5869_p1, %p5868_p0 }
 0x360   : > { %p5864_p13 = pneg %p5863_p12 }
 0x362   : > { %p5871_p3 = pnand %p5870_p2, %p5864_p13 }
 0x3a7   : > { %v5768_v40 = vpop.permute.xlu0 %5767 }
 0x3a8   : > { %v5770_v61 = vunpack.i.h.bf16 %v5768_v40  ;;  %v5769_v28 = vunpack.i.l.bf16 %v5768_v40 }
 0x3aa   : > { %v3292_v17 = vsel %vm2386_vm2, %v7747_v51, %v5769_v28  ;;  %v3284_v58 = vsel %vm2386_vm2, %v7749_v47, %v5770_v61 }
 0x3ab   : > { %3483 = vmatprep.mubr.f32.mxu1 %v3292_v17  ;;  %v5773_v8 = vpop.permute.xlu1 %5772 }
 0x3ac   : > { %v5775_v54 = vunpack.i.h.bf16 %v5773_v8  ;;  %v5774_v45 = vunpack.i.l.bf16 %v5773_v8  ;;  %3484 = vmatmul.mubr.f32.vlgmr.msra.gmra.mrb[88].mxu1 %v3284_v58 }
 0x3ad   : > { %5618 = vmatpush3.bf16.msra.mxu1 %v8046_v56 }
 0x3ae   : > { %v3293_v51 = vsel %vm2386_vm2, %v8112_v2, %v5774_v45  ;;  %v3285_v47 = vsel %vm2386_vm2, %v8066_v3, %v5775_v54  ;;  %5620 = vmatprep.subr.bf16.mxu1 %v5619_v41 }
 0x3af   : > { %3488 = vmatprep.mubr.f32.mxu1 %v3293_v51  ;;  %v5778_v16 = vpop.permute.xlu0 %5777 }
 0x3b0   : > { %v5780_v29 = vunpack.i.h.bf16 %v5778_v16  ;;  %v5779_v56 = vunpack.i.l.bf16 %v5778_v16  ;;  %3489 = vmatmul.mubr.f32.gmra.mrb[90].mxu1 %v3285_v47 }
 0x3b1   : > { %5622 = vmatpush3.bf16.msra.mxu1 %v5619_v41 }
 0x3b2   : > { %v3294_v2 = vsel %vm2386_vm2, %v8125_v7, %v5779_v56  ;;  %v3286_v3 = vsel %vm2386_vm2, %v8088_v30, %v5780_v29  ;;  %5624 = vmatprep.subr.bf16.mxu1 %v5623_v26 }
 0x3b3   : > { %v5783_v40 = vpop.permute.xlu1 %5782  ;;  %v5788_v48 = vpop.permute.xlu0 %5787  ;;  %3493 = vmatprep.mubr.f32.mxu1 %v3294_v2 }
 0x3b4   : > { %v5785_v43 = vunpack.i.h.bf16 %v5783_v40  ;;  %v5784_v61 = vunpack.i.l.bf16 %v5783_v40  ;;  %v5790_v28 = vunpack.i.h.bf16 %v5788_v48  ;;  %v5789_v17 = vunpack.i.l.bf16 %v5788_v48  ;;  %3494 = vmatmul.mubr.f32.gmra.mrb[92].mxu1 %v3286_v3 }
 0x3b5   : > { %5626 = vmatpush3.bf16.msra.mxu1 %v5623_v26 }
 0x3b6   : > { %v3308_v58 = vsel %vm2386_vm2, %v8088_v30, %v5785_v43  ;;  %v3295_v41 = vsel %vm2386_vm2, %v8139_v24, %v5784_v61  ;;  %v3287_v8 = vsel %vm2386_vm2, %v8098_v37, %v5789_v17  ;;  %v3300_v22 = vsel %vm2386_vm2, %v8086_v18, %v5790_v28  ;;  %5628 = vmatprep.subr.bf16.mxu1 %v5627_v53 }
 0x3b7   : > { %v5798_v36 = vpop.permute.xlu1 %5797  ;;  %3588 = vmatprep.mubr.f32.mxu0 %v3308_v58  ;;  %v5793_v54 = vpop.permute.xlu0 %5792  ;;  %3498 = vmatprep.mubr.f32.mxu1 %v3295_v41 }
 0x3b8   : > { %v5800_v45 = vunpack.i.h.bf16 %v5798_v36  ;;  %v5799_v51 = vunpack.i.l.bf16 %v5798_v36  ;;  %v5795_v47 = vunpack.i.h.bf16 %v5793_v54  ;;  %v5794_v26 = vunpack.i.l.bf16 %v5793_v54  ;;  %3499 = vmatmul.mubr.f32.gmra.mrb[94].mxu1 %v3287_v8  ;;  %3589 = vmatmul.mubr.f32.vlgmr.msra.gmra.mrb[104].mxu0 %v3300_v22 }
 0x3b9   : > { %5630 = vmatpush3.bf16.msra.mxu1 %v5627_v53 }
 0x3ba   : > { %v3296_v30 = vsel %vm2386_vm2, %v8152_v32, %v5799_v51  ;;  %v3309_v16 = vsel %vm2386_vm2, %v8098_v37, %v5800_v45  ;;  %v3288_v18 = vsel %vm2386_vm2, %v8110_v57, %v5794_v26  ;;  %v3301_v27 = vsel %vm2386_vm2, %v8096_v0, %v5795_v47 }
 0x3bb   : > { %v5803_v62 = vpop.permute.xlu1 %5802  ;;  %v5808_v29 = vpop.permute.xlu0 %5807  ;;  %3503 = vmatprep.mubr.f32.mxu1 %v3296_v30  ;;  %3593 = vmatprep.mubr.f32.mxu0 %v3309_v16 }
 0x3bc   : > { %v5805_v56 = vunpack.i.h.bf16 %v5803_v62  ;;  %v5804_v2 = vunpack.i.l.bf16 %v5803_v62  ;;  %v5810_v3 = vunpack.i.h.bf16 %v5808_v29  ;;  %v5809_v53 = vunpack.i.l.bf16 %v5808_v29  ;;  %3504 = vmatmul.mubr.f32.gmra.mrb[96].mxu1 %v3288_v18  ;;  %3594 = vmatmul.mubr.f32.gmra.mrb[106].mxu0 %v3301_v27 }
 0x3be   : > { %v3297_v40 = vsel %vm2386_vm2, %v8164_v5, %v5804_v2  ;;  %v3310_v37 = vsel %vm2386_vm2, %v8110_v57, %v5805_v56  ;;  %v3289_v48 = vsel %vm2386_vm2, %v8123_v63, %v5809_v53  ;;  %v3302_v0 = vsel %vm2386_vm2, %v8105_v12, %v5810_v3 }
 0x3bf   : > { %v5818_v43 = vpop.permute.xlu1 %5817  ;;  %v5813_v61 = vpop.permute.xlu0 %5812  ;;  %3508 = vmatprep.mubr.f32.mxu1 %v3297_v40  ;;  %3598 = vmatprep.mubr.f32.mxu0 %v3310_v37 }
 0x3c0   : > { %v5820_v28 = vunpack.i.h.bf16 %v5818_v43  ;;  %v5819_v17 = vunpack.i.l.bf16 %v5818_v43  ;;  %v5815_v58 = vunpack.i.h.bf16 %v5813_v61  ;;  %v5814_v41 = vunpack.i.l.bf16 %v5813_v61  ;;  %3509 = vmatmul.mubr.f32.gmra.mrb[98].mxu1 %v3289_v48  ;;  %3599 = vmatmul.mubr.f32.gmra.mrb[108].mxu0 %v3302_v0 }
 0x3c2   : > { %v3298_v8 = vsel %vm2386_vm2, %v8174_v33, %v5819_v17  ;;  %v3311_v57 = vsel %vm2386_vm2, %v8123_v63, %v5820_v28  ;;  %v3290_v22 = vsel %vm2386_vm2, %v8137_v25, %v5814_v41  ;;  %v3303_v12 = vsel %vm2386_vm2, %v8119_v34, %v5815_v58 }
 0x3c3   : > { %v5823_v36 = vpop.permute.xlu1 %5822  ;;  %v5828_v54 = vpop.permute.xlu0 %5827  ;;  %3513 = vmatprep.mubr.f32.mxu1 %v3298_v8  ;;  %3603 = vmatprep.mubr.f32.mxu0 %v3311_v57 }
 0x3c4   : > { %v5825_v45 = vunpack.i.h.bf16 %v5823_v36  ;;  %v5824_v51 = vunpack.i.l.bf16 %v5823_v36  ;;  %v5830_v47 = vunpack.i.h.bf16 %v5828_v54  ;;  %v5829_v26 = vunpack.i.l.bf16 %v5828_v54  ;;  %3514 = vmatmul.mubr.f32.gmra.mrb[100].mxu1 %v3290_v22  ;;  %3604 = vmatmul.mubr.f32.gmra.mrb[110].mxu0 %v3303_v12 }
 0x3c6   : > { %v3299_v30 = vsel %vm2386_vm2, %v8176_v4, %v5824_v51  ;;  %v3312_v63 = vsel %vm2386_vm2, %v8137_v25, %v5825_v45  ;;  %v3291_v16 = vsel %vm2386_vm2, %v8150_v39, %v5829_v26  ;;  %v3304_v34 = vsel %vm2386_vm2, %v8133_v14, %v5830_v47 }
 0x3c7   : > { %v5833_v18 = vpop.permute.xlu1 %5832  ;;  %v5838_v27 = vpop.permute.xlu0 %5837  ;;  %3518 = vmatprep.mubr.f32.mxu1 %v3299_v30  ;;  %3608 = vmatprep.mubr.f32.mxu0 %v3312_v63 }
 0x3c8   : > { %v5835_v62 = vunpack.i.h.bf16 %v5833_v18  ;;  %v5834_v29 = vunpack.i.l.bf16 %v5833_v18  ;;  %v5839_v56 = vunpack.i.l.bf16 %v5838_v27  ;;  %3519 = vmatmul.mubr.f32.gmra.mrb[102].mxu1 %v3291_v16  ;;  %3609 = vmatmul.mubr.f32.gmra.mrb[112].mxu0 %v3304_v34  ;;  %v5840_v3 = vunpack.i.h.bf16 %v5838_v27 }
 0x3c9   : > { %5155 = vmatprep.mubr.msk.f32.mxu1 %vm2386_vm2, %v8125_v7 }
 0x3ca   : > { %v3313_v25 = vsel %vm2386_vm2, %v8150_v39, %v5834_v29  ;;  %v3305_v2 = vsel %vm2386_vm2, %v8146_v23, %v5835_v62  ;;  %v3314_v40 = vsel %vm2386_vm2, %v8162_v52, %v5839_v56  ;;  %v3306_v39 = vsel %vm2386_vm2, %v8158_v11, %v5840_v3 }
 0x3cb   : > { %v5843_v14 = vpop.permute.xlu1 %5842  ;;  %3613 = vmatprep.mubr.f32.mxu0 %v3313_v25 }
 0x3cc   : > { %v5844_v53 = vunpack.i.l.bf16 %v5843_v14  ;;  %3614 = vmatmul.mubr.f32.gmra.mrb[114].mxu0 %v3305_v2  ;;  %5156 = vmatmul.mubr.msk.f32.vlgmr.msra.gmra.mrb[104].mxu1 %vm2386_vm2, %v8139_v24  ;;  %v5845_v7 = vunpack.i.h.bf16 %v5843_v14 }
 0x3cd   : > { %3618 = vmatprep.mubr.f32.mxu0 %v3314_v40  ;;  %5158 = vmatprep.mubr.msk.f32.mxu1 %vm2386_vm2, %v8152_v32 }
 0x3ce   : > { %v3315_v23 = vsel %vm2386_vm2, %v7845_v9, %v5844_v53  ;;  %v3307_v24 = vsel %vm2386_vm2, %v8170_v1, %v5845_v7  ;;  %v8291_v1 = vld [vmem:[%s8399_s9] ss:$0 sm:$0xff] }
 0x3d0   : > { %3619 = vmatmul.mubr.f32.gmra.mrb[116].mxu0 %v3306_v39  ;;  %5159 = vmatmul.mubr.msk.f32.gmra.mrb[106].mxu1 %vm2386_vm2, %v8164_v5 }
 0x3d1   : > { %3623 = vmatprep.mubr.f32.mxu0 %v3315_v23  ;;  %5161 = vmatprep.mubr.msk.f32.mxu1 %vm2386_vm2, %v8174_v33 }
 0x3d4   : > { %3624 = vmatmul.mubr.f32.gmra.mrb[118].mxu0 %v3307_v24  ;;  %5162 = vmatmul.mubr.msk.f32.gmra.mrb[108].mxu1 %vm2386_vm2, %v8176_v4 }
 0x3d5   : > { %5164 = vmatprep.mubr.msk.f32.mxu1 %vm2386_vm2, %v8182_v49 }
 0x3d8   : > { %5165 = vmatmul.mubr.msk.f32.gmra.mrb[110].mxu1 %vm2386_vm2, %v7833_v55 }
 0x47f   : > { %v4985_v32 = vpop.f32.mrb[88].mxu1 }
 0x480   : > { %v4986_v11 = vpop.f32.mrb[89].mxu1 }
 0x481   : > { %v4987_v9 = vadd.f32 %v4986_v11, %v4985_v32 }
 0x483   : > { %v4988_v52 = vpop.f32.mrb[90].mxu1  ;;  %v3486_v55 = vadd.f32 %v4987_v9, %v8291_v1 }
 0x484   : > { %v4989_v5 = vpop.f32.mrb[91].mxu1 }
 0x485   : > { %v4990_v37 = vadd.f32 %v4989_v5, %v4988_v52 }
 0x487   : > { %v4991_v33 = vpop.f32.mrb[92].mxu1  ;;  %v3491_v12 = vadd.f32 %v4990_v37, %v8291_v1 }
 0x488   : > { %v4992_v48 = vpop.f32.mrb[93].mxu1 }
 0x489   : > { %v4993_v0 = vadd.f32 %v4992_v48, %v4991_v33 }
 0x48b   : > { %v4994_v4 = vpop.f32.mrb[94].mxu1  ;;  %v5041_v43 = vpop.f32.mrb[104].mxu0  ;;  %v3496_v63 = vadd.f32 %v4993_v0, %v8291_v1 }
 0x48c   : > { %v4995_v49 = vpop.f32.mrb[95].mxu1  ;;  %v5042_v61 = vpop.f32.mrb[105].mxu0 }
 0x48d   : > { %v4996_v28 = vadd.f32 %v4995_v49, %v4994_v4  ;;  %v5043_v17 = vadd.f32 %v5042_v61, %v5041_v43 }
 0x48f   : > { %v4997_v58 = vpop.f32.mrb[96].mxu1  ;;  %v5044_v41 = vpop.f32.mrb[106].mxu0  ;;  %v3591_v8 = vadd.f32 %v5043_v17, %v3486_v55  ;;  %v3501_v25 = vadd.f32 %v4996_v28, %v8291_v1 }
 0x490   : > { %v4998_v57 = vpop.f32.mrb[97].mxu1  ;;  %v5045_v22 = vpop.f32.mrb[107].mxu0 }
 0x491   : > { %v4999_v36 = vadd.f32 %v4998_v57, %v4997_v58  ;;  %v5046_v54 = vadd.f32 %v5045_v22, %v5044_v41 }
 0x493   : > { %v5000_v45 = vpop.f32.mrb[98].mxu1  ;;  %v5047_v51 = vpop.f32.mrb[108].mxu0  ;;  %v3596_v47 = vadd.f32 %v5046_v54, %v3491_v12  ;;  %v3506_v23 = vadd.f32 %v4999_v36, %v8291_v1 }
 0x494   : > { %v5001_v26 = vpop.f32.mrb[99].mxu1  ;;  %v5048_v30 = vpop.f32.mrb[109].mxu0 }
 0x495   : > { %v5002_v16 = vadd.f32 %v5001_v26, %v5000_v45  ;;  %v5049_v34 = vadd.f32 %v5048_v30, %v5047_v51 }
 0x497   : > { %v5003_v18 = vpop.f32.mrb[100].mxu1  ;;  %v5050_v27 = vpop.f32.mrb[110].mxu0  ;;  %v3601_v62 = vadd.f32 %v5049_v34, %v3496_v63  ;;  %v3511_v48 = vadd.f32 %v5002_v16, %v8291_v1 }
 0x498   : > { %v5004_v29 = vpop.f32.mrb[101].mxu1  ;;  %v5051_v56 = vpop.f32.mrb[111].mxu0 }
 0x499   : > { %v5005_v2 = vadd.f32 %v5004_v29, %v5003_v18  ;;  %v5052_v3 = vadd.f32 %v5051_v56, %v5050_v27 }
 0x49b   : > { %v5006_v14 = vpop.f32.mrb[102].mxu1  ;;  %v5053_v53 = vpop.f32.mrb[112].mxu0  ;;  %v3606_v40 = vadd.f32 %v5052_v3, %v3501_v25  ;;  %v3516_v22 = vadd.f32 %v5005_v2, %v8291_v1 }
 0x49c   : > { %v5007_v7 = vpop.f32.mrb[103].mxu1  ;;  %v5054_v39 = vpop.f32.mrb[113].mxu0 }
 0x49d   : > { %v5008_v24 = vadd.f32 %v5007_v7, %v5006_v14  ;;  %v5055_v32 = vadd.f32 %v5054_v39, %v5053_v53 }
 0x49f   : > { %v5056_v11 = vpop.f32.mrb[114].mxu0  ;;  %v5157_v9 = vpop.f32.mrb[104].mxu1  ;;  %v3611_v52 = vadd.f32 %v5055_v32, %v3506_v23  ;;  %v3521_v30 = vadd.f32 %v5008_v24, %v8291_v1 }
 0x4a0   : > { %v3701_v5 = vadd.f32 %v5157_v9, %v3596_v47  ;;  %v5057_v37 = vpop.f32.mrb[115].mxu0  ;;  %v3695_v33 = vpop.f32.mrb[105].mxu1 }
 0x4a1   : > { %v5058_v0 = vadd.f32 %v5057_v37, %v5056_v11  ;;  %v3696_v4 = vadd.f32 %v3695_v33, %v3591_v8 }
 0x4a2   : > { %v3735_v43 = vadd.f32 %v3701_v5, %v2379_v6 }
 0x4a3   : > { %v3734_v49 = vadd.f32 %v3696_v4, %v2378_v46  ;;  %v5059_v61 = vpop.f32.mrb[116].mxu0  ;;  %v5160_v55 = vpop.f32.mrb[106].mxu1  ;;  %v3616_v28 = vadd.f32 %v5058_v0, %v3511_v48 }
 0x4a4   : > { %v3743_v17 = vmax.f32 %v3735_v43, 0.0  ;;  %v3711_v58 = vadd.f32 %v5160_v55, %v3606_v40  ;;  %v5060_v41 = vpop.f32.mrb[117].mxu0  ;;  %v3705_v57 = vpop.f32.mrb[107].mxu1 }
 0x4a5   : > { %v3742_v12 = vmax.f32 %v3734_v49, 0.0  ;;  %v5061_v36 = vadd.f32 %v5060_v41, %v5059_v61  ;;  %v3706_v54 = vadd.f32 %v3705_v57, %v3601_v62 }
 0x4a6   : > { %3751 = vst.msk [vmem:[%s8307_s0 + $0x8] sm:$0xff] %vm2386_vm2, %v3743_v17  ;;  %v3737_v31 = vadd.f32 %v3711_v58, %v2381_v44 }
 0x4a7   : > { %3750 = vst.msk [vmem:[%s8307_s0] sm:$0xff] %vm2386_vm2, %v3742_v12  ;;  %v3736_v46 = vadd.f32 %v3706_v54, %v2380_v35  ;;  %v5062_v42 = vpop.f32.mrb[118].mxu0  ;;  %v5163_v6 = vpop.f32.mrb[108].mxu1  ;;  %v3621_v8 = vadd.f32 %v5061_v36, %v3516_v22 }
 0x4a8   : > { %v3745_v45 = vmax.f32 %v3737_v31, 0.0  ;;  %v3721_v51 = vadd.f32 %v5163_v6, %v3616_v28  ;;  %v5063_v47 = vpop.f32.mrb[119].mxu0  ;;  %v3715_v26 = vpop.f32.mrb[109].mxu1 }
 0x4a9   : > { %v3744_v63 = vmax.f32 %v3736_v46, 0.0  ;;  %v5064_v15 = vadd.f32 %v5063_v47, %v5062_v42  ;;  %v3716_v44 = vadd.f32 %v3715_v26, %v3611_v52 }
 0x4aa   : > { %3753 = vst.msk [vmem:[%s8307_s0 + $0x18] sm:$0xff] %vm2386_vm2, %v3745_v45  ;;  %v3739_v20 = vadd.f32 %v3721_v51, %v2383_v19 }
 0x4ab   : > { %3752 = vst.msk [vmem:[%s8307_s0 + $0x10] sm:$0xff] %vm2386_vm2, %v3744_v63  ;;  %v3738_v35 = vadd.f32 %v3716_v44, %v2382_v10  ;;  %v3626_v16 = vadd.f32 %v5064_v15, %v3521_v30  ;;  %v5166_v34 = vpop.f32.mrb[110].mxu1 }
 0x4ac   : > { %v3747_v1 = vmax.f32 %v3739_v20, 0.0  ;;  %v3725_v18 = vpop.f32.mrb[111].mxu1 }
 0x4ad   : > { %v3746_v27 = vmax.f32 %v3738_v35, 0.0  ;;  %v3731_v62 = vadd.f32 %v5166_v34, %v3626_v16  ;;  %v3726_v29 = vadd.f32 %v3725_v18, %v3621_v8 }
 0x4ae   : > { %3755 = vst.msk [vmem:[%s8307_s0 + $0x28] sm:$0xff] %vm2386_vm2, %v3747_v1 }
 0x4af   : > { %3754 = vst.msk [vmem:[%s8307_s0 + $0x20] sm:$0xff] %vm2386_vm2, %v3746_v27  ;;  %v3741_v60 = vadd.f32 %v3731_v62, %v2385_v50  ;;  %v3740_v10 = vadd.f32 %v3726_v29, %v2384_v13 }
 0x4b1   : > { %v3749_v21 = vmax.f32 %v3741_v60, 0.0  ;;  %v3748_v19 = vmax.f32 %v3740_v10, 0.0 }
 0x4b3   : > { %3757 = vst.msk [vmem:[%s8307_s0 + $0x38] sm:$0xff] %vm2386_vm2, %v3749_v21  ;;  %3756 = vst.msk [vmem:[%s8307_s0 + $0x30] sm:$0xff] %vm2386_vm2, %v3748_v19 }
 0x4b4   : > { %5874 = shalt.err (!%p5871_p3)
}
 0x4b5   : > { %s5875_s21 = scalar_lea.hbm %s8339_s18, 1024  ;;  %s5879_s27 = scalar_lea.hbm %s8400_s10, 2048 }
 0x4b6   : > { %p5876_p4 = scmp.ne.s32.totalorder %s8339_s18, %s5875_s21  ;;  %p5880_p9 = scmp.lt.u32.totalorder %s8339_s18, %s8400_s10 }
 0x4b7   : > { %p5881_p10 = scmp.lt.u32.totalorder %s5879_s27, %s5875_s21  ;;  %p5883_p12 = scmp.lt.u32.totalorder %s5875_s21, %s8339_s18 }
 0x4b8   : > { %p5877_p7 = pnand %p5876_p4, %p6028_p5 }
 0x4b9   : > { %p5882_p11 = por %p5881_p10, %p5880_p9 }
 0x4ba   : > { %p5878_p8 = pneg %p5877_p7 }
 0x4bb   : > { %p5884_p13 = por %p5883_p12, %p5882_p11 }
 0x4bd   : > { %p5885_p0 = pnand %p5884_p13, %p5878_p8 }
 0x4bf   : > { %5888 = shalt.err (!%p5885_p0)
}
 0x4c0   : > { %s5933_s30 = smov 128   ;;  %s5934_s11 = smov 8  }
 0x4c1   : > { %5636 = dma.vmem_to_hbm [thread:$0]  (%p6028_p5), %s8341_s12, 1024, %s8339_s18, %s8349_s17, %s5933_s30, %s5933_s30, %s5934_s11  }
 0x4c2 PF: > { %p5648_p1 = scmp.ge.s32.totalorder %s5927_s16, 2  ;;  %s3787_s20 = sand.u32 1, %s5915_s13  }
 0x4c3   : > { %s3788_s25 = scalar_lea.sflag [#allocation4], %s3787_s20 }
 0x4c4   : > { %p5643_p2 = pnand %p5648_p1, %p6032_p6 }
 0x4c6   : > { %5910 = dma.done.wait (!%p5643_p2), %s3788_s25, 1024  }
 0x4c7   : > { %5912 = vsyncadd (!%p5643_p2), %s3788_s25, 4294966272  ;;  %p21_p3 = scmp.ge.s32.totalorder %s6015_s19, 4   ;;  %s8409_s13 = smov %s5919_s14 }
 0x4c8   : > { %s8410_s14 = smov %s5923_s15  ;;  %s8411_s15 = smov %s6026_s22 }
 0x4c9   : > { %s8412_s16 = smov %s6015_s19  ;;  %23 = sbr.rel (!%p21_p3) target bundleno = 6 (0x6), region = 118 }
 0x4d0   :  { %3793 = vsyncpa [#allocation4], 1 }
 0x4d1   :  { %3795 = vsyncpa [#allocation4 + $0x1], 1 }
 0x4d2   :  { %3796 = vsyncpa [#allocation5], 1 }
 0x4d3   :  { %3798 = vsyncpa [#allocation5 + $0x1], 1 }

</bundles_post_ra>
